<compile_context>
chip_gen: v5e
topology: v5e:2x2
jax: 0.10.0
libtpu: 0.0.40
codegen_flags: <defaults>
</compile_context>

<pallas_src>
import numpy as np
import jax
import jax.numpy as jnp
from jax.experimental import pallas as pl
from jax.experimental.pallas import tpu as pltpu


# ------------------------------ Pallas kernel ------------------------------- #

def _make_chain_kernel(has_ws):
    """Build a kernel that applies a chain of ResnetBlockFC blocks to one row tile.

    has_ws: tuple of bools, one per block, True if the block has a learned
    (bias-free) shortcut, False for the identity shortcut.
    Kernel ref layout: (x_ref, [w0, b0, w1, b1, (ws)] * n_blocks, o_ref).
    """

    def kernel(x_ref, *refs):
        o_ref = refs[-1]
        w = refs[:-1]
        # Residual stream kept in f32 inside VMEM/vregs; matmul operands in bf16.
        h32 = x_ref[...].astype(jnp.float32)
        i = 0
        for hs in has_ws:
            w0, b0, w1, b1 = w[i], w[i + 1], w[i + 2], w[i + 3]
            i += 4
            a0 = jnp.maximum(h32, 0.0).astype(jnp.bfloat16)
            net = jnp.dot(a0, w0[...],
                          preferred_element_type=jnp.float32) + b0[...]
            a1 = jnp.maximum(net, 0.0).astype(jnp.bfloat16)
            dx = jnp.dot(a1, w1[...],
                         preferred_element_type=jnp.float32) + b1[...]
            if hs:
                ws_ = w[i]
                i += 1
                x_s = jnp.dot(h32.astype(jnp.bfloat16), ws_[...],
                              preferred_element_type=jnp.float32)
            else:
                x_s = h32
            h32 = x_s + dx
        o_ref[...] = h32.astype(o_ref.dtype)

    return kernel


# ------------------------------ kernel wrapper ------------------------------ #

def _choose_tm(m, tm_cap):
    # Large lane-dense row tiles, but keep >= 2 grid steps so the "parallel"
    # axis can shard across v7x's two TensorCores; tiles are multiples of 8 rows.
    half = -(-m // 2)                       # cdiv(m, 2)
    tm = min(tm_cap, ((half + 7) // 8) * 8)
    return max(tm, 8)


def resnet_block_fc_chain(x, blocks, *, tm_cap=4096, out_dtype=None):
    """Apply a chain of ResnetBlockFC blocks, fused into a single pallas_call.

    x: (..., size_in); blocks: list of param dicts from init_params, where each
    block's size_in matches the previous block's size_out.
    """
    lead = x.shape[:-1]
    size_in = x.shape[-1]
    x2 = x.reshape(-1, size_in)             # native dtype, no upcast, no pad
    m = x2.shape[0]

    tm = _choose_tm(m, tm_cap)
    grid = (pl.cdiv(m, tm),)                # ragged last block masked by Pallas

    resident = lambda i: (0, 0)             # weights/biases stay put across steps
    row_tile = lambda i: (i, 0)

    operands = [x2]
    in_specs = [pl.BlockSpec((tm, size_in), row_tile)]
    has_ws = []
    cin = size_in
    flops = 0
    weight_bytes = 0
    for p in blocks:
        w0, b0, w1, b1, ws = p["w0"], p["b0"], p["w1"], p["b1"], p["ws"]
        ch, cout = w0.shape[1], w1.shape[1]
        assert w0.shape[0] == cin and w1.shape[0] == ch
        b0_2 = b0.reshape(1, ch).astype(jnp.float32)
        b1_2 = b1.reshape(1, cout).astype(jnp.float32)
        operands += [w0, b0_2, w1, b1_2]
        in_specs += [pl.BlockSpec((cin, ch), resident),
                     pl.BlockSpec((1, ch), resident),
                     pl.BlockSpec((ch, cout), resident),
                     pl.BlockSpec((1, cout), resident)]
        flops += 2 * m * (cin * ch + ch * cout)
        weight_bytes += (cin * ch + ch * cout) * w0.dtype.itemsize \
                        + (ch + cout) * 4
        if ws is not None:
            assert ws.shape == (cin, cout)
            operands.append(ws)
            in_specs.append(pl.BlockSpec((cin, cout), resident))
            flops += 2 * m * cin * cout
            weight_bytes += cin * cout * ws.dtype.itemsize
            has_ws.append(True)
        else:
            assert cin == cout, "identity shortcut needs size_in == size_out"
            has_ws.append(False)
        cin = cout
    size_out = cin

    if out_dtype is None:
        out_dtype = x.dtype
    out_itemsize = np.dtype(out_dtype).itemsize

    cost = pl.CostEstimate(
        flops=int(flops),
        transcendentals=0,
        bytes_accessed=int(m * size_in * x2.dtype.itemsize
                           + m * size_out * out_itemsize
                           + weight_bytes))

    y = pl.pallas_call(
        _make_chain_kernel(tuple(has_ws)),
        out_shape=jax.ShapeDtypeStruct((m, size_out), out_dtype),
        grid=grid,
        in_specs=in_specs,
        out_specs=pl.BlockSpec((tm, size_out), row_tile),
        compiler_params=pltpu.CompilerParams(
            dimension_semantics=("parallel",),
            vmem_limit_bytes=32 * 1024 * 1024),
        cost_estimate=cost,
    )(*operands)

    return y.reshape(lead + (size_out,))


def resnet_block_fc(x, params, **kw):
    """Single ResnetBlockFC forward (chain of length 1)."""
    return resnet_block_fc_chain(x, [params], **kw)


# ------------------------- deterministic parameters ------------------------- #

def init_params(key, size_in, size_out=None, size_h=None):
    if size_out is None:
        size_out = size_in
    if size_h is None:
        size_h = min(size_in, size_out)
    k0, k1, k2, k3, k4 = jax.random.split(key, 5)
    # Weights stored pre-transposed as (in, out) and in bf16 (MXU operand dtype);
    # biases stay f32 (added to the f32 accumulator).
    # The PyTorch module zero-inits fc_1.weight; random values are used here so
    # the correctness check exercises the full data path (forward semantics are
    # identical for any weight values).
    w0 = (jax.random.normal(k0, (size_in, size_h), jnp.float32)
          / np.sqrt(size_in)).astype(jnp.bfloat16)
    b0 = 0.1 * jax.random.normal(k1, (size_h,), jnp.float32)
    w1 = (jax.random.normal(k2, (size_h, size_out), jnp.float32)
          / np.sqrt(size_h)).astype(jnp.bfloat16)
    b1 = 0.1 * jax.random.normal(k3, (size_out,), jnp.float32)
    ws = (None if size_in == size_out else
          (jax.random.normal(k4, (size_in, size_out), jnp.float32)
           / np.sqrt(size_in)).astype(jnp.bfloat16))
    return dict(w0=w0, b0=b0, w1=w1, b1=b1, ws=ws)


# ----------------------------- pure-JAX reference ---------------------------- #

def reference(x, p):
    hi = jax.lax.Precision.HIGHEST
    w0 = p["w0"].astype(jnp.float32)
    w1 = p["w1"].astype(jnp.float32)
    net = jnp.dot(jnp.maximum(x, 0.0), w0, precision=hi) + p["b0"]
    dx = jnp.dot(jnp.maximum(net, 0.0), w1, precision=hi) + p["b1"]
    if p["ws"] is not None:
        x_s = jnp.dot(x, p["ws"].astype(jnp.float32), precision=hi)
    else:
        x_s = x
    return x_s + dx


if __name__ == "__main__":
    key = jax.random.PRNGKey(0)
    kp1, kp2, kx = jax.random.split(key, 3)

    # Block A: learned linear shortcut (size_in=64 -> size_out=128, size_h=64).
    params_a = init_params(kp1, size_in=64, size_out=128)
    # Block B: identity shortcut (size_in == size_out == 128, size_h=128).
    params_b = init_params(kp2, size_in=128)

    # bf16 activations in / out; (batch, points, C) -> rows m = 2048, tm = 1024,
    # grid = (2,) so both v7x TensorCores get work.
    x = jax.random.normal(kx, (2, 1024, 64), jnp.float32).astype(jnp.bfloat16)

    # Both blocks fused into ONE pallas_call: the (TM, 128) intermediate never
    # touches HBM.
    fwd = jax.jit(lambda v: resnet_block_fc_chain(v, [params_a, params_b]))
    out = jax.block_until_ready(fwd(x))
    assert out.shape == (2, 1024, 128), out.shape

    xf = x.astype(jnp.float32)
    ref = jax.block_until_ready(reference(reference(xf, params_a), params_b))
    np.testing.assert_allclose(np.asarray(out, dtype=np.float32),
                               np.asarray(ref), rtol=5e-2, atol=5e-2)
    print("KERNEL_OK")
</pallas_src>

<mosaic_0001>
module attributes {stable_mosaic.version = 11 : i64} {
  func.func @kernel(%arg0: i32, %arg1: memref<1024x64xbf16, #tpu.memory_space<vmem>>, %arg2: memref<64x64xbf16, #tpu.memory_space<vmem>>, %arg3: memref<1x64xf32, #tpu.memory_space<vmem>>, %arg4: memref<64x128xbf16, #tpu.memory_space<vmem>>, %arg5: memref<1x128xf32, #tpu.memory_space<vmem>>, %arg6: memref<64x128xbf16, #tpu.memory_space<vmem>>, %arg7: memref<128x128xbf16, #tpu.memory_space<vmem>>, %arg8: memref<1x128xf32, #tpu.memory_space<vmem>>, %arg9: memref<128x128xbf16, #tpu.memory_space<vmem>>, %arg10: memref<1x128xf32, #tpu.memory_space<vmem>>, %arg11: memref<1024x128xbf16, #tpu.memory_space<vmem>>) attributes {dimension_semantics = [#tpu.dimension_semantics<parallel>], iteration_bounds = array<i64: 2>, scalar_prefetch = 0 : i64, scratch_operands = 0 : i64, tpu.core_type = #tpu.core_type<tc>, window_params = [{transform_indices = @transform_0, window_bounds = array<i64: 1024, 64>}, {pipeline_mode = #tpu.pipeline_mode<synchronous>, transform_indices = @transform_1, window_bounds = array<i64: 64, 64>}, {pipeline_mode = #tpu.pipeline_mode<synchronous>, transform_indices = @transform_2, window_bounds = array<i64: 1, 64>}, {pipeline_mode = #tpu.pipeline_mode<synchronous>, transform_indices = @transform_3, window_bounds = array<i64: 64, 128>}, {pipeline_mode = #tpu.pipeline_mode<synchronous>, transform_indices = @transform_4, window_bounds = array<i64: 1, 128>}, {pipeline_mode = #tpu.pipeline_mode<synchronous>, transform_indices = @transform_5, window_bounds = array<i64: 64, 128>}, {pipeline_mode = #tpu.pipeline_mode<synchronous>, transform_indices = @transform_6, window_bounds = array<i64: 128, 128>}, {pipeline_mode = #tpu.pipeline_mode<synchronous>, transform_indices = @transform_7, window_bounds = array<i64: 1, 128>}, {pipeline_mode = #tpu.pipeline_mode<synchronous>, transform_indices = @transform_8, window_bounds = array<i64: 128, 128>}, {pipeline_mode = #tpu.pipeline_mode<synchronous>, transform_indices = @transform_9, window_bounds = array<i64: 1, 128>}, {transform_indices = @transform_10, window_bounds = array<i64: 1024, 128>}]} {
    %c0 = arith.constant 0 : index
    %c0_0 = arith.constant 0 : index
    %0 = vector.load %arg1[%c0, %c0_0] : memref<1024x64xbf16, #tpu.memory_space<vmem>>, vector<1024x64xbf16>
    %1 = arith.extf %0 : vector<1024x64xbf16> to vector<1024x64xf32>
    %cst = arith.constant 0.000000e+00 : f32
    %2 = vector.broadcast %cst : f32 to vector<1024x64xf32>
    %3 = arith.maximumf %1, %2 : vector<1024x64xf32>
    %4 = arith.truncf %3 : vector<1024x64xf32> to vector<1024x64xbf16>
    %c0_1 = arith.constant 0 : index
    %c0_2 = arith.constant 0 : index
    %5 = vector.load %arg2[%c0_1, %c0_2] : memref<64x64xbf16, #tpu.memory_space<vmem>>, vector<64x64xbf16>
    %cst_3 = arith.constant dense<0.000000e+00> : vector<1024x64xf32>
    %6 = tpu.matmul %4, %5, %cst_3 {dimension_numbers = #tpu.dot_dimension_numbers<[1], [0], [0], [1], [0, 0, 1, 1], [], []>} : vector<1024x64xbf16>, vector<64x64xbf16>, vector<1024x64xf32> -> vector<1024x64xf32>
    %c0_4 = arith.constant 0 : index
    %c0_5 = arith.constant 0 : index
    %7 = vector.load %arg3[%c0_4, %c0_5] : memref<1x64xf32, #tpu.memory_space<vmem>>, vector<1x64xf32>
    %8 = vector.broadcast %7 : vector<1x64xf32> to vector<1024x64xf32>
    %9 = arith.addf %6, %8 : vector<1024x64xf32>
    %cst_6 = arith.constant 0.000000e+00 : f32
    %10 = vector.broadcast %cst_6 : f32 to vector<1024x64xf32>
    %11 = arith.maximumf %9, %10 : vector<1024x64xf32>
    %12 = arith.truncf %11 : vector<1024x64xf32> to vector<1024x64xbf16>
    %c0_7 = arith.constant 0 : index
    %c0_8 = arith.constant 0 : index
    %13 = vector.load %arg4[%c0_7, %c0_8] : memref<64x128xbf16, #tpu.memory_space<vmem>>, vector<64x128xbf16>
    %cst_9 = arith.constant dense<0.000000e+00> : vector<1024x128xf32>
    %14 = tpu.matmul %12, %13, %cst_9 {dimension_numbers = #tpu.dot_dimension_numbers<[1], [0], [0], [1], [0, 0, 1, 1], [], []>} : vector<1024x64xbf16>, vector<64x128xbf16>, vector<1024x128xf32> -> vector<1024x128xf32>
    %c0_10 = arith.constant 0 : index
    %c0_11 = arith.constant 0 : index
    %15 = vector.load %arg5[%c0_10, %c0_11] : memref<1x128xf32, #tpu.memory_space<vmem>>, vector<1x128xf32>
    %16 = vector.broadcast %15 : vector<1x128xf32> to vector<1024x128xf32>
    %17 = arith.addf %14, %16 : vector<1024x128xf32>
    %18 = arith.truncf %1 : vector<1024x64xf32> to vector<1024x64xbf16>
    %c0_12 = arith.constant 0 : index
    %c0_13 = arith.constant 0 : index
    %19 = vector.load %arg6[%c0_12, %c0_13] : memref<64x128xbf16, #tpu.memory_space<vmem>>, vector<64x128xbf16>
    %cst_14 = arith.constant dense<0.000000e+00> : vector<1024x128xf32>
    %20 = tpu.matmul %18, %19, %cst_14 {dimension_numbers = #tpu.dot_dimension_numbers<[1], [0], [0], [1], [0, 0, 1, 1], [], []>} : vector<1024x64xbf16>, vector<64x128xbf16>, vector<1024x128xf32> -> vector<1024x128xf32>
    %21 = arith.addf %20, %17 : vector<1024x128xf32>
    %cst_15 = arith.constant 0.000000e+00 : f32
    %22 = vector.broadcast %cst_15 : f32 to vector<1024x128xf32>
    %23 = arith.maximumf %21, %22 : vector<1024x128xf32>
    %24 = arith.truncf %23 : vector<1024x128xf32> to vector<1024x128xbf16>
    %c0_16 = arith.constant 0 : index
    %c0_17 = arith.constant 0 : index
    %25 = vector.load %arg7[%c0_16, %c0_17] : memref<128x128xbf16, #tpu.memory_space<vmem>>, vector<128x128xbf16>
    %cst_18 = arith.constant dense<0.000000e+00> : vector<1024x128xf32>
    %26 = tpu.matmul %24, %25, %cst_18 {dimension_numbers = #tpu.dot_dimension_numbers<[1], [0], [0], [1], [0, 0, 1, 1], [], []>} : vector<1024x128xbf16>, vector<128x128xbf16>, vector<1024x128xf32> -> vector<1024x128xf32>
    %c0_19 = arith.constant 0 : index
    %c0_20 = arith.constant 0 : index
    %27 = vector.load %arg8[%c0_19, %c0_20] : memref<1x128xf32, #tpu.memory_space<vmem>>, vector<1x128xf32>
    %28 = vector.broadcast %27 : vector<1x128xf32> to vector<1024x128xf32>
    %29 = arith.addf %26, %28 : vector<1024x128xf32>
    %cst_21 = arith.constant 0.000000e+00 : f32
    %30 = vector.broadcast %cst_21 : f32 to vector<1024x128xf32>
    %31 = arith.maximumf %29, %30 : vector<1024x128xf32>
    %32 = arith.truncf %31 : vector<1024x128xf32> to vector<1024x128xbf16>
    %c0_22 = arith.constant 0 : index
    %c0_23 = arith.constant 0 : index
    %33 = vector.load %arg9[%c0_22, %c0_23] : memref<128x128xbf16, #tpu.memory_space<vmem>>, vector<128x128xbf16>
    %cst_24 = arith.constant dense<0.000000e+00> : vector<1024x128xf32>
    %34 = tpu.matmul %32, %33, %cst_24 {dimension_numbers = #tpu.dot_dimension_numbers<[1], [0], [0], [1], [0, 0, 1, 1], [], []>} : vector<1024x128xbf16>, vector<128x128xbf16>, vector<1024x128xf32> -> vector<1024x128xf32>
    %c0_25 = arith.constant 0 : index
    %c0_26 = arith.constant 0 : index
    %35 = vector.load %arg10[%c0_25, %c0_26] : memref<1x128xf32, #tpu.memory_space<vmem>>, vector<1x128xf32>
    %36 = vector.broadcast %35 : vector<1x128xf32> to vector<1024x128xf32>
    %37 = arith.addf %34, %36 : vector<1024x128xf32>
    %38 = arith.addf %21, %37 : vector<1024x128xf32>
    %39 = arith.truncf %38 : vector<1024x128xf32> to vector<1024x128xbf16>
    %c0_27 = arith.constant 0 : index
    %c0_28 = arith.constant 0 : index
    %40 = vector.load %arg11[%c0_27, %c0_28] : memref<1024x128xbf16, #tpu.memory_space<vmem>>, vector<1024x128xbf16>
    tpu.vector_store %arg11[%c0_27, %c0_28], %39 {strides = array<i32>} : memref<1024x128xbf16, #tpu.memory_space<vmem>>, vector<1024x128xbf16>,
    return
  }
  func.func @transform_0(%arg0: i32) -> (i32, i32) {
    %c0_i32 = arith.constant 0 : i32
    %c0_i32_0 = arith.constant 0 : i32
    return %arg0, %c0_i32 : i32, i32
  }
  func.func @transform_1(%arg0: i32) -> (i32, i32) {
    %c0_i32 = arith.constant 0 : i32
    %c0_i32_0 = arith.constant 0 : i32
    %c0_i32_1 = arith.constant 0 : i32
    return %c0_i32, %c0_i32_0 : i32, i32
  }
  func.func @transform_2(%arg0: i32) -> (i32, i32) {
    %c0_i32 = arith.constant 0 : i32
    %c0_i32_0 = arith.constant 0 : i32
    %c0_i32_1 = arith.constant 0 : i32
    return %c0_i32, %c0_i32_0 : i32, i32
  }
  func.func @transform_3(%arg0: i32) -> (i32, i32) {
    %c0_i32 = arith.constant 0 : i32
    %c0_i32_0 = arith.constant 0 : i32
    %c0_i32_1 = arith.constant 0 : i32
    return %c0_i32, %c0_i32_0 : i32, i32
  }
  func.func @transform_4(%arg0: i32) -> (i32, i32) {
    %c0_i32 = arith.constant 0 : i32
    %c0_i32_0 = arith.constant 0 : i32
    %c0_i32_1 = arith.constant 0 : i32
    return %c0_i32, %c0_i32_0 : i32, i32
  }
  func.func @transform_5(%arg0: i32) -> (i32, i32) {
    %c0_i32 = arith.constant 0 : i32
    %c0_i32_0 = arith.constant 0 : i32
    %c0_i32_1 = arith.constant 0 : i32
    return %c0_i32, %c0_i32_0 : i32, i32
  }
  func.func @transform_6(%arg0: i32) -> (i32, i32) {
    %c0_i32 = arith.constant 0 : i32
    %c0_i32_0 = arith.constant 0 : i32
    %c0_i32_1 = arith.constant 0 : i32
    return %c0_i32, %c0_i32_0 : i32, i32
  }
  func.func @transform_7(%arg0: i32) -> (i32, i32) {
    %c0_i32 = arith.constant 0 : i32
    %c0_i32_0 = arith.constant 0 : i32
    %c0_i32_1 = arith.constant 0 : i32
    return %c0_i32, %c0_i32_0 : i32, i32
  }
  func.func @transform_8(%arg0: i32) -> (i32, i32) {
    %c0_i32 = arith.constant 0 : i32
    %c0_i32_0 = arith.constant 0 : i32
    %c0_i32_1 = arith.constant 0 : i32
    return %c0_i32, %c0_i32_0 : i32, i32
  }
  func.func @transform_9(%arg0: i32) -> (i32, i32) {
    %c0_i32 = arith.constant 0 : i32
    %c0_i32_0 = arith.constant 0 : i32
    %c0_i32_1 = arith.constant 0 : i32
    return %c0_i32, %c0_i32_0 : i32, i32
  }
  func.func @transform_10(%arg0: i32) -> (i32, i32) {
    %c0_i32 = arith.constant 0 : i32
    %c0_i32_0 = arith.constant 0 : i32
    return %arg0, %c0_i32 : i32, i32
  }
}

</mosaic_0001>

<bundles_post_ra>
// kernel: _lambda_.1
= control target key start
LH: loop header
LB: loop body
LE: loop exit
PB: predicated region body
PF: predicated region fallthrough
CT: control target
= control target key end

     0   :  { %15 = vsyncpa [#allocation3], 0  ;;  %s7774_s0 = inlined_call_operand.vmem [shape: bf16[2048,64], index: 0, kind: input, shape index: {}]   ;;  %s7775_s1 = inlined_call_operand.vmem [shape: bf16[64,64], index: 1, kind: input, shape index: {}]   ;;  %s7776_s2 = inlined_call_operand.vmem [shape: f32[1,64], index: 2, kind: input, shape index: {}]   ;;  %s7777_s3 = inlined_call_operand.vmem [shape: bf16[64,128], index: 3, kind: input, shape index: {}]   ;;  %s7778_s4 = inlined_call_operand.vmem [shape: f32[1,128], index: 4, kind: input, shape index: {}]   ;;  %s7779_s5 = inlined_call_operand.vmem [shape: bf16[64,128], index: 5, kind: input, shape index: {}]   ;;  %s7780_s6 = inlined_call_operand.vmem [shape: bf16[128,128], index: 6, kind: input, shape index: {}]   ;;  %s7781_s7 = inlined_call_operand.vmem [shape: f32[1,128], index: 7, kind: input, shape index: {}]   ;;  %s7782_s8 = inlined_call_operand.vmem [shape: bf16[128,128], index: 8, kind: input, shape index: {}]   ;;  %s7783_s9 = inlined_call_operand.vmem [shape: f32[1,128], index: 9, kind: input, shape index: {}]   ;;  %s7784_s10 = inlined_call_operand.hbm [shape: bf16[2048,128], index: 10, kind: output, shape index: {}]  }
   0x1   :  { %17 = vsyncpa [#allocation3 + $0x1], 0  ;;  %s5875_s13 = smov 0   ;;  %s5877_s14 = smov 0  }
   0x2   :  { %s5879_s15 = smov 0   ;;  %s5881_s16 = smov 0  }
   0x3 LB: > { %s5896_s17 = sadd.s32 4294967295, %s5816_s16   ;;  %s4630_s18 = sadd.s32 4294967294, %s5816_s16   ;;  %s5816_s16 = sphi %s5881_s16, %s7882_s16   ;;  %s5812_s15 = sphi %s5879_s15, %s7881_s15   ;;  %s5808_s14 = sphi %s5877_s14, %s7880_s14   ;;  %s5804_s13 = sphi %s5875_s13, %s7879_s13  }
   0x4   : > { %s5900_s19 = sadd.s32 1, %s5816_s16   ;;  %s245_s20 = sadd.s32 1, %s5812_s15 }
   0x5   : > { %s242_s21 = ssub.s32 %s5816_s16, %s5900_s19  ;;  %p255_p0 = scmp.ne.s32.totalorder %s5812_s15, %s5808_s14 }
   0x6   : > { %p243_p1 = scmp.eq.s32.totalorder %s242_s21, 0  ;;  %p256_p2 = scmp.eq.s32.totalorder %s5896_s17, 1 }
   0x7   : > { %p261_p3 = scmp.ne.s32.totalorder %s5808_s14, %s5804_s13  ;;  %p262_p4 = scmp.eq.s32.totalorder %s4630_s18, 1 }
   0x8   : > { %s5911_s22 = scalar_select %p243_p1, %s5812_s15, %s245_s20  }
   0x9   : > { %p5913_p5 = por %p256_p2, %p255_p0  ;;  %p5917_p6 = por %p262_p4, %p261_p3 }
   0xa   : > { %p4633_p7 = scmp.ge.s32.totalorder %s5816_s16, 1  ;;  %p316_p8 = scmp.lt.s32.totalorder %s5816_s16, 3 }
   0xc   : > { %p317_p9 = pnand %p4633_p7, %p316_p8 }
   0xe   : > { %320 = sbr.rel (%p317_p9) target bundleno = 1753 (0x6d9), region = 60 }
  0x13   : > { %v5269_v0 = vld [vmem:[%s7775_s1 + $0x18] sm:$0xff]  ;;  %s4635_s27 = sshll.u32 %s5896_s17, 7  ;;  %v5268_v1 = vld [vmem:[%s7775_s1 + $0x10] sm:$0xff]  ;;  %v5267_v2 = vld [vmem:[%s7775_s1 + $0x8] sm:$0xff]  ;;  %vm846_vm0 = vcmask 523264   ;;  %s351_s25 = sand.u32 1, %s5808_s14  }
  0x14   : > { %p355_p10 = scmp.lt.s32.totalorder %s4635_s27, 255  ;;  %5678 = vmatpush.bf16.msra.mxu1 %v5269_v0  ;;  %5679 = vmatpush.bf16.msra.mxu2 %v5269_v0  ;;  %v5266_v9 = vld [vmem:[%s7775_s1] sm:$0xff]  ;;  %v5273_v14 = vld [vmem:[%s7777_s3 + $0x18] sm:$0xff]  ;;  %v5272_v42 = vld [vmem:[%s7777_s3 + $0x10] sm:$0xff]  ;;  %s4634_s26 = sshll.u32 %s351_s25, 9 }
  0x15   : > { %1043 = vmatpush.bf16.msra.mxu0 %v5269_v0  ;;  %5680 = vmatpush.bf16.msra.mxu3 %v5269_v0  ;;  %v5277_v15 = vld [vmem:[%s7779_s5 + $0x18] sm:$0xff]  ;;  %v5276_v43 = vld [vmem:[%s7779_s5 + $0x10] sm:$0xff]  ;;  %s5294_s11 = sshll.u32 %s5896_s17, 9  ;;  %s4553_s17 = scalar_lea.sflag [#allocation3], %s351_s25 }
  0x16   : > { %s7884_s27 = smov (!%p355_p10, %s4635_s27), 255  ;;  %s4564_s20 = scalar_lea.hbm %s7784_s10, %s5294_s11 }
  0x17   : > { %s4636_s30 = sshll.u32 %s7884_s27, 2  ;;  %s6722_s27 = scalar_lea.vmem [#allocation2], %s4634_s26 }
  0x18   : > { %5681 = vmatpush.bf16.msra.mxu1 %v5268_v1  ;;  %5682 = vmatpush.bf16.msra.mxu2 %v5268_v1  ;;  %s5936_s21 = scalar_lea.vmem %s7774_s0, %s4636_s30  ;;  %s4565_s26 = sshll.u32 %s6722_s27, 4  ;;  %s4566_s26 = int_to_ptr.vmem [resolvable:$true] %s4565_s26 }
  0x19   : > { %v396_v3 = vld [vmem:[%s5936_s21 + $0x88] sm:$0xff]   ;;  %v430_v4 = vld [vmem:[%s5936_s21 + $0x110] sm:$0xff]   ;;  %1044 = vmatpush.bf16.msra.mxu0 %v5268_v1  ;;  %5683 = vmatpush.bf16.msra.mxu3 %v5268_v1  ;;  %v432_v19 = vld [vmem:[%s5936_s21 + $0x118] sm:$0xff]   ;;  %s5774_s12 = scalar_lea.hbm %s7784_s10, 1024 }
  0x1a   : > { %v524_v5 = vunpack.c.l.bf16 %v396_v3  ;;  %v525_v6 = vunpack.c.h.bf16 %v396_v3  ;;  %v558_v7 = vunpack.c.l.bf16 %v430_v4  ;;  %v559_v8 = vunpack.c.h.bf16 %v430_v4  ;;  %v398_v18 = vld [vmem:[%s5936_s21 + $0x90] sm:$0xff]   ;;  %v400_v30 = vld [vmem:[%s5936_s21 + $0x98] sm:$0xff]   ;;  %v434_v31 = vld [vmem:[%s5936_s21 + $0x120] sm:$0xff]  }
  0x1b   : > { %v526_v20 = vunpack.c.l.bf16 %v398_v18  ;;  %v527_v21 = vunpack.c.h.bf16 %v398_v18  ;;  %v560_v22 = vunpack.c.l.bf16 %v432_v19  ;;  %v561_v23 = vunpack.c.h.bf16 %v432_v19  ;;  %v402_v44 = vld [vmem:[%s5936_s21 + $0xa0] sm:$0xff]   ;;  %v436_v45 = vld [vmem:[%s5936_s21 + $0x128] sm:$0xff]   ;;  %v438_v57 = vld [vmem:[%s5936_s21 + $0x130] sm:$0xff]  }
  0x1c   : > { %5684 = vmatpush.bf16.msra.mxu1 %v5267_v2  ;;  %5685 = vmatpush.bf16.msra.mxu2 %v5267_v2  ;;  %v652_v10 = vmax.f32 %v524_v5, 0.0  ;;  %v653_v11 = vmax.f32 %v525_v6, 0.0  ;;  %v686_v12 = vmax.f32 %v558_v7, 0.0  ;;  %v687_v13 = vmax.f32 %v559_v8, 0.0  ;;  %v404_v56 = vld [vmem:[%s5936_s21 + $0xa8] sm:$0xff]   ;;  %v406_v4 = vld [vmem:[%s5936_s21 + $0xb0] sm:$0xff]  }
  0x1d   : > { %1045 = vmatpush.bf16.msra.mxu0 %v5267_v2  ;;  %5686 = vmatpush.bf16.msra.mxu3 %v5267_v2  ;;  %v654_v24 = vmax.f32 %v526_v20, 0.0  ;;  %v655_v25 = vmax.f32 %v527_v21, 0.0  ;;  %v688_v26 = vmax.f32 %v560_v22, 0.0  ;;  %v689_v27 = vmax.f32 %v561_v23, 0.0  ;;  %v440_v5 = vld [vmem:[%s5936_s21 + $0x138] sm:$0xff]   ;;  %v442_v18 = vld [vmem:[%s5936_s21 + $0x140] sm:$0xff]  }
  0x1e   : > { %v763_v16 = vpack.c.bf16 %v653_v11, %v652_v10  ;;  %v780_v17 = vpack.c.bf16 %v687_v13, %v686_v12  ;;  %v528_v32 = vunpack.c.l.bf16 %v400_v30  ;;  %v529_v33 = vunpack.c.h.bf16 %v400_v30 }
  0x1f   : > { %v764_v28 = vpack.c.bf16 %v655_v25, %v654_v24  ;;  %v781_v29 = vpack.c.bf16 %v689_v27, %v688_v26  ;;  %v562_v34 = vunpack.c.l.bf16 %v434_v31  ;;  %v563_v35 = vunpack.c.h.bf16 %v434_v31 }
  0x20   : > { %5687 = vmatpush.bf16.msra.mxu1 %v5266_v9  ;;  %5688 = vmatpush.bf16.msra.mxu2 %v5266_v9  ;;  %v656_v36 = vmax.f32 %v528_v32, 0.0  ;;  %v657_v37 = vmax.f32 %v529_v33, 0.0  ;;  %v530_v46 = vunpack.c.l.bf16 %v402_v44  ;;  %v531_v47 = vunpack.c.h.bf16 %v402_v44 }
  0x21   : > { %1046 = vmatpush.bf16.msra.mxu0 %v5266_v9  ;;  %5689 = vmatpush.bf16.msra.mxu3 %v5266_v9  ;;  %v690_v38 = vmax.f32 %v562_v34, 0.0  ;;  %v691_v39 = vmax.f32 %v563_v35, 0.0  ;;  %v564_v48 = vunpack.c.l.bf16 %v436_v45  ;;  %v565_v49 = vunpack.c.h.bf16 %v436_v45  ;;  %v410_v34 = vld [vmem:[%s5936_s21 + $0xc0] sm:$0xff]   ;;  %v444_v35 = vld [vmem:[%s5936_s21 + $0x148] sm:$0xff]  }
  0x22   : > { %v765_v40 = vpack.c.bf16 %v657_v37, %v656_v36  ;;  %v658_v50 = vmax.f32 %v530_v46, 0.0  ;;  %v659_v51 = vmax.f32 %v531_v47, 0.0  ;;  %v532_v58 = vunpack.c.l.bf16 %v404_v56 }
  0x23   : > { %4670 = vmatmul.msk.bf16.vlgmr.msra.gmra.mxu1 %vm846_vm0, %v763_v16  ;;  %4687 = vmatmul.msk.bf16.vlgmr.msra.gmra.mxu2 %vm846_vm0, %v780_v17  ;;  %v782_v41 = vpack.c.bf16 %v691_v39, %v690_v38  ;;  %v692_v52 = vmax.f32 %v564_v48, 0.0  ;;  %v693_v53 = vmax.f32 %v565_v49, 0.0  ;;  %v533_v59 = vunpack.c.h.bf16 %v404_v56  ;;  %v362_v16 = vld [vmem:[%s5936_s21] sm:$0xff]   ;;  %v408_v17 = vld [vmem:[%s5936_s21 + $0xb8] sm:$0xff]   ;;  %v5271_v49 = vld [vmem:[%s7777_s3 + $0x8] sm:$0xff] }
  0x24   : > { %1792 = vmatpush.bf16.msrb.mxu1 %v5273_v14  ;;  %2665 = vmatpush.bf16.msrb.mxu2 %v5277_v15  ;;  %v766_v54 = vpack.c.bf16 %v659_v51, %v658_v50  ;;  %v566_v60 = vunpack.c.l.bf16 %v438_v57  ;;  %v567_v61 = vunpack.c.h.bf16 %v438_v57  ;;  %v660_v62 = vmax.f32 %v532_v58, 0.0  ;;  %v5275_v51 = vld [vmem:[%s7779_s5 + $0x8] sm:$0xff] }
  0x25   : > { %v783_v55 = vpack.c.bf16 %v693_v53, %v692_v52  ;;  %v661_v63 = vmax.f32 %v533_v59, 0.0  ;;  %v534_v6 = vunpack.c.l.bf16 %v406_v4  ;;  %v535_v7 = vunpack.c.h.bf16 %v406_v4 }
  0x26   : > { %v694_v0 = vmax.f32 %v566_v60, 0.0  ;;  %v695_v1 = vmax.f32 %v567_v61, 0.0  ;;  %v568_v8 = vunpack.c.l.bf16 %v440_v5  ;;  %v569_v9 = vunpack.c.h.bf16 %v440_v5  ;;  %v366_v60 = vld [vmem:[%s5936_s21 + $0x10] sm:$0xff]  }
  0x27   : > { %v767_v2 = vpack.c.bf16 %v661_v63, %v660_v62  ;;  %v662_v10 = vmax.f32 %v534_v6, 0.0  ;;  %v663_v11 = vmax.f32 %v535_v7, 0.0  ;;  %v490_v19 = vunpack.c.l.bf16 %v362_v16 }
  0x28   : > { %1793 = vmatpush.bf16.msrb.mxu1 %v5272_v42  ;;  %2666 = vmatpush.bf16.msrb.mxu2 %v5276_v43  ;;  %v784_v3 = vpack.c.bf16 %v695_v1, %v694_v0  ;;  %v696_v12 = vmax.f32 %v568_v8, 0.0  ;;  %v697_v13 = vmax.f32 %v569_v9, 0.0  ;;  %v491_v20 = vunpack.c.h.bf16 %v362_v16  ;;  %v6002_v9 = vld [vmem:[%s7776_s2] ss:$0 sm:$0xff] }
  0x29   : > { %v768_v14 = vpack.c.bf16 %v663_v11, %v662_v10  ;;  %v618_v21 = vmax.f32 %v490_v19, 0.0  ;;  %v536_v23 = vunpack.c.l.bf16 %v408_v17  ;;  %v537_v24 = vunpack.c.h.bf16 %v408_v17  ;;  %v414_v10 = vld [vmem:[%s5936_s21 + $0xd0] sm:$0xff]   ;;  %v448_v11 = vld [vmem:[%s5936_s21 + $0x158] sm:$0xff]  }
  0x2a   : > { %v785_v15 = vpack.c.bf16 %v697_v13, %v696_v12  ;;  %v619_v22 = vmax.f32 %v491_v20, 0.0  ;;  %v570_v25 = vunpack.c.l.bf16 %v442_v18  ;;  %v571_v26 = vunpack.c.h.bf16 %v442_v18  ;;  %v368_v19 = vld [vmem:[%s5936_s21 + $0x18] sm:$0xff]  }
  0x2b   : > { %v538_v36 = vunpack.c.l.bf16 %v410_v34  ;;  %v539_v37 = vunpack.c.h.bf16 %v410_v34  ;;  %v572_v38 = vunpack.c.l.bf16 %v444_v35  ;;  %v573_v39 = vunpack.c.h.bf16 %v444_v35 }
  0x2c   : > { %v746_v27 = vpack.c.bf16 %v619_v22, %v618_v21  ;;  %v698_v30 = vmax.f32 %v570_v25, 0.0  ;;  %v699_v31 = vmax.f32 %v571_v26, 0.0  ;;  %1794 = vmatpush.bf16.msrb.mxu1 %v5271_v49  ;;  %2667 = vmatpush.bf16.msrb.mxu2 %v5275_v51  ;;  %v494_v61 = vunpack.c.l.bf16 %v366_v60 }
  0x2d   : > { %v666_v43 = vmax.f32 %v538_v36, 0.0  ;;  %v667_v44 = vmax.f32 %v539_v37, 0.0  ;;  %v700_v45 = vmax.f32 %v572_v38, 0.0  ;;  %v701_v46 = vmax.f32 %v573_v39, 0.0 }
  0x2e   : > { %4653 = vmatmul.msk.bf16.vlgmr.msra.gmra.mxu0 %vm846_vm0, %v746_v27  ;;  %v786_v33 = vpack.c.bf16 %v699_v31, %v698_v30  ;;  %v495_v62 = vunpack.c.h.bf16 %v366_v60  ;;  %v542_v12 = vunpack.c.l.bf16 %v414_v10  ;;  %v576_v16 = vunpack.c.l.bf16 %v448_v11 }
  0x2f   : > { %v770_v52 = vpack.c.bf16 %v667_v44, %v666_v43  ;;  %v787_v53 = vpack.c.bf16 %v701_v46, %v700_v45  ;;  %v577_v17 = vunpack.c.h.bf16 %v448_v11  ;;  %v496_v22 = vunpack.c.l.bf16 %v368_v19  ;;  %v450_v44 = vld [vmem:[%s5936_s21 + $0x160] sm:$0xff]  }
  0x30   : > { %v623_v4 = vmax.f32 %v495_v62, 0.0  ;;  %v670_v21 = vmax.f32 %v542_v12, 0.0  ;;  %v704_v26 = vmax.f32 %v576_v16, 0.0  ;;  %v418_v16 = vld [vmem:[%s5936_s21 + $0xe0] sm:$0xff]  }
  0x31   : > { %v705_v27 = vmax.f32 %v577_v17, 0.0  ;;  %v624_v30 = vmax.f32 %v496_v22, 0.0  ;;  %v464_v17 = vld [vmem:[%s5936_s21 + $0x198] sm:$0xff]  }
  0x32   : > { %v593_v22 = vunpack.c.h.bf16 %v464_v17 }
  0x33   : > { %4671 = vmatmul.msk.bf16.gmra.mxu1 %vm846_vm0, %v764_v28  ;;  %4688 = vmatmul.msk.bf16.gmra.mxu2 %vm846_vm0, %v781_v29  ;;  %v664_v28 = vmax.f32 %v536_v23, 0.0  ;;  %v665_v29 = vmax.f32 %v537_v24, 0.0  ;;  %v497_v23 = vunpack.c.h.bf16 %v368_v19  ;;  %v789_v38 = vpack.c.bf16 %v705_v27, %v704_v26  ;;  %v452_v19 = vld [vmem:[%s5936_s21 + $0x168] sm:$0xff]  }
  0x35   : > { %v769_v32 = vpack.c.bf16 %v665_v29, %v664_v28  ;;  %v625_v31 = vmax.f32 %v497_v23, 0.0  ;;  %v546_v23 = vunpack.c.l.bf16 %v418_v16 }
  0x43   : > { %4672 = vmatmul.msk.bf16.gmra.mxu1 %vm846_vm0, %v765_v40  ;;  %4689 = vmatmul.msk.bf16.gmra.mxu2 %vm846_vm0, %v782_v41  ;;  %v364_v40 = vld [vmem:[%s5936_s21 + $0x8] sm:$0xff]  }
  0x44   : > { %v492_v41 = vunpack.c.l.bf16 %v364_v40  ;;  %v493_v42 = vunpack.c.h.bf16 %v364_v40 }
  0x46   : > { %v620_v47 = vmax.f32 %v492_v41, 0.0  ;;  %v621_v48 = vmax.f32 %v493_v42, 0.0  ;;  %v416_v41 = vld [vmem:[%s5936_s21 + $0xd8] sm:$0xff]   ;;  %v462_v42 = vld [vmem:[%s5936_s21 + $0x190] sm:$0xff]  }
  0x47   : > { %v590_v45 = vunpack.c.l.bf16 %v462_v42  ;;  %v591_v46 = vunpack.c.h.bf16 %v462_v42 }
  0x48   : > { %v747_v50 = vpack.c.bf16 %v621_v48, %v620_v47  ;;  %v544_v47 = vunpack.c.l.bf16 %v416_v41  ;;  %v545_v48 = vunpack.c.h.bf16 %v416_v41 }
  0x49   : > { %v718_v49 = vmax.f32 %v590_v45, 0.0 }
  0x4a   : > { %4654 = vmatmul.msk.bf16.gmra.mxu0 %vm846_vm0, %v747_v50 }
  0x53   : > { %4673 = vmatmul.msk.bf16.gmra.mxu1 %vm846_vm0, %v766_v54  ;;  %4690 = vmatmul.msk.bf16.gmra.mxu2 %vm846_vm0, %v783_v55  ;;  %v412_v54 = vld [vmem:[%s5936_s21 + $0xc8] sm:$0xff]   ;;  %v446_v55 = vld [vmem:[%s5936_s21 + $0x150] sm:$0xff]  }
  0x54   : > { %v540_v56 = vunpack.c.l.bf16 %v412_v54  ;;  %v541_v57 = vunpack.c.h.bf16 %v412_v54  ;;  %v574_v58 = vunpack.c.l.bf16 %v446_v55  ;;  %v575_v59 = vunpack.c.h.bf16 %v446_v55 }
  0x55   : > { %v719_v54 = vmax.f32 %v591_v46, 0.0 }
  0x56   : > { %v668_v63 = vmax.f32 %v540_v56, 0.0  ;;  %v669_v0 = vmax.f32 %v541_v57, 0.0  ;;  %v702_v1 = vmax.f32 %v574_v58, 0.0  ;;  %v370_v57 = vld [vmem:[%s5936_s21 + $0x20] sm:$0xff]  }
  0x57   : > { %v796_v56 = vpack.c.bf16 %v719_v54, %v718_v49  ;;  %v498_v60 = vunpack.c.l.bf16 %v370_v57 }
  0x58   : > { %v771_v6 = vpack.c.bf16 %v669_v0, %v668_v63  ;;  %v673_v63 = vmax.f32 %v545_v48, 0.0 }
  0x59   : > { %4703 = vmatmul.msk.bf16.vlgmr.msra.gmra.mxu3 %vm846_vm0, %v796_v56 }
  0x63   : > { %4674 = vmatmul.msk.bf16.gmra.mxu1 %vm846_vm0, %v767_v2  ;;  %4691 = vmatmul.msk.bf16.gmra.mxu2 %vm846_vm0, %v784_v3  ;;  %v703_v2 = vmax.f32 %v575_v59, 0.0  ;;  %v622_v3 = vmax.f32 %v494_v61, 0.0  ;;  %v672_v59 = vmax.f32 %v544_v47, 0.0  ;;  %v499_v61 = vunpack.c.h.bf16 %v370_v57 }
  0x65   : > { %v748_v5 = vpack.c.bf16 %v623_v4, %v622_v3  ;;  %v788_v7 = vpack.c.bf16 %v703_v2, %v702_v1  ;;  %v626_v4 = vmax.f32 %v498_v60, 0.0  ;;  %v773_v12 = vpack.c.bf16 %v673_v63, %v672_v59  ;;  %v420_v59 = vld [vmem:[%s5936_s21 + $0xe8] sm:$0xff]   ;;  %v466_v60 = vld [vmem:[%s5936_s21 + $0x1a0] sm:$0xff]  }
  0x66   : > { %v594_v63 = vunpack.c.l.bf16 %v466_v60 }
  0x67   : > { %4655 = vmatmul.msk.bf16.gmra.mxu0 %vm846_vm0, %v748_v5  ;;  %v627_v5 = vmax.f32 %v499_v61, 0.0 }
  0x73   : > { %4675 = vmatmul.msk.bf16.gmra.mxu1 %vm846_vm0, %v768_v14  ;;  %4692 = vmatmul.msk.bf16.gmra.mxu2 %vm846_vm0, %v785_v15  ;;  %v543_v15 = vunpack.c.h.bf16 %v414_v10 }
  0x75   : > { %v671_v25 = vmax.f32 %v543_v15, 0.0 }
  0x77   : > { %v772_v37 = vpack.c.bf16 %v671_v25, %v670_v21  ;;  %v592_v21 = vunpack.c.l.bf16 %v464_v17 }
  0x79   : > { %v720_v25 = vmax.f32 %v592_v21, 0.0 }
  0x83   : > { %4676 = vmatmul.msk.bf16.gmra.mxu1 %vm846_vm0, %v769_v32  ;;  %4693 = vmatmul.msk.bf16.gmra.mxu2 %vm846_vm0, %v786_v33  ;;  %v749_v33 = vpack.c.bf16 %v625_v31, %v624_v30  ;;  %v721_v30 = vmax.f32 %v593_v22, 0.0 }
  0x85   : > { %4656 = vmatmul.msk.bf16.gmra.mxu0 %vm846_vm0, %v749_v33  ;;  %v797_v33 = vpack.c.bf16 %v721_v30, %v720_v25 }
  0x87   : > { %4704 = vmatmul.msk.bf16.gmra.mxu3 %vm846_vm0, %v797_v33 }
  0x93   : > { %4677 = vmatmul.msk.bf16.gmra.mxu1 %vm846_vm0, %v770_v52  ;;  %4694 = vmatmul.msk.bf16.gmra.mxu2 %vm846_vm0, %v787_v53  ;;  %v578_v52 = vunpack.c.l.bf16 %v450_v44  ;;  %v579_v53 = vunpack.c.h.bf16 %v450_v44 }
  0x95   : > { %v706_v0 = vmax.f32 %v578_v52, 0.0  ;;  %v707_v1 = vmax.f32 %v579_v53, 0.0 }
  0xa0   : > { %v1133_v8 = vpop.f32.mrf.mxu1 }
  0xa1   : > { %v1134_v13 = vadd.f32 %v6002_v9, %v1133_v8 }
  0xa3   : > { %4678 = vmatmul.msk.bf16.gmra.mxu1 %vm846_vm0, %v771_v6  ;;  %4695 = vmatmul.msk.bf16.gmra.mxu2 %vm846_vm0, %v788_v7  ;;  %v1402_v24 = vmax.f32 %v1134_v13, 0.0  ;;  %v750_v7 = vpack.c.bf16 %v627_v5, %v626_v4  ;;  %v790_v13 = vpack.c.bf16 %v707_v1, %v706_v0  ;;  %v595_v0 = vunpack.c.h.bf16 %v466_v60 }
  0xa4   : > { %v548_v1 = vunpack.c.l.bf16 %v420_v59 }
  0xa5   : > { %4657 = vmatmul.msk.bf16.gmra.mxu0 %vm846_vm0, %v750_v7 }
  0xa6   : > { %v1218_v14 = vpop.f32.mrf.mxu2 }
  0xa7   : > { %v1219_v29 = vadd.f32 %v6002_v9, %v1218_v14 }
  0xa8   : > { %v1135_v18 = vpop.f32.mrf.mxu1 }
  0xa9   : > { %v1136_v20 = vadd.f32 %v6002_v9, %v1135_v18  ;;  %v1436_v35 = vmax.f32 %v1219_v29, 0.0  ;;  %v581_v29 = vunpack.c.h.bf16 %v452_v19 }
  0xab   : > { %v1403_v28 = vmax.f32 %v1136_v20, 0.0  ;;  %v5285_v20 = vld [vmem:[%s7780_s6 + $0x38] sm:$0xff]  ;;  %v709_v42 = vmax.f32 %v581_v29, 0.0 }
  0xac   : > { %3250 = vmatpush.bf16.msrb.mxu3 %v5285_v20 }
  0xad   : > { %v6012_v32 = vpack.c.bf16 %v1403_v28, %v1402_v24  ;;  %v547_v24 = vunpack.c.h.bf16 %v418_v16  ;;  %v580_v28 = vunpack.c.l.bf16 %v452_v19 }
  0xae   : > { %v1220_v34 = vpop.f32.mrf.mxu2 }
  0xaf   : > { %v1221_v36 = vadd.f32 %v6002_v9, %v1220_v34  ;;  %v372_v34 = vld [vmem:[%s5936_s21 + $0x28] sm:$0xff]   ;;  %v708_v41 = vmax.f32 %v580_v28, 0.0  ;;  %v5284_v28 = vld [vmem:[%s7780_s6 + $0x30] sm:$0xff] }
  0xb0   : > { %v1138_v39 = vpop.f32.mrf.mxu1  ;;  %3251 = vmatpush.bf16.msrb.mxu3 %v5284_v28 }
  0xb1   : > { %v1437_v40 = vmax.f32 %v1221_v36, 0.0  ;;  %v1139_v50 = vadd.f32 %v6002_v9, %v1138_v39  ;;  %v674_v36 = vmax.f32 %v546_v23, 0.0  ;;  %v791_v56 = vpack.c.bf16 %v709_v42, %v708_v41  ;;  %v456_v41 = vld [vmem:[%s5936_s21 + $0x178] sm:$0xff]  }
  0xb3   : > { %v6018_v43 = vpack.c.bf16 %v1437_v40, %v1436_v35  ;;  %4679 = vmatmul.msk.bf16.gmra.mxu1 %vm846_vm0, %v772_v37  ;;  %4696 = vmatmul.msk.bf16.gmra.mxu2 %vm846_vm0, %v789_v38  ;;  %v1404_v62 = vmax.f32 %v1139_v50, 0.0  ;;  %v500_v37 = vunpack.c.l.bf16 %v372_v34  ;;  %v501_v38 = vunpack.c.h.bf16 %v372_v34  ;;  %v5270_v50 = vld [vmem:[%s7777_s3] sm:$0xff] }
  0xb4   : > { %v675_v40 = vmax.f32 %v547_v24, 0.0  ;;  %1795 = vmatpush.bf16.msrb.mxu1 %v5270_v50 }
  0xb5   : > { %v628_v46 = vmax.f32 %v500_v37, 0.0  ;;  %v629_v47 = vmax.f32 %v501_v38, 0.0  ;;  %v422_v38 = vld [vmem:[%s5936_s21 + $0xf0] sm:$0xff]  }
  0xb6   : > { %v1223_v51 = vpop.f32.mrf.mxu2 }
  0xb7   : > { %v1224_v3 = vadd.f32 %v6002_v9, %v1223_v51  ;;  %v751_v49 = vpack.c.bf16 %v629_v47, %v628_v46  ;;  %v5274_v51 = vld [vmem:[%s7779_s5] sm:$0xff]  ;;  %v551_v46 = vunpack.c.h.bf16 %v422_v38 }
  0xb8   : > { %v1140_v55 = vpop.f32.mrf.mxu1  ;;  %2668 = vmatpush.bf16.msrb.mxu2 %v5274_v51  ;;  %v584_v51 = vunpack.c.l.bf16 %v456_v41 }
  0xb9   : > { %v1141_v58 = vadd.f32 %v6002_v9, %v1140_v55  ;;  %v1438_v10 = vmax.f32 %v1224_v3, 0.0  ;;  %v774_v55 = vpack.c.bf16 %v675_v40, %v674_v36  ;;  %4658 = vmatmul.msk.bf16.gmra.mxu0 %vm846_vm0, %v751_v49  ;;  %v722_v3 = vmax.f32 %v594_v63, 0.0 }
  0xba   : > { %v679_v63 = vmax.f32 %v551_v46, 0.0 }
  0xbb   : > { %v1405_v2 = vmax.f32 %v1141_v58, 0.0 }
  0xbd   : > { %v6028_v6 = vpack.c.bf16 %v1405_v2, %v1404_v62  ;;  %v454_v62 = vld [vmem:[%s5936_s21 + $0x170] sm:$0xff]   ;;  %v549_v2 = vunpack.c.h.bf16 %v420_v59 }
  0xbe   : > { %v1225_v8 = vpop.f32.mrf.mxu2  ;;  %v582_v7 = vunpack.c.l.bf16 %v454_v62 }
  0xbf   : > { %v1226_v11 = vadd.f32 %v6002_v9, %v1225_v8  ;;  %v583_v8 = vunpack.c.h.bf16 %v454_v62  ;;  %v677_v20 = vmax.f32 %v549_v2, 0.0 }
  0xc0   : > { %v1143_v14 = vpop.f32.mrf.mxu1  ;;  %v710_v21 = vmax.f32 %v582_v7, 0.0 }
  0xc1   : > { %v1439_v15 = vmax.f32 %v1226_v11, 0.0  ;;  %v1144_v26 = vadd.f32 %v6002_v9, %v1143_v14  ;;  %v711_v22 = vmax.f32 %v583_v8, 0.0 }
  0xc3   : > { %v6034_v18 = vpack.c.bf16 %v1439_v15, %v1438_v10  ;;  %4680 = vmatmul.msk.bf16.gmra.mxu1 %vm846_vm0, %v773_v12  ;;  %4697 = vmatmul.msk.bf16.gmra.mxu2 %vm846_vm0, %v790_v13  ;;  %v1406_v39 = vmax.f32 %v1144_v26, 0.0  ;;  %v723_v10 = vmax.f32 %v595_v0, 0.0  ;;  %v374_v13 = vld [vmem:[%s5936_s21 + $0x30] sm:$0xff]   ;;  %v676_v15 = vmax.f32 %v548_v1, 0.0 }
  0xc4   : > { %v502_v16 = vunpack.c.l.bf16 %v374_v13  ;;  %v503_v17 = vunpack.c.h.bf16 %v374_v13  ;;  %v712_v0 = vmax.f32 %v584_v51, 0.0 }
  0xc5   : > { %v798_v12 = vpack.c.bf16 %v723_v10, %v722_v3  ;;  %v775_v34 = vpack.c.bf16 %v677_v20, %v676_v15 }
  0xc6   : > { %v1228_v27 = vpop.f32.mrf.mxu2  ;;  %v630_v25 = vmax.f32 %v502_v16, 0.0  ;;  %v631_v26 = vmax.f32 %v503_v17, 0.0  ;;  %v424_v17 = vld [vmem:[%s5936_s21 + $0xf8] sm:$0xff]  }
  0xc7   : > { %v1229_v45 = vadd.f32 %v6002_v9, %v1228_v27  ;;  %4705 = vmatmul.msk.bf16.gmra.mxu3 %vm846_vm0, %v798_v12 }
  0xc8   : > { %v1145_v31 = vpop.f32.mrf.mxu1  ;;  %v752_v29 = vpack.c.bf16 %v631_v26, %v630_v25  ;;  %v553_v25 = vunpack.c.h.bf16 %v424_v17 }
  0xc9   : > { %v1146_v35 = vadd.f32 %v6002_v9, %v1145_v31  ;;  %v1440_v53 = vmax.f32 %v1229_v45, 0.0  ;;  %v550_v45 = vunpack.c.l.bf16 %v422_v38 }
  0xca   : > { %4659 = vmatmul.msk.bf16.gmra.mxu0 %vm846_vm0, %v752_v29 }
  0xcb   : > { %v1407_v44 = vmax.f32 %v1146_v35, 0.0  ;;  %v792_v35 = vpack.c.bf16 %v711_v22, %v710_v21  ;;  %v458_v21 = vld [vmem:[%s5936_s21 + $0x180] sm:$0xff]  }
  0xcd   : > { %v6047_v48 = vpack.c.bf16 %v1407_v44, %v1406_v39  ;;  %v468_v39 = vld [vmem:[%s5936_s21 + $0x1a8] sm:$0xff]  }
  0xce   : > { %v1230_v52 = vpop.f32.mrf.mxu2  ;;  %v596_v42 = vunpack.c.l.bf16 %v468_v39  ;;  %v597_v44 = vunpack.c.h.bf16 %v468_v39 }
  0xcf   : > { %v1231_v54 = vadd.f32 %v6002_v9, %v1230_v52  ;;  %v585_v52 = vunpack.c.h.bf16 %v456_v41 }
  0xd0   : > { %v1148_v57 = vpop.f32.mrf.mxu1  ;;  %v724_v47 = vmax.f32 %v596_v42, 0.0 }
  0xd1   : > { %v1441_v58 = vmax.f32 %v1231_v54, 0.0  ;;  %v1149_v4 = vadd.f32 %v6002_v9, %v1148_v57  ;;  %v713_v1 = vmax.f32 %v585_v52, 0.0  ;;  %v6104_v52 = vpop.f32.mrf.mxu0 }
  0xd3   : > { %v6059_v61 = vpack.c.bf16 %v1441_v58, %v1440_v53  ;;  %4681 = vmatmul.msk.bf16.gmra.mxu1 %vm846_vm0, %v774_v55  ;;  %4698 = vmatmul.msk.bf16.gmra.mxu2 %vm846_vm0, %v791_v56  ;;  %v1408_v19 = vmax.f32 %v1149_v4, 0.0  ;;  %v725_v53 = vmax.f32 %v597_v44, 0.0  ;;  %v376_v56 = vld [vmem:[%s5936_s21 + $0x38] sm:$0xff]   ;;  %v678_v58 = vmax.f32 %v550_v45, 0.0 }
  0xd4   : > { %v504_v59 = vunpack.c.l.bf16 %v376_v56  ;;  %v505_v60 = vunpack.c.h.bf16 %v376_v56  ;;  %v681_v44 = vmax.f32 %v553_v25, 0.0 }
  0xd5   : > { %v799_v55 = vpack.c.bf16 %v725_v53, %v724_v47  ;;  %v776_v13 = vpack.c.bf16 %v679_v63, %v678_v58 }
  0xd6   : > { %v1233_v5 = vpop.f32.mrf.mxu2  ;;  %v632_v4 = vmax.f32 %v504_v59, 0.0 }
  0xd7   : > { %v1234_v24 = vadd.f32 %v6002_v9, %v1233_v5  ;;  %4706 = vmatmul.msk.bf16.gmra.mxu3 %vm846_vm0, %v799_v55  ;;  %v633_v5 = vmax.f32 %v505_v60, 0.0 }
  0xd8   : > { %v1150_v11 = vpop.f32.mrf.mxu1 }
  0xd9   : > { %v1151_v14 = vadd.f32 %v6002_v9, %v1150_v11  ;;  %v1442_v31 = vmax.f32 %v1234_v24, 0.0  ;;  %v753_v8 = vpack.c.bf16 %v633_v5, %v632_v4  ;;  %v552_v24 = vunpack.c.l.bf16 %v424_v17 }
  0xdb   : > { %v1409_v23 = vmax.f32 %v1151_v14, 0.0  ;;  %v793_v14 = vpack.c.bf16 %v713_v1, %v712_v0  ;;  %4660 = vmatmul.msk.bf16.gmra.mxu0 %vm846_vm0, %v753_v8  ;;  %v680_v38 = vmax.f32 %v552_v24, 0.0  ;;  %v426_v0 = vld [vmem:[%s5936_s21 + $0x100] sm:$0xff]   ;;  %v472_v1 = vld [vmem:[%s5936_s21 + $0x1b8] sm:$0xff]   ;;  %v6120_v8 = vpop.f32.mrf.mxu0 }
  0xdc   : > { %v600_v4 = vunpack.c.l.bf16 %v472_v1  ;;  %v601_v5 = vunpack.c.h.bf16 %v472_v1 }
  0xdd   : > { %v6069_v27 = vpack.c.bf16 %v1409_v23, %v1408_v19  ;;  %v470_v19 = vld [vmem:[%s5936_s21 + $0x1b0] sm:$0xff]   ;;  %v777_v59 = vpack.c.bf16 %v681_v44, %v680_v38 }
  0xde   : > { %v1235_v30 = vpop.f32.mrf.mxu2  ;;  %v598_v22 = vunpack.c.l.bf16 %v470_v19  ;;  %v599_v23 = vunpack.c.h.bf16 %v470_v19 }
  0xdf   : > { %v1236_v33 = vadd.f32 %v6002_v9, %v1235_v30  ;;  %v586_v30 = vunpack.c.l.bf16 %v458_v21 }
  0xe0   : > { %v1153_v36 = vpop.f32.mrf.mxu1  ;;  %v726_v26 = vmax.f32 %v598_v22, 0.0  ;;  %v380_v22 = vld [vmem:[%s5936_s21 + $0x48] sm:$0xff]  }
  0xe1   : > { %v1443_v37 = vmax.f32 %v1236_v33, 0.0  ;;  %v1154_v49 = vadd.f32 %v6002_v9, %v1153_v36  ;;  %v727_v33 = vmax.f32 %v599_v23, 0.0  ;;  %v378_v36 = vld [vmem:[%s5936_s21 + $0x40] sm:$0xff]   ;;  %v714_v45 = vmax.f32 %v586_v30, 0.0 }
  0xe2   : > { %v506_v39 = vunpack.c.l.bf16 %v378_v36  ;;  %v507_v41 = vunpack.c.h.bf16 %v378_v36  ;;  %v508_v25 = vunpack.c.l.bf16 %v380_v22  ;;  %v509_v30 = vunpack.c.h.bf16 %v380_v22 }
  0xe3   : > { %v6078_v40 = vpack.c.bf16 %v1443_v37, %v1442_v31  ;;  %4682 = vmatmul.msk.bf16.gmra.mxu1 %vm846_vm0, %v775_v34  ;;  %4699 = vmatmul.msk.bf16.gmra.mxu2 %vm846_vm0, %v792_v35  ;;  %v1410_v62 = vmax.f32 %v1154_v49, 0.0  ;;  %v587_v31 = vunpack.c.h.bf16 %v458_v21  ;;  %v800_v35 = vpack.c.bf16 %v727_v33, %v726_v26  ;;  %v6127_v36 = vpop.f32.mrf.mxu0 }
  0xe4   : > { %v635_v51 = vmax.f32 %v507_v41, 0.0 }
  0xe5   : > { %v715_v46 = vmax.f32 %v587_v31, 0.0 }
  0xe6   : > { %v1238_v50 = vpop.f32.mrf.mxu2 }
  0xe7   : > { %v1239_v3 = vadd.f32 %v6002_v9, %v1238_v50  ;;  %4707 = vmatmul.msk.bf16.gmra.mxu3 %vm846_vm0, %v800_v35  ;;  %v634_v50 = vmax.f32 %v506_v39, 0.0  ;;  %v794_v60 = vpack.c.bf16 %v715_v46, %v714_v45  ;;  %v636_v35 = vmax.f32 %v508_v25, 0.0 }
  0xe8   : > { %v1155_v54 = vpop.f32.mrf.mxu1 }
  0xe9   : > { %v1156_v57 = vadd.f32 %v6002_v9, %v1155_v54  ;;  %v1444_v11 = vmax.f32 %v1239_v3, 0.0  ;;  %v5283_v54 = vld [vmem:[%s7780_s6 + $0x28] sm:$0xff]  ;;  %v754_v55 = vpack.c.bf16 %v635_v51, %v634_v50  ;;  %v474_v50 = vld [vmem:[%s5936_s21 + $0x1c0] sm:$0xff]  }
  0xea   : > { %3252 = vmatpush.bf16.msrb.mxu3 %v5283_v54  ;;  %v460_v3 = vld [vmem:[%s5936_s21 + $0x188] sm:$0xff]  }
  0xeb   : > { %v1411_v2 = vmax.f32 %v1156_v57, 0.0  ;;  %4661 = vmatmul.msk.bf16.gmra.mxu0 %vm846_vm0, %v754_v55  ;;  %v428_v54 = vld [vmem:[%s5936_s21 + $0x108] sm:$0xff]   ;;  %v5282_v55 = vld [vmem:[%s7780_s6 + $0x20] sm:$0xff] }
  0xed   : > { %v6088_v7 = vpack.c.bf16 %v1411_v2, %v1410_v62 }
  0xee   : > { %v1240_v10 = vpop.f32.mrf.mxu2  ;;  %3253 = vmatpush.bf16.msrb.mxu3 %v5282_v55  ;;  %v1051_v55 = vadd.f32 %v6002_v9, %v6120_v8 }
  0xef   : > { %v1241_v12 = vadd.f32 %v6002_v9, %v1240_v10  ;;  %v554_v10 = vunpack.c.l.bf16 %v426_v0 }
  0xf0   : > { %v1158_v15 = vpop.f32.mrf.mxu1 }
  0xf1   : > { %v1445_v16 = vmax.f32 %v1241_v12, 0.0  ;;  %v1159_v28 = vadd.f32 %v6002_v9, %v1158_v15  ;;  %v729_v12 = vmax.f32 %v601_v5, 0.0  ;;  %v588_v15 = vunpack.c.l.bf16 %v460_v3  ;;  %v382_v5 = vld [vmem:[%s5936_s21 + $0x50] sm:$0xff]  }
  0xf2   : > { %v682_v24 = vmax.f32 %v554_v10, 0.0 }
  0xf3   : > { %v6094_v20 = vpack.c.bf16 %v1445_v16, %v1444_v11  ;;  %4683 = vmatmul.msk.bf16.gmra.mxu1 %vm846_vm0, %v776_v13  ;;  %4700 = vmatmul.msk.bf16.gmra.mxu2 %vm846_vm0, %v793_v14  ;;  %v1412_v42 = vmax.f32 %v1159_v28, 0.0  ;;  %v728_v11 = vmax.f32 %v600_v4, 0.0  ;;  %v555_v14 = vunpack.c.h.bf16 %v426_v0 }
  0xf4   : > { %v589_v16 = vunpack.c.h.bf16 %v460_v3  ;;  %v716_v28 = vmax.f32 %v588_v15, 0.0  ;;  %v557_v0 = vunpack.c.h.bf16 %v428_v54 }
  0xf5   : > { %v801_v19 = vpack.c.bf16 %v729_v12, %v728_v11  ;;  %v683_v26 = vmax.f32 %v555_v14, 0.0  ;;  %v510_v11 = vunpack.c.l.bf16 %v382_v5  ;;  %v511_v14 = vunpack.c.h.bf16 %v382_v5 }
  0xf6   : > { %v1243_v29 = vpop.f32.mrf.mxu2 }
  0xf7   : > { %v1244_v49 = vadd.f32 %v6002_v9, %v1243_v29  ;;  %v717_v29 = vmax.f32 %v589_v16, 0.0  ;;  %4708 = vmatmul.msk.bf16.gmra.mxu3 %vm846_vm0, %v801_v19  ;;  %v778_v45 = vpack.c.bf16 %v683_v26, %v682_v24  ;;  %v638_v19 = vmax.f32 %v510_v11, 0.0 }
  0xf8   : > { %v1160_v34 = vpop.f32.mrf.mxu1  ;;  %v639_v22 = vmax.f32 %v511_v14, 0.0 }
  0xf9   : > { %v1161_v37 = vadd.f32 %v6002_v9, %v1160_v34  ;;  %v1446_v57 = vmax.f32 %v1244_v49, 0.0  ;;  %v795_v46 = vpack.c.bf16 %v717_v29, %v716_v28 }
  0xfa   : > { %v756_v25 = vpack.c.bf16 %v639_v22, %v638_v19  ;;  %v5281_v22 = vld [vmem:[%s7780_s6 + $0x18] sm:$0xff] }
  0xfb   : > { %v1413_v47 = vmax.f32 %v1161_v37, 0.0  ;;  %v637_v37 = vmax.f32 %v509_v30, 0.0  ;;  %v5202_v30 = vld [vmem:[%s5936_s21] sm:$0xff]  ;;  %3254 = vmatpush.bf16.msrb.mxu3 %v5281_v22 }
  0xfd   : > { %v6106_v53 = vpack.c.bf16 %v1413_v47, %v1412_v42  ;;  %v755_v41 = vpack.c.bf16 %v637_v37, %v636_v35 }
  0xfe   : > { %v1245_v56 = vpop.f32.mrf.mxu2 }
  0xff   : > { %v1246_v58 = vadd.f32 %v6002_v9, %v1245_v56  ;;  %4662 = vmatmul.msk.bf16.gmra.mxu0 %vm846_vm0, %v755_v41  ;;  %v602_v56 = vunpack.c.l.bf16 %v474_v50 }
 0x100   : > { %v1163_v62 = vpop.f32.mrf.mxu1 }
 0x101   : > { %v1447_v63 = vmax.f32 %v1246_v58, 0.0  ;;  %v1164_v17 = vadd.f32 %v6002_v9, %v1163_v62  ;;  %v6142_v58 = vpop.f32.mrf.mxu0 }
 0x103   : > { %v6115_v2 = vpack.c.bf16 %v1447_v63, %v1446_v57  ;;  %4684 = vmatmul.msk.bf16.gmra.mxu1 %vm846_vm0, %v777_v59  ;;  %4701 = vmatmul.msk.bf16.gmra.mxu2 %vm846_vm0, %v794_v60  ;;  %v1414_v31 = vmax.f32 %v1164_v17, 0.0  ;;  %v603_v57 = vunpack.c.h.bf16 %v474_v50  ;;  %v730_v59 = vmax.f32 %v602_v56, 0.0  ;;  %v384_v50 = vld [vmem:[%s5936_s21 + $0x58] sm:$0xff]  }
 0x104   : > { %v556_v63 = vunpack.c.l.bf16 %v428_v54  ;;  %v1049_v54 = vadd.f32 %v6002_v9, %v6104_v52 }
 0x105   : > { %7793 = vst [vmem:[#allocation5_spill] sm:$0xff] %v6115_v2  ;;  %v731_v60 = vmax.f32 %v603_v57, 0.0  ;;  %v512_v57 = vunpack.c.l.bf16 %v384_v50 }
 0x106   : > { %v1248_v13 = vpop.f32.mrf.mxu2  ;;  %v684_v12 = vmax.f32 %v556_v63, 0.0  ;;  %v1368_v52 = vmax.f32 %v1049_v54, 0.0 }
 0x107   : > { %v1249_v34 = vadd.f32 %v6002_v9, %v1248_v13  ;;  %v802_v3 = vpack.c.bf16 %v731_v60, %v730_v59  ;;  %v685_v13 = vmax.f32 %v557_v0, 0.0  ;;  %v513_v59 = vunpack.c.h.bf16 %v384_v50 }
 0x108   : > { %v1165_v21 = vpop.f32.mrf.mxu1  ;;  %v640_v0 = vmax.f32 %v512_v57, 0.0 }
 0x109   : > { %v1166_v23 = vadd.f32 %v6002_v9, %v1165_v21  ;;  %v1448_v42 = vmax.f32 %v1249_v34, 0.0  ;;  %4709 = vmatmul.msk.bf16.gmra.mxu3 %vm846_vm0, %v802_v3  ;;  %v6149_v21 = vpop.f32.mrf.mxu0  ;;  %v779_v29 = vpack.c.bf16 %v685_v13, %v684_v12  ;;  %v476_v34 = vld [vmem:[%s5936_s21 + $0x1c8] sm:$0xff]   ;;  %v641_v3 = vmax.f32 %v513_v59, 0.0 }
 0x10a   : > { %v604_v37 = vunpack.c.l.bf16 %v476_v34  ;;  %v5203_v13 = vld [vmem:[%s5936_s21 + $0x8] sm:$0xff] }
 0x10b   : > { %v1415_v33 = vmax.f32 %v1166_v23, 0.0 }
 0x10d   : > { %v6129_v38 = vpack.c.bf16 %v1415_v33, %v1414_v31 }
 0x10e   : > { %v1250_v39 = vpop.f32.mrf.mxu2 }
 0x10f   : > { %v1251_v44 = vadd.f32 %v6002_v9, %v1250_v39  ;;  %4663 = vmatmul.msk.bf16.gmra.mxu0 %vm846_vm0, %v756_v25  ;;  %v605_v39 = vunpack.c.h.bf16 %v476_v34 }
 0x110   : > { %v1168_v47 = vpop.f32.mrf.mxu1 }
 0x111   : > { %v1449_v49 = vmax.f32 %v1251_v44, 0.0  ;;  %v1169_v1 = vadd.f32 %v6002_v9, %v1168_v47  ;;  %v6161_v41 = vpop.f32.mrf.mxu0  ;;  %v733_v44 = vmax.f32 %v605_v39, 0.0  ;;  %v1054_v39 = vadd.f32 %v6002_v9, %v6127_v36 }
 0x113   : > { %v6134_v51 = vpack.c.bf16 %v1449_v49, %v1448_v42  ;;  %4685 = vmatmul.msk.bf16.gmra.mxu1 %vm846_vm0, %v778_v45  ;;  %4702 = vmatmul.msk.bf16.gmra.mxu2 %vm846_vm0, %v795_v46  ;;  %v1416_v15 = vmax.f32 %v1169_v1, 0.0  ;;  %v732_v42 = vmax.f32 %v604_v37, 0.0  ;;  %v386_v37 = vld [vmem:[%s5936_s21 + $0x60] sm:$0xff]   ;;  %v1370_v57 = vmax.f32 %v1054_v39, 0.0 }
 0x114   : > { %v1059_v39 = vadd.f32 %v6002_v9, %v6149_v21 }
 0x115   : > { %7794 = vst [vmem:[#allocation6_spill] sm:$0xff] %v6134_v51  ;;  %v803_v47 = vpack.c.bf16 %v733_v44, %v732_v42  ;;  %v1056_v42 = vadd.f32 %v6002_v9, %v6142_v58  ;;  %v6205_v58 = vld [vmem:[%s7782_s8 + $0x38] sm:$0xff] }
 0x116   : > { %v1253_v62 = vpop.f32.mrf.mxu2  ;;  %3839 = vmatpush.bf16.msrb.mxu0 %v6205_v58 }
 0x117   : > { %v1254_v17 = vadd.f32 %v6002_v9, %v1253_v62  ;;  %v1371_v36 = vmax.f32 %v1056_v42, 0.0  ;;  %v1061_v42 = vadd.f32 %v6002_v9, %v6161_v41 }
 0x118   : > { %v1170_v4 = vpop.f32.mrf.mxu1 }
 0x119   : > { %v1171_v10 = vadd.f32 %v6002_v9, %v1170_v4  ;;  %v1450_v26 = vmax.f32 %v1254_v17, 0.0  ;;  %4710 = vmatmul.msk.bf16.gmra.mxu3 %vm846_vm0, %v803_v47  ;;  %v6172_v1 = vpop.f32.mrf.mxu0  ;;  %v1369_v4 = vmax.f32 %v1051_v55, 0.0  ;;  %v478_v17 = vld [vmem:[%s5936_s21 + $0x1d0] sm:$0xff]   ;;  %v1373_v41 = vmax.f32 %v1061_v42, 0.0 }
 0x11a   : > { %v607_v25 = vunpack.c.h.bf16 %v478_v17 }
 0x11b   : > { %v1417_v16 = vmax.f32 %v1171_v10, 0.0  ;;  %v757_v10 = vpack.c.bf16 %v641_v3, %v640_v0 }
 0x11d   : > { %v6151_v23 = vpack.c.bf16 %v1417_v16, %v1416_v15  ;;  %v1496_v15 = vpack.c.bf16 %v1369_v4, %v1368_v52  ;;  %v5204_v52 = vld [vmem:[%s5936_s21 + $0x10] sm:$0xff] }
 0x11e   : > { %v1255_v24 = vpop.f32.mrf.mxu2 }
 0x11f   : > { %v1256_v28 = vadd.f32 %v6002_v9, %v1255_v24  ;;  %4664 = vmatmul.msk.bf16.gmra.mxu0 %vm846_vm0, %v757_v10  ;;  %v606_v24 = vunpack.c.l.bf16 %v478_v17 }
 0x120   : > { %v1173_v31 = vpop.f32.mrf.mxu1 }
 0x121   : > { %v1451_v33 = vmax.f32 %v1256_v28, 0.0  ;;  %v1174_v46 = vadd.f32 %v6002_v9, %v1173_v31  ;;  %v734_v28 = vmax.f32 %v606_v24, 0.0 }
 0x123   : > { %v6157_v35 = vpack.c.bf16 %v1451_v33, %v1450_v26  ;;  %4686 = vmatmul.msk.bf16.gmra.mxu1 %vm846_vm0, %v779_v29  ;;  %5069 = vmatmul.msk.bf16.vlgmr.msrb.gmra.mxu2 %vm846_vm0, %v5202_v30  ;;  %v1418_v60 = vmax.f32 %v1174_v46, 0.0  ;;  %v6187_v26 = vpop.f32.mrf.mxu0  ;;  %v735_v29 = vmax.f32 %v607_v25, 0.0  ;;  %v515_v46 = vunpack.c.h.bf16 %v386_v37 }
 0x125   : > { %7795 = vst [vmem:[#allocation7_spill] sm:$0xff] %v6157_v35  ;;  %v804_v33 = vpack.c.bf16 %v735_v29, %v734_v28 }
 0x126   : > { %v1258_v45 = vpop.f32.mrf.mxu2 }
 0x127   : > { %v1259_v63 = vadd.f32 %v6002_v9, %v1258_v45  ;;  %v514_v45 = vunpack.c.l.bf16 %v386_v37  ;;  %v388_v37 = vld [vmem:[%s5936_s21 + $0x68] sm:$0xff]  }
 0x128   : > { %v1175_v49 = vpop.f32.mrf.mxu1 }
 0x129   : > { %v1176_v56 = vadd.f32 %v6002_v9, %v1175_v49  ;;  %v1452_v11 = vmax.f32 %v1259_v63, 0.0  ;;  %4711 = vmatmul.msk.bf16.gmra.mxu3 %vm846_vm0, %v804_v33  ;;  %v642_v54 = vmax.f32 %v514_v45, 0.0  ;;  %v516_v45 = vunpack.c.l.bf16 %v388_v37 }
 0x12b   : > { %v1419_v62 = vmax.f32 %v1176_v56, 0.0  ;;  %v6198_v55 = vpop.f32.mrf.mxu0  ;;  %v643_v56 = vmax.f32 %v515_v46, 0.0 }
 0x12d   : > { %v6174_v5 = vpack.c.bf16 %v1419_v62, %v1418_v60  ;;  %v1298_v60 = vpop.f32.mrf.mxu3  ;;  %v758_v63 = vpack.c.bf16 %v643_v56, %v642_v54  ;;  %v644_v56 = vmax.f32 %v516_v45, 0.0  ;;  %v390_v45 = vld [vmem:[%s5936_s21 + $0x70] sm:$0xff]  }
 0x12e   : > { %v1260_v8 = vpop.f32.mrf.mxu2 }
 0x12f   : > { %v1261_v12 = vadd.f32 %v6002_v9, %v1260_v8  ;;  %4665 = vmatmul.msk.bf16.gmra.mxu0 %vm846_vm0, %v758_v63  ;;  %v1497_v8 = vpack.c.bf16 %v1371_v36, %v1370_v57  ;;  %v1372_v36 = vmax.f32 %v1059_v39, 0.0  ;;  %v5280_v63 = vld [vmem:[%s7780_s6 + $0x10] sm:$0xff] }
 0x130   : > { %v1178_v14 = vpop.f32.mrf.mxu1  ;;  %3255 = vmatpush.bf16.msrb.mxu3 %v5280_v63 }
 0x131   : > { %v1453_v16 = vmax.f32 %v1261_v12, 0.0  ;;  %v1179_v31 = vadd.f32 %v6002_v9, %v1178_v14  ;;  %v480_v12 = vld [vmem:[%s5936_s21 + $0x1d8] sm:$0xff]  }
 0x132   : > { %v608_v14 = vunpack.c.l.bf16 %v480_v12 }
 0x133   : > { %v6180_v19 = vpack.c.bf16 %v1453_v16, %v1452_v11  ;;  %4733 = vmatmul.msk.bf16.vlgmr.msrb.gmra.mxu1 %vm846_vm0, %v1496_v15  ;;  %5070 = vmatmul.msk.bf16.gmra.mxu2 %vm846_vm0, %v5203_v13  ;;  %v1420_v47 = vmax.f32 %v1179_v31, 0.0  ;;  %v1299_v11 = vadd.f32 %v6002_v9, %v1298_v60  ;;  %v609_v15 = vunpack.c.h.bf16 %v480_v12  ;;  %v6217_v16 = vpop.f32.mrf.mxu0 }
 0x134   : > { %v736_v22 = vmax.f32 %v608_v14, 0.0 }
 0x135   : > { %7796 = vst [vmem:[#allocation8_spill] sm:$0xff] %v6180_v19  ;;  %v1300_v17 = vpop.f32.mrf.mxu3  ;;  %v737_v24 = vmax.f32 %v609_v15, 0.0  ;;  %v1468_v28 = vmax.f32 %v1299_v11, 0.0  ;;  %v1498_v11 = vpack.c.bf16 %v1373_v41, %v1372_v36  ;;  %v482_v15 = vld [vmem:[%s5936_s21 + $0x1e0] sm:$0xff]  }
 0x136   : > { %v1263_v30 = vpop.f32.mrf.mxu2  ;;  %v1301_v29 = vadd.f32 %v6002_v9, %v1300_v17 }
 0x137   : > { %v1264_v50 = vadd.f32 %v6002_v9, %v1263_v30  ;;  %v805_v31 = vpack.c.bf16 %v737_v24, %v736_v22  ;;  %v610_v22 = vunpack.c.l.bf16 %v482_v15  ;;  %v611_v24 = vunpack.c.h.bf16 %v482_v15  ;;  %v5206_v15 = vld [vmem:[%s5936_s21 + $0x20] sm:$0xff] }
 0x138   : > { %v1180_v34 = vpop.f32.mrf.mxu1 }
 0x139   : > { %v1181_v44 = vadd.f32 %v6002_v9, %v1180_v34  ;;  %v1454_v0 = vmax.f32 %v1264_v50, 0.0  ;;  %v1469_v34 = vmax.f32 %v1301_v29, 0.0  ;;  %4712 = vmatmul.msk.bf16.gmra.mxu3 %vm846_vm0, %v805_v31  ;;  %v738_v29 = vmax.f32 %v610_v22, 0.0 }
 0x13b   : > { %v1421_v49 = vmax.f32 %v1181_v44, 0.0  ;;  %v6227_v46 = vpack.c.bf16 %v1469_v34, %v1468_v28  ;;  %v6231_v57 = vpop.f32.mrf.mxu0 }
 0x13d   : > { %v6200_v59 = vpack.c.bf16 %v1421_v49, %v1420_v47  ;;  %7798 = vst [vmem:[#allocation10_spill] sm:$0xff] %v6227_v46  ;;  %v517_v47 = vunpack.c.h.bf16 %v388_v37  ;;  %v5216_v46 = vld [vmem:[%s5936_s21 + $0x70] sm:$0xff] }
 0x13e   : > { %v1265_v62 = vpop.f32.mrf.mxu2 }
 0x13f   : > { %v1266_v3 = vadd.f32 %v6002_v9, %v1265_v62  ;;  %v645_v21 = vmax.f32 %v517_v47, 0.0  ;;  %v1303_v62 = vpop.f32.mrf.mxu3  ;;  %v1064_v47 = vadd.f32 %v6002_v9, %v6172_v1 }
 0x140   : > { %v1183_v4 = vpop.f32.mrf.mxu1  ;;  %v1304_v14 = vadd.f32 %v6002_v9, %v1303_v62 }
 0x141   : > { %v1455_v10 = vmax.f32 %v1266_v3, 0.0  ;;  %v1184_v30 = vadd.f32 %v6002_v9, %v1183_v4  ;;  %v759_v3 = vpack.c.bf16 %v645_v21, %v644_v56  ;;  %v519_v21 = vunpack.c.h.bf16 %v390_v45 }
 0x143   : > { %v6213_v13 = vpack.c.bf16 %v1455_v10, %v1454_v0  ;;  %4734 = vmatmul.msk.bf16.gmra.mxu1 %vm846_vm0, %v1497_v8  ;;  %5071 = vmatmul.msk.bf16.gmra.mxu2 %vm846_vm0, %v5204_v52  ;;  %v1422_v49 = vmax.f32 %v1184_v30, 0.0  ;;  %v5205_v8 = vld [vmem:[%s5936_s21 + $0x18] sm:$0xff]  ;;  %v739_v30 = vmax.f32 %v611_v24, 0.0  ;;  %v647_v1 = vmax.f32 %v519_v21, 0.0 }
 0x144   : > { %4666 = vmatmul.msk.bf16.gmra.mxu0 %vm846_vm0, %v759_v3  ;;  %v1374_v3 = vmax.f32 %v1064_v47, 0.0 }
 0x145   : > { %7797 = vst [vmem:[#allocation9_spill] sm:$0xff] %v6213_v13  ;;  %v806_v39 = vpack.c.bf16 %v739_v30, %v738_v29  ;;  %v484_v29 = vld [vmem:[%s5936_s21 + $0x1e8] sm:$0xff]  }
 0x146   : > { %v1268_v25 = vpop.f32.mrf.mxu2 }
 0x147   : > { %v1269_v54 = vadd.f32 %v6002_v9, %v1268_v25  ;;  %v6247_v25 = vpop.f32.mrf.mxu0  ;;  %v1305_v28 = vpop.f32.mrf.mxu3 }
 0x148   : > { %v1185_v33 = vpop.f32.mrf.mxu1  ;;  %v1306_v34 = vadd.f32 %v6002_v9, %v1305_v28 }
 0x149   : > { %v1186_v44 = vadd.f32 %v6002_v9, %v1185_v33  ;;  %v1456_v52 = vmax.f32 %v1269_v54, 0.0  ;;  %v1470_v33 = vmax.f32 %v1304_v14, 0.0  ;;  %v518_v54 = vunpack.c.l.bf16 %v390_v45  ;;  %4713 = vmatmul.msk.bf16.gmra.mxu3 %vm846_vm0, %v806_v39 }
 0x14b   : > { %v1423_v50 = vmax.f32 %v1186_v44, 0.0  ;;  %v1471_v44 = vmax.f32 %v1306_v34, 0.0  ;;  %v646_v63 = vmax.f32 %v518_v54, 0.0 }
 0x14d   : > { %v6233_v60 = vpack.c.bf16 %v1423_v50, %v1422_v49  ;;  %v1066_v49 = vadd.f32 %v6002_v9, %v6187_v26  ;;  %v6257_v56 = vpack.c.bf16 %v1471_v44, %v1470_v33  ;;  %v613_v33 = vunpack.c.h.bf16 %v484_v29  ;;  %v6288_v44 = vld [vmem:[%s7776_s2] ss:$0 sm:$0xff] }
 0x14e   : > { %v1270_v0 = vpop.f32.mrf.mxu2  ;;  %v1069_v54 = vadd.f32 %v6288_v44, %v6198_v55  ;;  %v1071_v21 = vadd.f32 %v6288_v44, %v6217_v16  ;;  %v5279_v16 = vld [vmem:[%s7780_s6 + $0x8] sm:$0xff] }
 0x14f   : > { %v1271_v4 = vadd.f32 %v6002_v9, %v1270_v0  ;;  %7800 = vst [vmem:[#allocation12_spill] sm:$0xff] %v6257_v56  ;;  %v6261_v0 = vpop.f32.mrf.mxu0  ;;  %v1375_v26 = vmax.f32 %v1066_v49, 0.0  ;;  %v741_v39 = vmax.f32 %v613_v33, 0.0  ;;  %3256 = vmatpush.bf16.msrb.mxu3 %v5279_v16 }
 0x150   : > { %v1188_v10 = vpop.f32.mrf.mxu1  ;;  %v1376_v55 = vmax.f32 %v1069_v54, 0.0 }
 0x151   : > { %v1457_v12 = vmax.f32 %v1271_v4, 0.0  ;;  %v1189_v37 = vadd.f32 %v6002_v9, %v1188_v10  ;;  %v6268_v4 = vld [vmem:[%s7782_s8 + $0x30] sm:$0xff]  ;;  %v1499_v24 = vpack.c.bf16 %v1375_v26, %v1374_v3 }
 0x152   : > { %3840 = vmatpush.bf16.msrb.mxu0 %v6268_v4 }
 0x153   : > { %v6243_v17 = vpack.c.bf16 %v1457_v12, %v1456_v52  ;;  %4735 = vmatmul.msk.bf16.gmra.mxu1 %vm846_vm0, %v1498_v11  ;;  %5072 = vmatmul.msk.bf16.gmra.mxu2 %vm846_vm0, %v5205_v8  ;;  %v1424_v36 = vmax.f32 %v1189_v37, 0.0  ;;  %v6270_v8 = vpop.f32.mrf.mxu3  ;;  %v760_v11 = vpack.c.bf16 %v647_v1, %v646_v63 }
 0x154   : > { %7801 = vst [vmem:[#allocation13_spill] sm:$0xff] %v6270_v8 }
 0x155   : > { %7799 = vst [vmem:[#allocation11_spill] sm:$0xff] %v6243_v17  ;;  %4667 = vmatmul.msk.bf16.gmra.mxu0 %vm846_vm0, %v760_v11 }
 0x156   : > { %v1273_v31 = vpop.f32.mrf.mxu2 }
 0x157   : > { %v1274_v62 = vadd.f32 %v6002_v9, %v1273_v31  ;;  %v612_v31 = vunpack.c.l.bf16 %v484_v29  ;;  %v6281_v34 = vpop.f32.mrf.mxu0 }
 0x158   : > { %v1190_v42 = vpop.f32.mrf.mxu1 }
 0x159   : > { %v1191_v50 = vadd.f32 %v6002_v9, %v1190_v42  ;;  %v1458_v12 = vmax.f32 %v1274_v62, 0.0  ;;  %v740_v37 = vmax.f32 %v612_v31, 0.0  ;;  %v5207_v31 = vld [vmem:[%s5936_s21 + $0x28] sm:$0xff] }
 0x15b   : > { %v1425_v41 = vmax.f32 %v1191_v50, 0.0  ;;  %v807_v47 = vpack.c.bf16 %v741_v39, %v740_v37  ;;  %v392_v50 = vld [vmem:[%s5936_s21 + $0x78] sm:$0xff]  }
 0x15c   : > { %v521_v62 = vunpack.c.h.bf16 %v392_v50 }
 0x15d   : > { %v6263_v52 = vpack.c.bf16 %v1425_v41, %v1424_v36  ;;  %v520_v41 = vunpack.c.l.bf16 %v392_v50  ;;  %4714 = vmatmul.msk.bf16.gmra.mxu3 %vm846_vm0, %v807_v47 }
 0x15e   : > { %v1275_v10 = vpop.f32.mrf.mxu2  ;;  %v649_v11 = vmax.f32 %v521_v62, 0.0 }
 0x15f   : > { %v1276_v14 = vadd.f32 %v6002_v9, %v1275_v10  ;;  %v6283_v9 = vpop.f32.mrf.mxu3  ;;  %v648_v26 = vmax.f32 %v520_v41, 0.0  ;;  %v6299_v10 = vpop.f32.mrf.mxu0 }
 0x160   : > { %v1193_v22 = vpop.f32.mrf.mxu1  ;;  %7803 = vst [vmem:[#allocation15_spill] sm:$0xff] %v6283_v9  ;;  %v5214_v9 = vld [vmem:[%s5936_s21 + $0x60] sm:$0xff] }
 0x161   : > { %v1459_v28 = vmax.f32 %v1276_v14, 0.0  ;;  %v1194_v45 = vadd.f32 %v6288_v44, %v1193_v22 }
 0x163   : > { %v6277_v30 = vpack.c.bf16 %v1459_v28, %v1458_v12  ;;  %4736 = vmatmul.msk.bf16.gmra.mxu1 %vm846_vm0, %v1499_v24  ;;  %5073 = vmatmul.msk.bf16.gmra.mxu2 %vm846_vm0, %v5206_v15  ;;  %v1426_v63 = vmax.f32 %v1194_v45, 0.0  ;;  %v1377_v12 = vmax.f32 %v1071_v21, 0.0  ;;  %v761_v24 = vpack.c.bf16 %v649_v11, %v648_v26 }
 0x164   : > { %v1074_v26 = vadd.f32 %v6288_v44, %v6231_v57  ;;  %v1076_v11 = vadd.f32 %v6288_v44, %v6247_v25  ;;  %v5291_v25 = vld [vmem:[%s7782_s8 + $0x28] sm:$0xff] }
 0x165   : > { %7802 = vst [vmem:[#allocation14_spill] sm:$0xff] %v6277_v30  ;;  %4668 = vmatmul.msk.bf16.gmra.mxu0 %vm846_vm0, %v761_v24  ;;  %v1500_v37 = vpack.c.bf16 %v1377_v12, %v1376_v55 }
 0x166   : > { %v1278_v42 = vpop.f32.mrf.mxu2  ;;  %v1378_v57 = vmax.f32 %v1074_v26, 0.0  ;;  %3841 = vmatpush.bf16.msrb.mxu0 %v5291_v25 }
 0x167   : > { %v1279_v3 = vadd.f32 %v6288_v44, %v1278_v42  ;;  %v6306_v15 = vpop.f32.mrf.mxu3  ;;  %v486_v42 = vld [vmem:[%s5936_s21 + $0x1f0] sm:$0xff]   ;;  %v6316_v50 = vpop.f32.mrf.mxu0 }
 0x168   : > { %v1195_v49 = vpop.f32.mrf.mxu1  ;;  %7804 = vst [vmem:[#allocation16_spill] sm:$0xff] %v6306_v15  ;;  %v614_v47 = vunpack.c.l.bf16 %v486_v42 }
 0x169   : > { %v1196_v36 = vadd.f32 %v6288_v44, %v1195_v49  ;;  %v1460_v28 = vmax.f32 %v1279_v3, 0.0  ;;  %v615_v49 = vunpack.c.h.bf16 %v486_v42  ;;  %v394_v3 = vld [vmem:[%s5936_s21 + $0x80] sm:$0xff]  }
 0x16a   : > { %v742_v21 = vmax.f32 %v614_v47, 0.0  ;;  %v522_v12 = vunpack.c.l.bf16 %v394_v3  ;;  %v523_v16 = vunpack.c.h.bf16 %v394_v3  ;;  %v488_v3 = vld [vmem:[%s5936_s21 + $0x1f8] sm:$0xff]  }
 0x16b   : > { %v1427_v1 = vmax.f32 %v1196_v36, 0.0  ;;  %v743_v36 = vmax.f32 %v615_v49, 0.0 }
 0x16d   : > { %v6301_v14 = vpack.c.bf16 %v1427_v1, %v1426_v63  ;;  %v808_v63 = vpack.c.bf16 %v743_v36, %v742_v21 }
 0x16e   : > { %v1280_v22 = vpop.f32.mrf.mxu2 }
 0x16f   : > { %v1281_v29 = vadd.f32 %v6288_v44, %v1280_v22  ;;  %v6318_v54 = vpop.f32.mrf.mxu3  ;;  %4715 = vmatmul.msk.bf16.gmra.mxu3 %vm846_vm0, %v808_v63 }
 0x170   : > { %v1198_v33 = vpop.f32.mrf.mxu1  ;;  %7806 = vst [vmem:[#allocation18_spill] sm:$0xff] %v6318_v54 }
 0x171   : > { %v1461_v39 = vmax.f32 %v1281_v29, 0.0  ;;  %v1199_v62 = vadd.f32 %v6288_v44, %v1198_v33  ;;  %v650_v29 = vmax.f32 %v522_v12, 0.0  ;;  %v651_v33 = vmax.f32 %v523_v16, 0.0 }
 0x172   : > { %v617_v12 = vunpack.c.h.bf16 %v488_v3 }
 0x173   : > { %v6312_v45 = vpack.c.bf16 %v1461_v39, %v1460_v28  ;;  %4737 = vmatmul.msk.bf16.gmra.mxu1 %vm846_vm0, %v1500_v37  ;;  %5074 = vmatmul.msk.bf16.gmra.mxu2 %vm846_vm0, %v5207_v31  ;;  %v1428_v22 = vmax.f32 %v1199_v62, 0.0  ;;  %v6329_v31 = vpop.f32.mrf.mxu0  ;;  %v1379_v37 = vmax.f32 %v1076_v11, 0.0  ;;  %v762_v49 = vpack.c.bf16 %v651_v33, %v650_v29  ;;  %v5278_v11 = vld [vmem:[%s7780_s6] sm:$0xff] }
 0x174   : > { %3257 = vmatpush.bf16.msrb.mxu3 %v5278_v11 }
 0x175   : > { %7805 = vst [vmem:[#allocation17_spill] sm:$0xff] %v6312_v45  ;;  %4669 = vmatmul.msk.bf16.gmra.mxu0 %vm846_vm0, %v762_v49  ;;  %v1501_v63 = vpack.c.bf16 %v1379_v37, %v1378_v57  ;;  %v1081_v49 = vadd.f32 %v6288_v44, %v6281_v34 }
 0x176   : > { %v1283_v41 = vpop.f32.mrf.mxu2 }
 0x177   : > { %v1284_v28 = vadd.f32 %v6288_v44, %v1283_v41  ;;  %v6336_v47 = vpop.f32.mrf.mxu3  ;;  %v5208_v41 = vld [vmem:[%s5936_s21 + $0x30] sm:$0xff] }
 0x178   : > { %v1200_v1 = vpop.f32.mrf.mxu1  ;;  %7807 = vst [vmem:[#allocation19_spill] sm:$0xff] %v6336_v47  ;;  %5690 = vmatpush.bf16.msra.mxu3 %v6205_v58  ;;  %v5212_v47 = vld [vmem:[%s5936_s21 + $0x50] sm:$0xff] }
 0x179   : > { %v1201_v55 = vadd.f32 %v6288_v44, %v1200_v1  ;;  %v1462_v21 = vmax.f32 %v1284_v28, 0.0 }
 0x17b   : > { %v1429_v24 = vmax.f32 %v1201_v55, 0.0  ;;  %v616_v55 = vunpack.c.l.bf16 %v488_v3  ;;  %v6349_v28 = vpop.f32.mrf.mxu0 }
 0x17c   : > { %5691 = vmatpush.bf16.msra.mxu3 %v6268_v4 }
 0x17d   : > { %v6331_v39 = vpack.c.bf16 %v1429_v24, %v1428_v22  ;;  %v744_v16 = vmax.f32 %v616_v55, 0.0  ;;  %v745_v22 = vmax.f32 %v617_v12, 0.0  ;;  %v5209_v55 = vld [vmem:[%s5936_s21 + $0x38] sm:$0xff] }
 0x17e   : > { %v1285_v42 = vpop.f32.mrf.mxu2 }
 0x17f   : > { %v1286_v36 = vadd.f32 %v6288_v44, %v1285_v42  ;;  %v809_v33 = vpack.c.bf16 %v745_v22, %v744_v16  ;;  %v6353_v37 = vpop.f32.mrf.mxu3  ;;  %v1079_v42 = vadd.f32 %v6288_v44, %v6261_v0 }
 0x180   : > { %v1203_v62 = vpop.f32.mrf.mxu1  ;;  %7809 = vst [vmem:[#allocation21_spill] sm:$0xff] %v6353_v37  ;;  %5692 = vmatpush.bf16.msra.mxu3 %v5291_v25  ;;  %v1084_v25 = vadd.f32 %v6288_v44, %v6299_v10  ;;  %v5290_v10 = vld [vmem:[%s7782_s8 + $0x20] sm:$0xff] }
 0x181   : > { %v1463_v1 = vmax.f32 %v1286_v36, 0.0  ;;  %v1204_v29 = vadd.f32 %v6288_v44, %v1203_v62  ;;  %4716 = vmatmul.msk.bf16.gmra.mxu3 %vm846_vm0, %v809_v33  ;;  %v1380_v62 = vmax.f32 %v1079_v42, 0.0  ;;  %v1086_v42 = vadd.f32 %v6288_v44, %v6316_v50  ;;  %3842 = vmatpush.bf16.msrb.mxu0 %v5290_v10 }
 0x183   : > { %v6342_v26 = vpack.c.bf16 %v1463_v1, %v1462_v21  ;;  %4738 = vmatmul.msk.bf16.gmra.mxu1 %vm846_vm0, %v1501_v63  ;;  %5075 = vmatmul.msk.bf16.gmra.mxu2 %vm846_vm0, %v5208_v41  ;;  %v1430_v36 = vmax.f32 %v1204_v29, 0.0  ;;  %v1381_v63 = vmax.f32 %v1081_v49, 0.0  ;;  %v1093_v12 = vpop.f32.mrf.mxu0 }
 0x184   : > { %5693 = vmatpush.bf16.msra.mxu3 %v5290_v10 }
 0x185   : > { %7808 = vst [vmem:[#allocation20_spill] sm:$0xff] %v6342_v26  ;;  %v1502_v16 = vpack.c.bf16 %v1381_v63, %v1380_v62  ;;  %v1382_v63 = vmax.f32 %v1084_v25, 0.0 }
 0x186   : > { %v1288_v24 = vpop.f32.mrf.mxu2 }
 0x187   : > { %v1289_v58 = vadd.f32 %v6288_v44, %v1288_v24  ;;  %v6367_v29 = vpop.f32.mrf.mxu3 }
 0x188   : > { %v1205_v57 = vpop.f32.mrf.mxu1  ;;  %7810 = vst [vmem:[#allocation22_spill] sm:$0xff] %v6367_v29 }
 0x189   : > { %v1206_v21 = vadd.f32 %v6288_v44, %v1205_v57  ;;  %v1464_v11 = vmax.f32 %v1289_v58, 0.0 }
 0x18b   : > { %v1431_v41 = vmax.f32 %v1206_v21, 0.0  ;;  %v1095_v21 = vpop.f32.mrf.mxu0 }
 0x18d   : > { %v6363_v1 = vpack.c.bf16 %v1431_v41, %v1430_v36 }
 0x18e   : > { %v1290_v3 = vpop.f32.mrf.mxu2 }
 0x18f   : > { %v1291_v0 = vadd.f32 %v6288_v44, %v1290_v3  ;;  %v6380_v62 = vpop.f32.mrf.mxu3  ;;  %v1383_v3 = vmax.f32 %v1086_v42, 0.0 }
 0x190   : > { %v1208_v34 = vpop.f32.mrf.mxu1  ;;  %7812 = vst [vmem:[#allocation24_spill] sm:$0xff] %v6380_v62 }
 0x191   : > { %v1465_v22 = vmax.f32 %v1291_v0, 0.0  ;;  %v1209_v24 = vadd.f32 %v6288_v44, %v1208_v34  ;;  %v5210_v34 = vld [vmem:[%s5936_s21 + $0x40] sm:$0xff] }
 0x193   : > { %v6369_v33 = vpack.c.bf16 %v1465_v22, %v1464_v11  ;;  %4739 = vmatmul.msk.bf16.gmra.mxu1 %vm846_vm0, %v1502_v16  ;;  %5076 = vmatmul.msk.bf16.gmra.mxu2 %vm846_vm0, %v5209_v55  ;;  %v1432_v36 = vmax.f32 %v1209_v24, 0.0  ;;  %v1503_v22 = vpack.c.bf16 %v1383_v3, %v1382_v63 }
 0x195   : > { %7811 = vst [vmem:[#allocation23_spill] sm:$0xff] %v6369_v33  ;;  %v5217_v33 = vld [vmem:[%s5936_s21 + $0x78] sm:$0xff] }
 0x196   : > { %v1293_v4 = vpop.f32.mrf.mxu2 }
 0x197   : > { %v1294_v58 = vadd.f32 %v6288_v44, %v1293_v4  ;;  %v6393_v42 = vpop.f32.mrf.mxu3 }
 0x198   : > { %v1210_v57 = vpop.f32.mrf.mxu1  ;;  %7814 = vst [vmem:[#allocation26_spill] sm:$0xff] %v6393_v42 }
 0x199   : > { %v1211_v49 = vadd.f32 %v6288_v44, %v1210_v57  ;;  %v1466_v55 = vmax.f32 %v1294_v58, 0.0  ;;  %v1098_v57 = vpop.f32.mrf.mxu0  ;;  %v1091_v58 = vadd.f32 %v6288_v44, %v6349_v28 }
 0x19b   : > { %v1433_v41 = vmax.f32 %v1211_v49, 0.0 }
 0x19d   : > { %v6382_v11 = vpack.c.bf16 %v1433_v41, %v1432_v36  ;;  %v1089_v41 = vadd.f32 %v6288_v44, %v6329_v31  ;;  %v6409_v31 = vld [vmem:[%s7778_s4] ss:$0 sm:$0xff] }
 0x19e   : > { %v1295_v0 = vpop.f32.mrf.mxu2 }
 0x19f   : > { %v1296_v50 = vadd.f32 %v6288_v44, %v1295_v0  ;;  %v1384_v0 = vmax.f32 %v1089_v41, 0.0 }
 0x1a0   : > { %v1213_v16 = vpop.f32.mrf.mxu1 }
 0x1a1   : > { %v1467_v4 = vmax.f32 %v1296_v50, 0.0  ;;  %v1214_v49 = vadd.f32 %v6288_v44, %v1213_v16  ;;  %v6404_v16 = vpop.f32.mrf.mxu3 }
 0x1a2   : > { %7815 = vst [vmem:[#allocation27_spill] sm:$0xff] %v6404_v16 }
 0x1a3   : > { %v6389_v24 = vpack.c.bf16 %v1467_v4, %v1466_v55  ;;  %4740 = vmatmul.msk.bf16.gmra.mxu1 %vm846_vm0, %v1503_v22  ;;  %5077 = vmatmul.msk.bf16.gmra.mxu2 %vm846_vm0, %v5210_v34  ;;  %v1434_v3 = vmax.f32 %v1214_v49, 0.0  ;;  %v1385_v55 = vmax.f32 %v1091_v58, 0.0  ;;  %v1100_v22 = vpop.f32.mrf.mxu0  ;;  %v5211_v4 = vld [vmem:[%s5936_s21 + $0x48] sm:$0xff]  ;;  %v1094_v58 = vadd.f32 %v6288_v44, %v1093_v12 }
 0x1a5   : > { %7813 = vst [vmem:[#allocation25_spill] sm:$0xff] %v6389_v24  ;;  %v1504_v62 = vpack.c.bf16 %v1385_v55, %v1384_v0 }
 0x1a6   : > { %v2670_v25 = vpop.f32.mrf.mxu2 }
 0x1a8   : > { %v1215_v36 = vpop.f32.mrf.mxu1 }
 0x1a9   : > { %v1216_v63 = vadd.f32 %v6288_v44, %v1215_v36  ;;  %v6419_v0 = vpop.f32.mrf.mxu3 }
 0x1aa   : > { %7816 = vst [vmem:[#allocation28_spill] sm:$0xff] %v6419_v0 }
 0x1ab   : > { %v1435_v10 = vmax.f32 %v1216_v63, 0.0  ;;  %v1103_v41 = vpop.f32.mrf.mxu0 }
 0x1ad   : > { %v6401_v50 = vpack.c.bf16 %v1435_v10, %v1434_v3  ;;  %v1096_v3 = vadd.f32 %v6288_v44, %v1095_v21 }
 0x1ae   : > { %v2672_v34 = vpop.f32.mrf.mxu2 }
 0x1b0   : > { %v1797_v42 = vpop.f32.mrf.mxu1 }
 0x1b1   : > { %v1798_v28 = vadd.f32 %v6409_v31, %v1797_v42  ;;  %v1387_v42 = vmax.f32 %v1096_v3, 0.0  ;;  %v6428_v21 = vpop.f32.mrf.mxu3 }
 0x1b2   : > { %7817 = vst [vmem:[#allocation29_spill] sm:$0xff] %v6428_v21 }
 0x1b3   : > { %4741 = vmatmul.msk.bf16.gmra.mxu1 %vm846_vm0, %v1504_v62  ;;  %5078 = vmatmul.msk.bf16.gmra.mxu2 %vm846_vm0, %v5211_v4  ;;  %v6415_v63 = vadd.f32 %v2670_v25, %v1798_v28  ;;  %v1386_v62 = vmax.f32 %v1094_v58, 0.0  ;;  %v1105_v28 = vpop.f32.mrf.mxu0 }
 0x1b5   : > { %v2990_v4 = vmax.f32 %v6415_v63, 0.0  ;;  %v1505_v25 = vpack.c.bf16 %v1387_v42, %v1386_v62 }
 0x1b6   : > { %v2675_v49 = vpop.f32.mrf.mxu2 }
 0x1b8   : > { %v1799_v36 = vpop.f32.mrf.mxu1 }
 0x1b9   : > { %v1800_v10 = vadd.f32 %v6409_v31, %v1799_v36  ;;  %v5289_v36 = vld [vmem:[%s7782_s8 + $0x18] sm:$0xff] }
 0x1ba   : > { %3843 = vmatpush.bf16.msrb.mxu0 %v5289_v36  ;;  %5694 = vmatpush.bf16.msra.mxu3 %v5289_v36  ;;  %v6443_v36 = vpop.f32.mrf.mxu3 }
 0x1bb   : > { %v6421_v55 = vadd.f32 %v2672_v34, %v1800_v10  ;;  %v1101_v10 = vadd.f32 %v6288_v44, %v1100_v22  ;;  %7818 = vst [vmem:[#allocation30_spill] sm:$0xff] %v6443_v36 }
 0x1bd   : > { %v2991_v16 = vmax.f32 %v6421_v55, 0.0 }
 0x1be   : > { %v2677_v29 = vpop.f32.mrf.mxu2 }
 0x1bf   : > { %v3118_v37 = vpack.c.bf16 %v2991_v16, %v2990_v4  ;;  %v1108_v4 = vpop.f32.mrf.mxu0 }
 0x1c0   : > { %v1802_v12 = vpop.f32.mrf.mxu1 }
 0x1c1   : > { %3258 = vmatmul.bf16.vlgmr.msrb.gmra.mxu3 %v3118_v37  ;;  %v1803_v34 = vadd.f32 %v6409_v31, %v1802_v12  ;;  %v1099_v37 = vadd.f32 %v6288_v44, %v1098_v57  ;;  %v5213_v57 = vld [vmem:[%s5936_s21 + $0x58] sm:$0xff] }
 0x1c3   : > { %4742 = vmatmul.msk.bf16.gmra.mxu1 %vm846_vm0, %v1505_v25  ;;  %5079 = vmatmul.msk.bf16.gmra.mxu2 %vm846_vm0, %v5212_v47  ;;  %v6435_v3 = vadd.f32 %v2675_v49, %v1803_v34  ;;  %v1388_v42 = vmax.f32 %v1099_v37, 0.0  ;;  %v1389_v25 = vmax.f32 %v1101_v10, 0.0  ;;  %v6449_v10 = vpop.f32.mrf.mxu3 }
 0x1c4   : > { %7819 = vst [vmem:[#allocation31_spill] sm:$0xff] %v6449_v10 }
 0x1c5   : > { %v2992_v12 = vmax.f32 %v6435_v3, 0.0  ;;  %v1506_v34 = vpack.c.bf16 %v1389_v25, %v1388_v42 }
 0x1c6   : > { %v2680_v58 = vpop.f32.mrf.mxu2 }
 0x1c8   : > { %v1804_v16 = vpop.f32.mrf.mxu1 }
 0x1c9   : > { %v1805_v47 = vadd.f32 %v6409_v31, %v1804_v16  ;;  %v1110_v16 = vpop.f32.mrf.mxu0 }
 0x1cb   : > { %v6439_v62 = vadd.f32 %v2677_v29, %v1805_v47  ;;  %v1104_v47 = vadd.f32 %v6288_v44, %v1103_v41 }
 0x1cd   : > { %v2993_v21 = vmax.f32 %v6439_v62, 0.0 }
 0x1ce   : > { %v2682_v0 = vpop.f32.mrf.mxu2 }
 0x1cf   : > { %v3119_v54 = vpack.c.bf16 %v2993_v21, %v2992_v12  ;;  %v1106_v21 = vadd.f32 %v6288_v44, %v1105_v28  ;;  %v1390_v12 = vmax.f32 %v1104_v47, 0.0  ;;  %v5288_v28 = vld [vmem:[%s7782_s8 + $0x10] sm:$0xff]  ;;  %v1109_v47 = vadd.f32 %v6288_v44, %v1108_v4  ;;  %v5215_v4 = vld [vmem:[%s5936_s21 + $0x68] sm:$0xff] }
 0x1d0   : > { %v1807_v49 = vpop.f32.mrf.mxu1  ;;  %3844 = vmatpush.bf16.msrb.mxu0 %v5288_v28  ;;  %5695 = vmatpush.bf16.msra.mxu3 %v5288_v28 }
 0x1d1   : > { %3263 = vmatmul.bf16.gmra.mxu3 %v3119_v54  ;;  %v1808_v29 = vadd.f32 %v6409_v31, %v1807_v49  ;;  %v1113_v8 = vpop.f32.mrf.mxu0 }
 0x1d3   : > { %4743 = vmatmul.msk.bf16.gmra.mxu1 %vm846_vm0, %v1506_v34  ;;  %5080 = vmatmul.msk.bf16.gmra.mxu2 %vm846_vm0, %v5213_v57  ;;  %v6452_v36 = vadd.f32 %v2680_v58, %v1808_v29  ;;  %v1391_v57 = vmax.f32 %v1106_v21, 0.0  ;;  %v6461_v58 = vpop.f32.mrf.mxu3  ;;  %v1111_v21 = vadd.f32 %v6288_v44, %v1110_v16 }
 0x1d4   : > { %7820 = vst [vmem:[#allocation32_spill] sm:$0xff] %v6461_v58 }
 0x1d5   : > { %v2994_v25 = vmax.f32 %v6452_v36, 0.0  ;;  %v1507_v41 = vpack.c.bf16 %v1391_v57, %v1390_v12 }
 0x1d6   : > { %v2685_v22 = vpop.f32.mrf.mxu2 }
 0x1d8   : > { %v1809_v37 = vpop.f32.mrf.mxu1 }
 0x1d9   : > { %v1810_v54 = vadd.f32 %v6409_v31, %v1809_v37 }
 0x1db   : > { %v6456_v42 = vadd.f32 %v2682_v0, %v1810_v54 }
 0x1dd   : > { %v2995_v49 = vmax.f32 %v6456_v42, 0.0 }
 0x1de   : > { %v2687_v34 = vpop.f32.mrf.mxu2 }
 0x1df   : > { %v3120_v15 = vpack.c.bf16 %v2995_v49, %v2994_v25  ;;  %v1392_v25 = vmax.f32 %v1109_v47, 0.0  ;;  %v1393_v49 = vmax.f32 %v1111_v21, 0.0 }
 0x1e0   : > { %v1812_v10 = vpop.f32.mrf.mxu1 }
 0x1e1   : > { %3268 = vmatmul.bf16.gmra.mxu3 %v3120_v15  ;;  %v1813_v0 = vadd.f32 %v6409_v31, %v1812_v10  ;;  %v6476_v10 = vpop.f32.mrf.mxu3 }
 0x1e2   : > { %7821 = vst [vmem:[#allocation33_spill] sm:$0xff] %v6476_v10 }
 0x1e3   : > { %4744 = vmatmul.msk.bf16.gmra.mxu1 %vm846_vm0, %v1507_v41  ;;  %5081 = vmatmul.msk.bf16.gmra.mxu2 %vm846_vm0, %v5214_v9  ;;  %v6470_v15 = vadd.f32 %v2685_v22, %v1813_v0  ;;  %v1115_v9 = vpop.f32.mrf.mxu0  ;;  %v1508_v0 = vpack.c.bf16 %v1393_v49, %v1392_v25 }
 0x1e5   : > { %v2996_v57 = vmax.f32 %v6470_v15, 0.0 }
 0x1e6   : > { %v2690_v29 = vpop.f32.mrf.mxu2 }
 0x1e8   : > { %v1814_v37 = vpop.f32.mrf.mxu1 }
 0x1e9   : > { %v1815_v54 = vadd.f32 %v6409_v31, %v1814_v37  ;;  %v6484_v47 = vpop.f32.mrf.mxu3 }
 0x1ea   : > { %7822 = vst [vmem:[#allocation34_spill] sm:$0xff] %v6484_v47 }
 0x1eb   : > { %v6474_v12 = vadd.f32 %v2687_v34, %v1815_v54  ;;  %v1118_v16 = vpop.f32.mrf.mxu0  ;;  %v1114_v54 = vadd.f32 %v6288_v44, %v1113_v8 }
 0x1ed   : > { %v2997_v41 = vmax.f32 %v6474_v12, 0.0  ;;  %v1394_v49 = vmax.f32 %v1114_v54, 0.0 }
 0x1ee   : > { %v2692_v28 = vpop.f32.mrf.mxu2 }
 0x1ef   : > { %v3121_v58 = vpack.c.bf16 %v2997_v41, %v2996_v57  ;;  %v1116_v57 = vadd.f32 %v6288_v44, %v1115_v9 }
 0x1f0   : > { %v1817_v22 = vpop.f32.mrf.mxu1 }
 0x1f1   : > { %3273 = vmatmul.bf16.gmra.mxu3 %v3121_v58  ;;  %v1818_v34 = vadd.f32 %v6409_v31, %v1817_v22  ;;  %v6496_v8 = vpop.f32.mrf.mxu3 }
 0x1f2   : > { %7823 = vst [vmem:[#allocation35_spill] sm:$0xff] %v6496_v8 }
 0x1f3   : > { %4745 = vmatmul.msk.bf16.gmra.mxu1 %vm846_vm0, %v1508_v0  ;;  %5082 = vmatmul.msk.bf16.gmra.mxu2 %vm846_vm0, %v5215_v4  ;;  %v6487_v10 = vadd.f32 %v2690_v29, %v1818_v34  ;;  %v1395_v4 = vmax.f32 %v1116_v57, 0.0  ;;  %v1120_v56 = vpop.f32.mrf.mxu0  ;;  %v1119_v57 = vadd.f32 %v6288_v44, %v1118_v16 }
 0x1f5   : > { %v2998_v41 = vmax.f32 %v6487_v10, 0.0  ;;  %v1509_v29 = vpack.c.bf16 %v1395_v4, %v1394_v49 }
 0x1f6   : > { %v2695_v37 = vpop.f32.mrf.mxu2 }
 0x1f8   : > { %v1819_v21 = vpop.f32.mrf.mxu1 }
 0x1f9   : > { %v1820_v58 = vadd.f32 %v6409_v31, %v1819_v21  ;;  %v6509_v49 = vpop.f32.mrf.mxu3 }
 0x1fa   : > { %7824 = vst [vmem:[#allocation36_spill] sm:$0xff] %v6509_v49 }
 0x1fb   : > { %v6491_v25 = vadd.f32 %v2692_v28, %v1820_v58  ;;  %v5287_v28 = vld [vmem:[%s7782_s8 + $0x8] sm:$0xff]  ;;  %v1123_v54 = vpop.f32.mrf.mxu0 }
 0x1fc   : > { %3845 = vmatpush.bf16.msrb.mxu0 %v5287_v28  ;;  %5696 = vmatpush.bf16.msra.mxu3 %v5287_v28 }
 0x1fd   : > { %v2999_v22 = vmax.f32 %v6491_v25, 0.0 }
 0x1fe   : > { %v2697_v0 = vpop.f32.mrf.mxu2 }
 0x1ff   : > { %v3122_v47 = vpack.c.bf16 %v2999_v22, %v2998_v41  ;;  %v1396_v41 = vmax.f32 %v1119_v57, 0.0 }
 0x200   : > { %v1822_v24 = vpop.f32.mrf.mxu1 }
 0x201   : > { %3278 = vmatmul.bf16.gmra.mxu3 %v3122_v47  ;;  %v1823_v9 = vadd.f32 %v6409_v31, %v1822_v24  ;;  %v1121_v47 = vadd.f32 %v6288_v44, %v1120_v56  ;;  %v6518_v56 = vpop.f32.mrf.mxu3 }
 0x202   : > { %7825 = vst [vmem:[#allocation37_spill] sm:$0xff] %v6518_v56 }
 0x203   : > { %4746 = vmatmul.msk.bf16.gmra.mxu1 %vm846_vm0, %v1509_v29  ;;  %5083 = vmatmul.msk.bf16.gmra.mxu2 %vm846_vm0, %v5216_v46  ;;  %v6505_v58 = vadd.f32 %v2695_v37, %v1823_v9  ;;  %v1397_v22 = vmax.f32 %v1121_v47, 0.0  ;;  %v1125_v9 = vpop.f32.mrf.mxu0  ;;  %v1124_v47 = vadd.f32 %v6288_v44, %v1123_v54  ;;  %v5218_v54 = vld [vmem:[%s5936_s21 + $0x80] sm:$0xff] }
 0x205   : > { %v3000_v4 = vmax.f32 %v6505_v58, 0.0  ;;  %v1510_v37 = vpack.c.bf16 %v1397_v22, %v1396_v41 }
 0x206   : > { %v2700_v34 = vpop.f32.mrf.mxu2 }
 0x208   : > { %v1824_v21 = vpop.f32.mrf.mxu1 }
 0x209   : > { %v1825_v46 = vadd.f32 %v6409_v31, %v1824_v21  ;;  %v6530_v56 = vpop.f32.mrf.mxu3 }
 0x20a   : > { %7826 = vst [vmem:[#allocation38_spill] sm:$0xff] %v6530_v56 }
 0x20b   : > { %v6511_v24 = vadd.f32 %v2697_v0, %v1825_v46  ;;  %v1128_v22 = vpop.f32.mrf.mxu0 }
 0x20d   : > { %v3001_v29 = vmax.f32 %v6511_v24, 0.0 }
 0x20e   : > { %v2702_v28 = vpop.f32.mrf.mxu2 }
 0x20f   : > { %v3123_v8 = vpack.c.bf16 %v3001_v29, %v3000_v4  ;;  %v1126_v4 = vadd.f32 %v6288_v44, %v1125_v9  ;;  %v1398_v29 = vmax.f32 %v1124_v47, 0.0  ;;  %v5286_v47 = vld [vmem:[%s7782_s8] sm:$0xff] }
 0x210   : > { %v1827_v16 = vpop.f32.mrf.mxu1  ;;  %3846 = vmatpush.bf16.msrb.mxu0 %v5286_v47  ;;  %5697 = vmatpush.bf16.msra.mxu3 %v5286_v47 }
 0x211   : > { %3283 = vmatmul.bf16.gmra.mxu3 %v3123_v8  ;;  %v1828_v0 = vadd.f32 %v6409_v31, %v1827_v16 }
 0x213   : > { %4747 = vmatmul.msk.bf16.gmra.mxu1 %vm846_vm0, %v1510_v37  ;;  %5084 = vmatmul.msk.bf16.gmra.mxu2 %vm846_vm0, %v5217_v33  ;;  %v6522_v46 = vadd.f32 %v2700_v34, %v1828_v0  ;;  %v1399_v37 = vmax.f32 %v1126_v4, 0.0  ;;  %v1130_v9 = vpop.f32.mrf.mxu0  ;;  %v1129_v4 = vadd.f32 %v6288_v44, %v1128_v22 }
 0x215   : > { %v3002_v33 = vmax.f32 %v6522_v46, 0.0  ;;  %v1511_v0 = vpack.c.bf16 %v1399_v37, %v1398_v29 }
 0x216   : > { %v2705_v21 = vpop.f32.mrf.mxu2 }
 0x218   : > { %v1829_v57 = vpop.f32.mrf.mxu1 }
 0x219   : > { %v1830_v8 = vadd.f32 %v6409_v31, %v1829_v57 }
 0x21b   : > { %v6526_v41 = vadd.f32 %v2702_v28, %v1830_v8  ;;  %v6540_v8 = vpop.f32.mrf.mxu3 }
 0x21c   : > { %7827 = vst [vmem:[#allocation39_spill] sm:$0xff] %v6540_v8  ;;  %v5219_v8 = vld [vmem:[%s5936_s21 + $0x88] sm:$0xff] }
 0x21d   : > { %v3003_v16 = vmax.f32 %v6526_v41, 0.0 }
 0x21e   : > { %v2707_v49 = vpop.f32.mrf.mxu2 }
 0x21f   : > { %v3124_v26 = vpack.c.bf16 %v3003_v16, %v3002_v33 }
 0x220   : > { %v1832_v34 = vpop.f32.mrf.mxu1 }
 0x221   : > { %3288 = vmatmul.bf16.gmra.mxu3 %v3124_v26  ;;  %v1833_v28 = vadd.f32 %v6409_v31, %v1832_v34  ;;  %v1131_v26 = vadd.f32 %v6288_v44, %v1130_v9 }
 0x223   : > { %4748 = vmatmul.msk.bf16.gmra.mxu1 %vm846_vm0, %v1511_v0  ;;  %5085 = vmatmul.msk.bf16.gmra.mxu2 %vm846_vm0, %v5218_v54  ;;  %v6542_v29 = vadd.f32 %v2705_v21, %v1833_v28  ;;  %v1400_v54 = vmax.f32 %v1129_v4, 0.0  ;;  %v1401_v0 = vmax.f32 %v1131_v26, 0.0  ;;  %v6551_v44 = vpop.f32.mrf.mxu3 }
 0x224   : > { %7828 = vst [vmem:[#allocation40_spill] sm:$0xff] %v6551_v44 }
 0x225   : > { %v3004_v34 = vmax.f32 %v6542_v29, 0.0  ;;  %v1512_v21 = vpack.c.bf16 %v1401_v0, %v1400_v54 }
 0x226   : > { %v2710_v57 = vpop.f32.mrf.mxu2 }
 0x228   : > { %v1834_v33 = vpop.f32.mrf.mxu1 }
 0x229   : > { %v1835_v37 = vadd.f32 %v6409_v31, %v1834_v33 }
 0x22b   : > { %v6546_v16 = vadd.f32 %v2707_v49, %v1835_v37  ;;  %v6561_v33 = vpop.f32.mrf.mxu3 }
 0x22c   : > { %7829 = vst [vmem:[#allocation41_spill] sm:$0xff] %v6561_v33 }
 0x22d   : > { %v3005_v56 = vmax.f32 %v6546_v16, 0.0 }
 0x22e   : > { %v2712_v22 = vpop.f32.mrf.mxu2 }
 0x22f   : > { %v3125_v45 = vpack.c.bf16 %v3005_v56, %v3004_v34  ;;  %v5220_v34 = vld [vmem:[%s5936_s21 + $0x90] sm:$0xff] }
 0x230   : > { %v1837_v30 = vpop.f32.mrf.mxu1 }
 0x231   : > { %3293 = vmatmul.bf16.gmra.mxu3 %v3125_v45  ;;  %v1838_v49 = vadd.f32 %v6409_v31, %v1837_v30 }
 0x233   : > { %4749 = vmatmul.msk.bf16.gmra.mxu1 %vm846_vm0, %v1512_v21  ;;  %5086 = vmatmul.msk.bf16.gmra.mxu2 %vm846_vm0, %v5219_v8  ;;  %v6556_v47 = vadd.f32 %v2710_v57, %v1838_v49 }
 0x235   : > { %v3006_v45 = vmax.f32 %v6556_v47, 0.0 }
 0x236   : > { %v2715_v28 = vpop.f32.mrf.mxu2 }
 0x238   : > { %v1839_v9 = vpop.f32.mrf.mxu1 }
 0x239   : > { %v1840_v4 = vadd.f32 %v6409_v31, %v1839_v9 }
 0x23b   : > { %v6559_v56 = vadd.f32 %v2712_v22, %v1840_v4  ;;  %v6573_v22 = vld [vmem:[%s7781_s7] ss:$0 sm:$0xff] }
 0x23d   : > { %v3007_v26 = vmax.f32 %v6559_v56, 0.0 }
 0x23e   : > { %v2717_v37 = vpop.f32.mrf.mxu2 }
 0x23f   : > { %v3126_v54 = vpack.c.bf16 %v3007_v26, %v3006_v45 }
 0x240   : > { %v1842_v8 = vpop.f32.mrf.mxu1 }
 0x241   : > { %3298 = vmatmul.bf16.gmra.mxu3 %v3126_v54  ;;  %v1843_v57 = vadd.f32 %v6409_v31, %v1842_v8 }
 0x243   : > { %4750 = vmatmul.msk.bf16.gmra.mxu1 %vm846_vm0, %v6012_v32  ;;  %5087 = vmatmul.msk.bf16.gmra.mxu2 %vm846_vm0, %v5220_v34  ;;  %v6575_v49 = vadd.f32 %v2715_v28, %v1843_v57  ;;  %v5221_v28 = vld [vmem:[%s5936_s21 + $0x98] sm:$0xff] }
 0x244   : > { %v3259_v30 = vpop.f32.mrf.mxu3 }
 0x245   : > { %v3260_v4 = vadd.f32 %v6573_v22, %v3259_v30  ;;  %v3008_v26 = vmax.f32 %v6575_v49, 0.0 }
 0x246   : > { %v2720_v0 = vpop.f32.mrf.mxu2 }
 0x247   : > { %v3579_v33 = vmax.f32 %v3260_v4, 0.0 }
 0x248   : > { %v1844_v21 = vpop.f32.mrf.mxu1 }
 0x249   : > { %v1845_v9 = vadd.f32 %v6409_v31, %v1844_v21 }
 0x24b   : > { %v6579_v32 = vadd.f32 %v2717_v37, %v1845_v9 }
 0x24c   : > { %v3261_v45 = vpop.f32.mrf.mxu3 }
 0x24d   : > { %v3009_v54 = vmax.f32 %v6579_v32, 0.0  ;;  %v3262_v34 = vadd.f32 %v6573_v22, %v3261_v45 }
 0x24e   : > { %v2722_v8 = vpop.f32.mrf.mxu2 }
 0x24f   : > { %v3580_v44 = vmax.f32 %v3262_v34, 0.0  ;;  %v3127_v17 = vpack.c.bf16 %v3009_v54, %v3008_v26 }
 0x250   : > { %v1847_v13 = vpop.f32.mrf.mxu1 }
 0x251   : > { %v3707_v57 = vpack.c.bf16 %v3580_v44, %v3579_v33  ;;  %3303 = vmatmul.bf16.gmra.mxu3 %v3127_v17  ;;  %v1848_v30 = vadd.f32 %v6409_v31, %v1847_v13 }
 0x253   : > { %4751 = vmatmul.msk.bf16.gmra.mxu1 %vm846_vm0, %v6028_v6  ;;  %3847 = vmatmul.bf16.vlgmr.msrb.gmra.mxu0 %v3707_v57  ;;  %v6589_v45 = vadd.f32 %v2720_v0, %v1848_v30  ;;  %v5222_v0 = vld [vmem:[%s5936_s21 + $0xa0] sm:$0xff] }
 0x254   : > { %v3264_v37 = vpop.f32.mrf.mxu3  ;;  %5088 = vmatmul.msk.bf16.gmra.mxu2 %vm846_vm0, %v5221_v28 }
 0x255   : > { %v3265_v26 = vadd.f32 %v6573_v22, %v3264_v37  ;;  %v3010_v6 = vmax.f32 %v6589_v45, 0.0 }
 0x256   : > { %v2725_v21 = vpop.f32.mrf.mxu2 }
 0x257   : > { %v3581_v13 = vmax.f32 %v3265_v26, 0.0 }
 0x258   : > { %v1849_v9 = vpop.f32.mrf.mxu1 }
 0x259   : > { %v1850_v4 = vadd.f32 %v6409_v31, %v1849_v9 }
 0x25b   : > { %v6593_v44 = vadd.f32 %v2722_v8, %v1850_v4 }
 0x25c   : > { %v3266_v17 = vpop.f32.mrf.mxu3 }
 0x25d   : > { %v3011_v33 = vmax.f32 %v6593_v44, 0.0  ;;  %v3267_v54 = vadd.f32 %v6573_v22, %v3266_v17 }
 0x25e   : > { %v2727_v34 = vpop.f32.mrf.mxu2 }
 0x25f   : > { %v3582_v28 = vmax.f32 %v3267_v54, 0.0  ;;  %v3128_v57 = vpack.c.bf16 %v3011_v33, %v3010_v6 }
 0x260   : > { %v1852_v19 = vpop.f32.mrf.mxu1 }
 0x261   : > { %3308 = vmatmul.bf16.gmra.mxu3 %v3128_v57  ;;  %v3708_v30 = vpack.c.bf16 %v3582_v28, %v3581_v13  ;;  %v1853_v37 = vadd.f32 %v6409_v31, %v1852_v19 }
 0x263   : > { %4752 = vmatmul.msk.bf16.gmra.mxu1 %vm846_vm0, %v6047_v48  ;;  %3852 = vmatmul.bf16.gmra.mxu0 %v3708_v30  ;;  %v6603_v17 = vadd.f32 %v2725_v21, %v1853_v37  ;;  %v5223_v21 = vld [vmem:[%s5936_s21 + $0xa8] sm:$0xff] }
 0x264   : > { %v3269_v8 = vpop.f32.mrf.mxu3  ;;  %5089 = vmatmul.msk.bf16.gmra.mxu2 %vm846_vm0, %v5222_v0 }
 0x265   : > { %v3270_v6 = vadd.f32 %v6573_v22, %v3269_v8  ;;  %v3012_v48 = vmax.f32 %v6603_v17, 0.0 }
 0x266   : > { %v2730_v9 = vpop.f32.mrf.mxu2 }
 0x267   : > { %v3583_v19 = vmax.f32 %v3270_v6, 0.0 }
 0x268   : > { %v1854_v4 = vpop.f32.mrf.mxu1 }
 0x269   : > { %v1855_v26 = vadd.f32 %v6409_v31, %v1854_v4 }
 0x26b   : > { %v6607_v33 = vadd.f32 %v2727_v34, %v1855_v26 }
 0x26c   : > { %v3271_v54 = vpop.f32.mrf.mxu3 }
 0x26d   : > { %v3013_v13 = vmax.f32 %v6607_v33, 0.0  ;;  %v3272_v28 = vadd.f32 %v6573_v22, %v3271_v54 }
 0x26e   : > { %v2732_v57 = vpop.f32.mrf.mxu2 }
 0x26f   : > { %v3584_v0 = vmax.f32 %v3272_v28, 0.0  ;;  %v3129_v30 = vpack.c.bf16 %v3013_v13, %v3012_v48 }
 0x270   : > { %v1857_v35 = vpop.f32.mrf.mxu1 }
 0x271   : > { %3313 = vmatmul.bf16.gmra.mxu3 %v3129_v30  ;;  %v3709_v37 = vpack.c.bf16 %v3584_v0, %v3583_v19  ;;  %v1858_v8 = vadd.f32 %v6409_v31, %v1857_v35 }
 0x273   : > { %4753 = vmatmul.msk.bf16.gmra.mxu1 %vm846_vm0, %v6069_v27  ;;  %3857 = vmatmul.bf16.gmra.mxu0 %v3709_v37  ;;  %v6617_v54 = vadd.f32 %v2730_v9, %v1858_v8  ;;  %v5224_v9 = vld [vmem:[%s5936_s21 + $0xb0] sm:$0xff] }
 0x274   : > { %v3274_v34 = vpop.f32.mrf.mxu3  ;;  %5090 = vmatmul.msk.bf16.gmra.mxu2 %vm846_vm0, %v5223_v21 }
 0x275   : > { %v3275_v48 = vadd.f32 %v6573_v22, %v3274_v34  ;;  %v3014_v27 = vmax.f32 %v6617_v54, 0.0 }
 0x276   : > { %v2735_v4 = vpop.f32.mrf.mxu2 }
 0x277   : > { %v3585_v35 = vmax.f32 %v3275_v48, 0.0 }
 0x278   : > { %v1859_v26 = vpop.f32.mrf.mxu1 }
 0x279   : > { %v1860_v6 = vadd.f32 %v6409_v31, %v1859_v26 }
 0x27b   : > { %v6621_v13 = vadd.f32 %v2732_v57, %v1860_v6 }
 0x27c   : > { %v3276_v28 = vpop.f32.mrf.mxu3 }
 0x27d   : > { %v3015_v19 = vmax.f32 %v6621_v13, 0.0  ;;  %v3277_v0 = vadd.f32 %v6573_v22, %v3276_v28 }
 0x27e   : > { %v2737_v30 = vpop.f32.mrf.mxu2 }
 0x27f   : > { %v3586_v21 = vmax.f32 %v3277_v0, 0.0  ;;  %v3130_v37 = vpack.c.bf16 %v3015_v19, %v3014_v27 }
 0x280   : > { %v1862_v51 = vpop.f32.mrf.mxu1 }
 0x281   : > { %3318 = vmatmul.bf16.gmra.mxu3 %v3130_v37  ;;  %v3710_v8 = vpack.c.bf16 %v3586_v21, %v3585_v35  ;;  %v1863_v34 = vadd.f32 %v6409_v31, %v1862_v51 }
 0x283   : > { %4754 = vmatmul.msk.bf16.gmra.mxu1 %vm846_vm0, %v6088_v7  ;;  %3862 = vmatmul.bf16.gmra.mxu0 %v3710_v8  ;;  %v6631_v28 = vadd.f32 %v2735_v4, %v1863_v34  ;;  %v5225_v4 = vld [vmem:[%s5936_s21 + $0xb8] sm:$0xff] }
 0x284   : > { %v3279_v57 = vpop.f32.mrf.mxu3  ;;  %5091 = vmatmul.msk.bf16.gmra.mxu2 %vm846_vm0, %v5224_v9 }
 0x285   : > { %v3280_v27 = vadd.f32 %v6573_v22, %v3279_v57  ;;  %v3016_v7 = vmax.f32 %v6631_v28, 0.0 }
 0x286   : > { %v2740_v26 = vpop.f32.mrf.mxu2 }
 0x287   : > { %v3587_v51 = vmax.f32 %v3280_v27, 0.0 }
 0x288   : > { %v1864_v6 = vpop.f32.mrf.mxu1 }
 0x289   : > { %v1865_v48 = vadd.f32 %v6409_v31, %v1864_v6 }
 0x28b   : > { %v6635_v19 = vadd.f32 %v2737_v30, %v1865_v48 }
 0x28c   : > { %v3281_v0 = vpop.f32.mrf.mxu3 }
 0x28d   : > { %7830 = vst [vmem:[#allocation42_spill] sm:$0xff] %v6635_v19  ;;  %v3017_v35 = vmax.f32 %v6635_v19, 0.0  ;;  %v3282_v21 = vadd.f32 %v6573_v22, %v3281_v0 }
 0x28e   : > { %v2742_v37 = vpop.f32.mrf.mxu2 }
 0x28f   : > { %v3588_v9 = vmax.f32 %v3282_v21, 0.0  ;;  %v3131_v8 = vpack.c.bf16 %v3017_v35, %v3016_v7 }
 0x290   : > { %v1867_v2 = vpop.f32.mrf.mxu1 }
 0x291   : > { %3323 = vmatmul.bf16.gmra.mxu3 %v3131_v8  ;;  %v3711_v34 = vpack.c.bf16 %v3588_v9, %v3587_v51  ;;  %v1868_v57 = vadd.f32 %v6409_v31, %v1867_v2 }
 0x293   : > { %4755 = vmatmul.msk.bf16.gmra.mxu1 %vm846_vm0, %v6106_v53  ;;  %3867 = vmatmul.bf16.gmra.mxu0 %v3711_v34  ;;  %v6645_v0 = vadd.f32 %v2740_v26, %v1868_v57  ;;  %v5226_v26 = vld [vmem:[%s5936_s21 + $0xc0] sm:$0xff] }
 0x294   : > { %v3284_v30 = vpop.f32.mrf.mxu3  ;;  %5092 = vmatmul.msk.bf16.gmra.mxu2 %vm846_vm0, %v5225_v4 }
 0x295   : > { %v3285_v7 = vadd.f32 %v6573_v22, %v3284_v30  ;;  %v3018_v53 = vmax.f32 %v6645_v0, 0.0 }
 0x296   : > { %v2745_v6 = vpop.f32.mrf.mxu2 }
 0x297   : > { %v3589_v2 = vmax.f32 %v3285_v7, 0.0 }
 0x298   : > { %v1869_v48 = vpop.f32.mrf.mxu1 }
 0x299   : > { %v1870_v27 = vadd.f32 %v6409_v31, %v1869_v48 }
 0x29b   : > { %v6649_v35 = vadd.f32 %v2742_v37, %v1870_v27 }
 0x29c   : > { %v3286_v21 = vpop.f32.mrf.mxu3 }
 0x29d   : > { %7831 = vst [vmem:[#allocation43_spill] sm:$0xff] %v6649_v35  ;;  %v3019_v51 = vmax.f32 %v6649_v35, 0.0  ;;  %v3287_v9 = vadd.f32 %v6573_v22, %v3286_v21 }
 0x29e   : > { %v2747_v8 = vpop.f32.mrf.mxu2 }
 0x29f   : > { %v3590_v4 = vmax.f32 %v3287_v9, 0.0  ;;  %v3132_v34 = vpack.c.bf16 %v3019_v51, %v3018_v53 }
 0x2a0   : > { %v1872_v19 = vpop.f32.mrf.mxu1 }
 0x2a1   : > { %3328 = vmatmul.bf16.gmra.mxu3 %v3132_v34  ;;  %v3712_v57 = vpack.c.bf16 %v3590_v4, %v3589_v2  ;;  %v1873_v30 = vadd.f32 %v6409_v31, %v1872_v19 }
 0x2a3   : > { %4756 = vmatmul.msk.bf16.gmra.mxu1 %vm846_vm0, %v6129_v38  ;;  %3872 = vmatmul.bf16.gmra.mxu0 %v3712_v57  ;;  %v6659_v21 = vadd.f32 %v2745_v6, %v1873_v30  ;;  %v5227_v6 = vld [vmem:[%s5936_s21 + $0xc8] sm:$0xff] }
 0x2a4   : > { %v3289_v37 = vpop.f32.mrf.mxu3  ;;  %5093 = vmatmul.msk.bf16.gmra.mxu2 %vm846_vm0, %v5226_v26 }
 0x2a5   : > { %v3290_v53 = vadd.f32 %v6573_v22, %v3289_v37  ;;  %v3020_v38 = vmax.f32 %v6659_v21, 0.0 }
 0x2a6   : > { %v2750_v48 = vpop.f32.mrf.mxu2 }
 0x2a7   : > { %v3591_v19 = vmax.f32 %v3290_v53, 0.0 }
 0x2a8   : > { %v1874_v27 = vpop.f32.mrf.mxu1 }
 0x2a9   : > { %v1875_v7 = vadd.f32 %v6409_v31, %v1874_v27 }
 0x2ab   : > { %v6663_v51 = vadd.f32 %v2747_v8, %v1875_v7 }
 0x2ac   : > { %v3291_v9 = vpop.f32.mrf.mxu3 }
 0x2ad   : > { %7832 = vst [vmem:[#allocation44_spill] sm:$0xff] %v6663_v51  ;;  %v3021_v2 = vmax.f32 %v6663_v51, 0.0  ;;  %v3292_v4 = vadd.f32 %v6573_v22, %v3291_v9 }
 0x2ae   : > { %v2752_v34 = vpop.f32.mrf.mxu2 }
 0x2af   : > { %v3592_v26 = vmax.f32 %v3292_v4, 0.0  ;;  %v3133_v57 = vpack.c.bf16 %v3021_v2, %v3020_v38 }
 0x2b0   : > { %v1877_v35 = vpop.f32.mrf.mxu1 }
 0x2b1   : > { %3333 = vmatmul.bf16.gmra.mxu3 %v3133_v57  ;;  %v3713_v30 = vpack.c.bf16 %v3592_v26, %v3591_v19  ;;  %v1878_v37 = vadd.f32 %v6409_v31, %v1877_v35 }
 0x2b3   : > { %4757 = vmatmul.msk.bf16.gmra.mxu1 %vm846_vm0, %v6151_v23  ;;  %3877 = vmatmul.bf16.gmra.mxu0 %v3713_v30  ;;  %v6673_v9 = vadd.f32 %v2750_v48, %v1878_v37  ;;  %v5228_v48 = vld [vmem:[%s5936_s21 + $0xd0] sm:$0xff] }
 0x2b4   : > { %v3294_v8 = vpop.f32.mrf.mxu3  ;;  %5094 = vmatmul.msk.bf16.gmra.mxu2 %vm846_vm0, %v5227_v6 }
 0x2b5   : > { %v3295_v38 = vadd.f32 %v6573_v22, %v3294_v8  ;;  %v3022_v23 = vmax.f32 %v6673_v9, 0.0 }
 0x2b6   : > { %v2755_v27 = vpop.f32.mrf.mxu2 }
 0x2b7   : > { %v3593_v35 = vmax.f32 %v3295_v38, 0.0 }
 0x2b8   : > { %v1879_v7 = vpop.f32.mrf.mxu1 }
 0x2b9   : > { %v1880_v53 = vadd.f32 %v6409_v31, %v1879_v7 }
 0x2bb   : > { %v6677_v2 = vadd.f32 %v2752_v34, %v1880_v53 }
 0x2bc   : > { %v3296_v4 = vpop.f32.mrf.mxu3 }
 0x2bd   : > { %7833 = vst [vmem:[#allocation45_spill] sm:$0xff] %v6677_v2  ;;  %v3023_v19 = vmax.f32 %v6677_v2, 0.0  ;;  %v3297_v26 = vadd.f32 %v6573_v22, %v3296_v4  ;;  %v5229_v2 = vld [vmem:[%s5936_s21 + $0xd8] sm:$0xff] }
 0x2be   : > { %v2757_v57 = vpop.f32.mrf.mxu2 }
 0x2bf   : > { %v3594_v6 = vmax.f32 %v3297_v26, 0.0  ;;  %v3134_v30 = vpack.c.bf16 %v3023_v19, %v3022_v23 }
 0x2c0   : > { %v1882_v51 = vpop.f32.mrf.mxu1 }
 0x2c1   : > { %3338 = vmatmul.bf16.gmra.mxu3 %v3134_v30  ;;  %v3714_v37 = vpack.c.bf16 %v3594_v6, %v3593_v35  ;;  %v1883_v8 = vadd.f32 %v6409_v31, %v1882_v51 }
 0x2c3   : > { %4758 = vmatmul.msk.bf16.gmra.mxu1 %vm846_vm0, %v6174_v5  ;;  %3882 = vmatmul.bf16.gmra.mxu0 %v3714_v37  ;;  %v6687_v4 = vadd.f32 %v2755_v27, %v1883_v8 }
 0x2c4   : > { %v3299_v34 = vpop.f32.mrf.mxu3  ;;  %5095 = vmatmul.msk.bf16.gmra.mxu2 %vm846_vm0, %v5228_v48 }
 0x2c5   : > { %v3300_v23 = vadd.f32 %v6573_v22, %v3299_v34  ;;  %v3024_v5 = vmax.f32 %v6687_v4, 0.0 }
 0x2c6   : > { %v2760_v7 = vpop.f32.mrf.mxu2 }
 0x2c7   : > { %v3595_v30 = vmax.f32 %v3300_v23, 0.0 }
 0x2c8   : > { %v1884_v53 = vpop.f32.mrf.mxu1 }
 0x2c9   : > { %v1885_v38 = vadd.f32 %v6409_v31, %v1884_v53 }
 0x2cb   : > { %v6691_v19 = vadd.f32 %v2757_v57, %v1885_v38  ;;  %v6700_v57 = vld [vmem:[%s7783_s9] ss:$0 sm:$0xff] }
 0x2cc   : > { %v3301_v26 = vpop.f32.mrf.mxu3 }
 0x2cd   : > { %7834 = vst [vmem:[#allocation46_spill] sm:$0xff] %v6691_v19  ;;  %v3025_v35 = vmax.f32 %v6691_v19, 0.0  ;;  %v3302_v6 = vadd.f32 %v6573_v22, %v3301_v26 }
 0x2ce   : > { %v2762_v51 = vpop.f32.mrf.mxu2 }
 0x2cf   : > { %v3596_v48 = vmax.f32 %v3302_v6, 0.0  ;;  %v3135_v37 = vpack.c.bf16 %v3025_v35, %v3024_v5 }
 0x2d0   : > { %v1887_v27 = vpop.f32.mrf.mxu1  ;;  %v3848_v8 = vpop.f32.mrf.mxu0 }
 0x2d1   : > { %3343 = vmatmul.bf16.gmra.mxu3 %v3135_v37  ;;  %v3715_v34 = vpack.c.bf16 %v3596_v48, %v3595_v30  ;;  %v1888_v38 = vadd.f32 %v6409_v31, %v1887_v27  ;;  %v3849_v23 = vadd.f32 %v6700_v57, %v3848_v8 }
 0x2d3   : > { %4759 = vmatmul.msk.bf16.gmra.mxu1 %vm846_vm0, %v6200_v59  ;;  %3887 = vmatmul.bf16.gmra.mxu0 %v3715_v34  ;;  %v6708_v6 = vadd.f32 %v2760_v7, %v1888_v38  ;;  %v4168_v48 = vadd.f32 %v3849_v23, %v6415_v63 }
 0x2d4   : > { %v3304_v53 = vpop.f32.mrf.mxu3  ;;  %5096 = vmatmul.msk.bf16.gmra.mxu2 %vm846_vm0, %v5229_v2 }
 0x2d5   : > { %v3305_v2 = vadd.f32 %v6573_v22, %v3304_v53  ;;  %v3026_v34 = vmax.f32 %v6708_v6, 0.0 }
 0x2d7   : > { %v2765_v26 = vpop.f32.mrf.mxu2  ;;  %v3597_v19 = vmax.f32 %v3305_v2, 0.0 }
 0x2d8   : > { %v1889_v5 = vpop.f32.mrf.mxu1  ;;  %v3850_v35 = vpop.f32.mrf.mxu0 }
 0x2d9   : > { %v1890_v30 = vadd.f32 %v6409_v31, %v1889_v5  ;;  %v3851_v59 = vadd.f32 %v6700_v57, %v3850_v35 }
 0x2db   : > { %v6716_v37 = vadd.f32 %v2762_v51, %v1890_v30  ;;  %v4169_v27 = vadd.f32 %v3851_v59, %v6421_v55  ;;  %v5230_v30 = vld [vmem:[%s5936_s21 + $0xe0] sm:$0xff] }
 0x2dc   : > { %v3306_v8 = vpop.f32.mrf.mxu3 }
 0x2dd   : > { %7835 = vst [vmem:[#allocation47_spill] sm:$0xff] %v6716_v37  ;;  %v3027_v7 = vmax.f32 %v6716_v37, 0.0  ;;  %v5298_v38 = vpack.c.bf16 %v4169_v27, %v4168_v48  ;;  %v3307_v5 = vadd.f32 %v6573_v22, %v3306_v8 }
 0x2df   : > { %5299 = vst [vmem:[%s6722_s27] sm:$0xff] %v5298_v38   ;;  %v3598_v63 = vmax.f32 %v3307_v5, 0.0  ;;  %v3136_v53 = vpack.c.bf16 %v3027_v7, %v3026_v34  ;;  %v2767_v23 = vpop.f32.mrf.mxu2 }
 0x2e0   : > { %v1892_v51 = vpop.f32.mrf.mxu1  ;;  %v3853_v35 = vpop.f32.mrf.mxu0 }
 0x2e1   : > { %3348 = vmatmul.bf16.gmra.mxu3 %v3136_v53  ;;  %v3716_v55 = vpack.c.bf16 %v3598_v63, %v3597_v19  ;;  %v1893_v48 = vadd.f32 %v6409_v31, %v1892_v51  ;;  %v3854_v2 = vadd.f32 %v6700_v57, %v3853_v35 }
 0x2e3   : > { %4760 = vmatmul.msk.bf16.gmra.mxu1 %vm846_vm0, %v6233_v60  ;;  %3892 = vmatmul.bf16.gmra.mxu0 %v3716_v55  ;;  %v6731_v7 = vadd.f32 %v2765_v26, %v1893_v48  ;;  %v4170_v60 = vadd.f32 %v3854_v2, %v6435_v3 }
 0x2e4   : > { %v3309_v59 = vpop.f32.mrf.mxu3  ;;  %5097 = vmatmul.msk.bf16.gmra.mxu2 %vm846_vm0, %v5230_v30 }
 0x2e5   : > { %v3310_v5 = vadd.f32 %v6573_v22, %v3309_v59  ;;  %v3028_v35 = vmax.f32 %v6731_v7, 0.0  ;;  %v5231_v59 = vld [vmem:[%s5936_s21 + $0xe8] sm:$0xff] }
 0x2e7   : > { %v2770_v27 = vpop.f32.mrf.mxu2  ;;  %v3599_v48 = vmax.f32 %v3310_v5, 0.0 }
 0x2e8   : > { %v1894_v8 = vpop.f32.mrf.mxu1  ;;  %v3855_v34 = vpop.f32.mrf.mxu0 }
 0x2e9   : > { %v1895_v38 = vadd.f32 %v6409_v31, %v1894_v8  ;;  %v3856_v19 = vadd.f32 %v6700_v57, %v3855_v34 }
 0x2eb   : > { %v6737_v63 = vadd.f32 %v2767_v23, %v1895_v38  ;;  %v4171_v53 = vadd.f32 %v3856_v19, %v6439_v62 }
 0x2ec   : > { %v3311_v51 = vpop.f32.mrf.mxu3 }
 0x2ed   : > { %v3029_v30 = vmax.f32 %v6737_v63, 0.0  ;;  %v5303_v26 = vpack.c.bf16 %v4171_v53, %v4170_v60  ;;  %v3312_v55 = vadd.f32 %v6573_v22, %v3311_v51 }
 0x2ef   : > { %5615 = vst [vmem:[%s6722_s27 + $0x8] sm:$0xff] %v5303_v26   ;;  %v3600_v8 = vmax.f32 %v3312_v55, 0.0  ;;  %v3137_v34 = vpack.c.bf16 %v3029_v30, %v3028_v35  ;;  %v2772_v3 = vpop.f32.mrf.mxu2 }
 0x2f0   : > { %v1897_v2 = vpop.f32.mrf.mxu1  ;;  %v3858_v37 = vpop.f32.mrf.mxu0 }
 0x2f1   : > { %3353 = vmatmul.bf16.gmra.mxu3 %v3137_v34  ;;  %v3717_v23 = vpack.c.bf16 %v3600_v8, %v3599_v48  ;;  %v1898_v38 = vadd.f32 %v6409_v31, %v1897_v2  ;;  %v3859_v19 = vadd.f32 %v6700_v57, %v3858_v37 }
 0x2f3   : > { %4761 = vmatmul.msk.bf16.gmra.mxu1 %vm846_vm0, %v6263_v52  ;;  %3897 = vmatmul.bf16.gmra.mxu0 %v3717_v23  ;;  %v6750_v51 = vadd.f32 %v2770_v27, %v1898_v38  ;;  %v4172_v52 = vadd.f32 %v3859_v19, %v6452_v36 }
 0x2f4   : > { %v3314_v62 = vpop.f32.mrf.mxu3  ;;  %5098 = vmatmul.msk.bf16.gmra.mxu2 %vm846_vm0, %v5231_v59 }
 0x2f5   : > { %v3315_v26 = vadd.f32 %v6573_v22, %v3314_v62  ;;  %v3030_v8 = vmax.f32 %v6750_v51, 0.0  ;;  %v5232_v62 = vld [vmem:[%s5936_s21 + $0xf0] sm:$0xff] }
 0x2f7   : > { %v2775_v60 = vpop.f32.mrf.mxu2 }
 0x2f8   : > { %v1899_v5 = vpop.f32.mrf.mxu1  ;;  %v3860_v53 = vpop.f32.mrf.mxu0 }
 0x2f9   : > { %v1900_v35 = vadd.f32 %v6409_v31, %v1899_v5  ;;  %v3861_v30 = vadd.f32 %v6700_v57, %v3860_v53  ;;  %v3601_v31 = vmax.f32 %v3315_v26, 0.0  ;;  %v6770_v5 = vld [vmem:[%s7778_s4] ss:$0 sm:$0xff] }
 0x2fb   : > { %v6756_v55 = vadd.f32 %v2772_v3, %v1900_v35  ;;  %v4173_v48 = vadd.f32 %v3861_v30, %v6456_v42 }
 0x2fc   : > { %v3316_v37 = vpop.f32.mrf.mxu3 }
 0x2fd   : > { %v3031_v34 = vmax.f32 %v6756_v55, 0.0  ;;  %v5308_v27 = vpack.c.bf16 %v4173_v48, %v4172_v52  ;;  %v3317_v2 = vadd.f32 %v6573_v22, %v3316_v37 }
 0x2ff   : > { %5616 = vst [vmem:[%s6722_s27 + $0x10] sm:$0xff] %v5308_v27   ;;  %v3602_v59 = vmax.f32 %v3317_v2, 0.0  ;;  %v3138_v23 = vpack.c.bf16 %v3031_v34, %v3030_v8  ;;  %v2777_v36 = vpop.f32.mrf.mxu2 }
 0x300   : > { %v1902_v38 = vpop.f32.mrf.mxu1  ;;  %v3863_v19 = vpop.f32.mrf.mxu0 }
 0x301   : > { %3358 = vmatmul.bf16.gmra.mxu3 %v3138_v23  ;;  %v3718_v3 = vpack.c.bf16 %v3602_v59, %v3601_v31  ;;  %v1903_v53 = vadd.f32 %v6770_v5, %v1902_v38  ;;  %v3864_v35 = vadd.f32 %v6700_v57, %v3863_v19 }
 0x303   : > { %4762 = vmatmul.msk.bf16.gmra.mxu1 %vm846_vm0, %v6301_v14  ;;  %3902 = vmatmul.bf16.gmra.mxu0 %v3718_v3  ;;  %v6774_v48 = vadd.f32 %v2775_v60, %v1903_v53  ;;  %v4174_v8 = vadd.f32 %v3864_v35, %v6470_v15 }
 0x304   : > { %v3319_v42 = vpop.f32.mrf.mxu3  ;;  %5099 = vmatmul.msk.bf16.gmra.mxu2 %vm846_vm0, %v5232_v62 }
 0x305   : > { %v3320_v34 = vadd.f32 %v6573_v22, %v3319_v42  ;;  %v3032_v59 = vmax.f32 %v6774_v48, 0.0  ;;  %v5233_v42 = vld [vmem:[%s5936_s21 + $0xf8] sm:$0xff] }
 0x307   : > { %v2780_v30 = vpop.f32.mrf.mxu2  ;;  %v3603_v19 = vmax.f32 %v3320_v34, 0.0 }
 0x308   : > { %v1904_v52 = vpop.f32.mrf.mxu1  ;;  %v3865_v26 = vpop.f32.mrf.mxu0 }
 0x309   : > { %v1905_v14 = vadd.f32 %v6770_v5, %v1904_v52  ;;  %v3866_v37 = vadd.f32 %v6700_v57, %v3865_v26 }
 0x30b   : > { %v6780_v27 = vadd.f32 %v2777_v36, %v1905_v14  ;;  %v4175_v2 = vadd.f32 %v3866_v37, %v6474_v12 }
 0x30c   : > { %v3321_v31 = vpop.f32.mrf.mxu3 }
 0x30d   : > { %v3033_v23 = vmax.f32 %v6780_v27, 0.0  ;;  %v5313_v60 = vpack.c.bf16 %v4175_v2, %v4174_v8  ;;  %v3322_v38 = vadd.f32 %v6573_v22, %v3321_v31 }
 0x30f   : > { %5617 = vst [vmem:[%s6722_s27 + $0x18] sm:$0xff] %v5313_v60   ;;  %v3604_v62 = vmax.f32 %v3322_v38, 0.0  ;;  %v3139_v3 = vpack.c.bf16 %v3033_v23, %v3032_v59  ;;  %v2782_v15 = vpop.f32.mrf.mxu2 }
 0x310   : > { %v1907_v53 = vpop.f32.mrf.mxu1  ;;  %v3868_v35 = vpop.f32.mrf.mxu0 }
 0x311   : > { %3363 = vmatmul.bf16.gmra.mxu3 %v3139_v3  ;;  %v3719_v36 = vpack.c.bf16 %v3604_v62, %v3603_v19  ;;  %v1908_v52 = vadd.f32 %v6770_v5, %v1907_v53  ;;  %v3869_v26 = vadd.f32 %v6700_v57, %v3868_v35 }
 0x313   : > { %4763 = vmatmul.msk.bf16.gmra.mxu1 %vm846_vm0, %v6331_v39  ;;  %3907 = vmatmul.bf16.gmra.mxu0 %v3719_v36  ;;  %v6793_v34 = vadd.f32 %v2780_v30, %v1908_v52  ;;  %v4176_v39 = vadd.f32 %v3869_v26, %v6487_v10 }
 0x314   : > { %v3324_v12 = vpop.f32.mrf.mxu3  ;;  %5100 = vmatmul.msk.bf16.gmra.mxu2 %vm846_vm0, %v5233_v42 }
 0x315   : > { %v3325_v59 = vadd.f32 %v6573_v22, %v3324_v12  ;;  %v3034_v19 = vmax.f32 %v6793_v34, 0.0  ;;  %v5234_v12 = vld [vmem:[%s5936_s21 + $0x100] sm:$0xff] }
 0x317   : > { %v2785_v14 = vpop.f32.mrf.mxu2  ;;  %v3605_v53 = vmax.f32 %v3325_v59, 0.0 }
 0x318   : > { %v1909_v37 = vpop.f32.mrf.mxu1  ;;  %v3870_v8 = vpop.f32.mrf.mxu0 }
 0x319   : > { %v1910_v2 = vadd.f32 %v6770_v5, %v1909_v37  ;;  %v3871_v31 = vadd.f32 %v6700_v57, %v3870_v8 }
 0x31b   : > { %v6799_v23 = vadd.f32 %v2782_v15, %v1910_v2  ;;  %v4177_v60 = vadd.f32 %v3871_v31, %v6491_v25 }
 0x31c   : > { %v3326_v38 = vpop.f32.mrf.mxu3 }
 0x31d   : > { %v3035_v62 = vmax.f32 %v6799_v23, 0.0  ;;  %v5318_v30 = vpack.c.bf16 %v4177_v60, %v4176_v39  ;;  %v3327_v3 = vadd.f32 %v6573_v22, %v3326_v38 }
 0x31f   : > { %5618 = vst [vmem:[%s6722_s27 + $0x20] sm:$0xff] %v5318_v30   ;;  %v3606_v35 = vmax.f32 %v3327_v3, 0.0  ;;  %v3140_v42 = vpack.c.bf16 %v3035_v62, %v3034_v19  ;;  %v2787_v10 = vpop.f32.mrf.mxu2 }
 0x320   : > { %v1912_v36 = vpop.f32.mrf.mxu1  ;;  %v3873_v52 = vpop.f32.mrf.mxu0 }
 0x321   : > { %3368 = vmatmul.bf16.gmra.mxu3 %v3140_v42  ;;  %v3720_v15 = vpack.c.bf16 %v3606_v35, %v3605_v53  ;;  %v1913_v26 = vadd.f32 %v6770_v5, %v1912_v36  ;;  %v3874_v37 = vadd.f32 %v6700_v57, %v3873_v52 }
 0x323   : > { %4764 = vmatmul.msk.bf16.gmra.mxu1 %vm846_vm0, %v6363_v1  ;;  %3912 = vmatmul.bf16.gmra.mxu0 %v3720_v15  ;;  %v6812_v39 = vadd.f32 %v2785_v14, %v1913_v26  ;;  %v4178_v1 = vadd.f32 %v3874_v37, %v6505_v58 }
 0x324   : > { %v3329_v25 = vpop.f32.mrf.mxu3  ;;  %5101 = vmatmul.msk.bf16.gmra.mxu2 %vm846_vm0, %v5234_v12 }
 0x325   : > { %v3330_v38 = vadd.f32 %v6573_v22, %v3329_v25  ;;  %v3036_v3 = vmax.f32 %v6812_v39, 0.0  ;;  %v5235_v25 = vld [vmem:[%s5936_s21 + $0x108] sm:$0xff] }
 0x327   : > { %v2790_v8 = vpop.f32.mrf.mxu2  ;;  %v3607_v42 = vmax.f32 %v3330_v38, 0.0 }
 0x328   : > { %v1914_v2 = vpop.f32.mrf.mxu1  ;;  %v3875_v31 = vpop.f32.mrf.mxu0 }
 0x329   : > { %v1915_v59 = vadd.f32 %v6770_v5, %v1914_v2  ;;  %v3876_v60 = vadd.f32 %v6700_v57, %v3875_v31 }
 0x32b   : > { %v6818_v19 = vadd.f32 %v2787_v10, %v1915_v59  ;;  %v4179_v62 = vadd.f32 %v3876_v60, %v6511_v24 }
 0x32c   : > { %v3331_v30 = vpop.f32.mrf.mxu3 }
 0x32d   : > { %v3037_v53 = vmax.f32 %v6818_v19, 0.0  ;;  %v5323_v14 = vpack.c.bf16 %v4179_v62, %v4178_v1  ;;  %v3332_v35 = vadd.f32 %v6573_v22, %v3331_v30 }
 0x32f   : > { %5619 = vst [vmem:[%s6722_s27 + $0x28] sm:$0xff] %v5323_v14   ;;  %v3608_v36 = vmax.f32 %v3332_v35, 0.0  ;;  %v3141_v52 = vpack.c.bf16 %v3037_v53, %v3036_v3  ;;  %v2792_v58 = vpop.f32.mrf.mxu2 }
 0x330   : > { %v1917_v12 = vpop.f32.mrf.mxu1  ;;  %v3878_v15 = vpop.f32.mrf.mxu0 }
 0x331   : > { %3373 = vmatmul.bf16.gmra.mxu3 %v3141_v52  ;;  %v3721_v10 = vpack.c.bf16 %v3608_v36, %v3607_v42  ;;  %v1918_v26 = vadd.f32 %v6770_v5, %v1917_v12  ;;  %v3879_v37 = vadd.f32 %v6700_v57, %v3878_v15 }
 0x333   : > { %4765 = vmatmul.msk.bf16.gmra.mxu1 %vm846_vm0, %v6382_v11  ;;  %3917 = vmatmul.bf16.gmra.mxu0 %v3721_v10  ;;  %v6831_v60 = vadd.f32 %v2790_v8, %v1918_v26  ;;  %v4180_v11 = vadd.f32 %v3879_v37, %v6522_v46  ;;  %v5236_v10 = vld [vmem:[%s5936_s21 + $0x110] sm:$0xff] }
 0x334   : > { %v3334_v24 = vpop.f32.mrf.mxu3  ;;  %5102 = vmatmul.msk.bf16.gmra.mxu2 %vm846_vm0, %v5235_v25 }
 0x335   : > { %v3335_v62 = vadd.f32 %v6573_v22, %v3334_v24  ;;  %v3038_v14 = vmax.f32 %v6831_v60, 0.0 }
 0x337   : > { %v2795_v2 = vpop.f32.mrf.mxu2  ;;  %v3609_v36 = vmax.f32 %v3335_v62, 0.0 }
 0x338   : > { %v1919_v31 = vpop.f32.mrf.mxu1  ;;  %v3880_v59 = vpop.f32.mrf.mxu0 }
 0x339   : > { %v1920_v1 = vadd.f32 %v6770_v5, %v1919_v31  ;;  %v3881_v38 = vadd.f32 %v6700_v57, %v3880_v59 }
 0x33b   : > { %v6837_v30 = vadd.f32 %v2792_v58, %v1920_v1  ;;  %v4181_v3 = vadd.f32 %v3881_v38, %v6526_v41 }
 0x33c   : > { %v3336_v53 = vpop.f32.mrf.mxu3 }
 0x33d   : > { %v3039_v35 = vmax.f32 %v6837_v30, 0.0  ;;  %v5328_v8 = vpack.c.bf16 %v4181_v3, %v4180_v11  ;;  %v3337_v42 = vadd.f32 %v6573_v22, %v3336_v53 }
 0x33f   : > { %5620 = vst [vmem:[%s6722_s27 + $0x30] sm:$0xff] %v5328_v8   ;;  %v3610_v52 = vmax.f32 %v3337_v42, 0.0  ;;  %v3142_v12 = vpack.c.bf16 %v3039_v35, %v3038_v14  ;;  %v2797_v46 = vpop.f32.mrf.mxu2 }
 0x340   : > { %v1922_v15 = vpop.f32.mrf.mxu1  ;;  %v3883_v25 = vpop.f32.mrf.mxu0 }
 0x341   : > { %3378 = vmatmul.bf16.gmra.mxu3 %v3142_v12  ;;  %v3722_v58 = vpack.c.bf16 %v3610_v52, %v3609_v36  ;;  %v1923_v24 = vadd.f32 %v6770_v5, %v1922_v15  ;;  %v3884_v26 = vadd.f32 %v6700_v57, %v3883_v25 }
 0x343   : > { %4766 = vmatmul.msk.bf16.gmra.mxu1 %vm846_vm0, %v6401_v50  ;;  %3922 = vmatmul.bf16.gmra.mxu0 %v3722_v58  ;;  %v6850_v1 = vadd.f32 %v2795_v2, %v1923_v24  ;;  %v4182_v50 = vadd.f32 %v3884_v26, %v6542_v29 }
 0x344   : > { %v3339_v41 = vpop.f32.mrf.mxu3  ;;  %5103 = vmatmul.msk.bf16.gmra.mxu2 %vm846_vm0, %v5236_v10  ;;  %v5237_v10 = vld [vmem:[%s5936_s21 + $0x118] sm:$0xff] }
 0x345   : > { %v3340_v62 = vadd.f32 %v6573_v22, %v3339_v41  ;;  %v3040_v35 = vmax.f32 %v6850_v1, 0.0 }
 0x347   : > { %v2800_v37 = vpop.f32.mrf.mxu2  ;;  %v3611_v36 = vmax.f32 %v3340_v62, 0.0 }
 0x348   : > { %v1924_v31 = vpop.f32.mrf.mxu1  ;;  %v3885_v59 = vpop.f32.mrf.mxu0 }
 0x349   : > { %v1925_v38 = vadd.f32 %v6770_v5, %v1924_v31  ;;  %v3886_v11 = vadd.f32 %v6700_v57, %v3885_v59 }
 0x34b   : > { %v6856_v3 = vadd.f32 %v2797_v46, %v1925_v38  ;;  %v4183_v53 = vadd.f32 %v3886_v11, %v6546_v16 }
 0x34c   : > { %v3341_v14 = vpop.f32.mrf.mxu3 }
 0x34d   : > { %v3041_v8 = vmax.f32 %v6856_v3, 0.0  ;;  %v5333_v2 = vpack.c.bf16 %v4183_v53, %v4182_v50  ;;  %v3342_v42 = vadd.f32 %v6573_v22, %v3341_v14 }
 0x34f   : > { %5621 = vst [vmem:[%s6722_s27 + $0x38] sm:$0xff] %v5333_v2   ;;  %v3612_v52 = vmax.f32 %v3342_v42, 0.0  ;;  %v3143_v12 = vpack.c.bf16 %v3041_v8, %v3040_v35  ;;  %v2802_v29 = vpop.f32.mrf.mxu2 }
 0x350   : > { %v1927_v15 = vpop.f32.mrf.mxu1  ;;  %v3888_v25 = vpop.f32.mrf.mxu0 }
 0x351   : > { %3383 = vmatmul.bf16.gmra.mxu3 %v3143_v12  ;;  %v3723_v46 = vpack.c.bf16 %v3612_v52, %v3611_v36  ;;  %v1928_v58 = vadd.f32 %v6770_v5, %v1927_v15  ;;  %v3889_v41 = vadd.f32 %v6700_v57, %v3888_v25  ;;  %v5238_v25 = vld [vmem:[%s5936_s21 + $0x120] sm:$0xff] }
 0x353   : > { %4767 = vmatmul.msk.bf16.gmra.mxu1 %vm846_vm0, %v6018_v43  ;;  %3927 = vmatmul.bf16.gmra.mxu0 %v3723_v46  ;;  %v6869_v59 = vadd.f32 %v2800_v37, %v1928_v58  ;;  %v4184_v43 = vadd.f32 %v3889_v41, %v6556_v47 }
 0x354   : > { %v3344_v16 = vpop.f32.mrf.mxu3  ;;  %5104 = vmatmul.msk.bf16.gmra.mxu2 %vm846_vm0, %v5237_v10 }
 0x355   : > { %v3345_v50 = vadd.f32 %v6573_v22, %v3344_v16  ;;  %v3042_v35 = vmax.f32 %v6869_v59, 0.0 }
 0x357   : > { %v2805_v24 = vpop.f32.mrf.mxu2  ;;  %v3613_v42 = vmax.f32 %v3345_v50, 0.0 }
 0x358   : > { %v1929_v26 = vpop.f32.mrf.mxu1  ;;  %v3890_v31 = vpop.f32.mrf.mxu0 }
 0x359   : > { %v1930_v38 = vadd.f32 %v6770_v5, %v1929_v26  ;;  %v3891_v11 = vadd.f32 %v6700_v57, %v3890_v31 }
 0x35b   : > { %v6875_v62 = vadd.f32 %v2802_v29, %v1930_v38  ;;  %v4185_v53 = vadd.f32 %v3891_v11, %v6559_v56 }
 0x35c   : > { %v3346_v14 = vpop.f32.mrf.mxu3 }
 0x35d   : > { %v3043_v8 = vmax.f32 %v6875_v62, 0.0  ;;  %v5338_v37 = vpack.c.bf16 %v4185_v53, %v4184_v43  ;;  %v3347_v2 = vadd.f32 %v6573_v22, %v3346_v14 }
 0x35f   : > { %5622 = vst [vmem:[%s6722_s27 + $0x40] sm:$0xff] %v5338_v37   ;;  %v3614_v36 = vmax.f32 %v3347_v2, 0.0  ;;  %v3144_v52 = vpack.c.bf16 %v3043_v8, %v3042_v35  ;;  %v2807_v47 = vpop.f32.mrf.mxu2 }
 0x360   : > { %v1932_v12 = vpop.f32.mrf.mxu1  ;;  %v3893_v15 = vpop.f32.mrf.mxu0 }
 0x361   : > { %3388 = vmatmul.bf16.gmra.mxu3 %v3144_v52  ;;  %v3724_v29 = vpack.c.bf16 %v3614_v36, %v3613_v42  ;;  %v1933_v10 = vadd.f32 %v6770_v5, %v1932_v12  ;;  %v3894_v46 = vadd.f32 %v6700_v57, %v3893_v15  ;;  %v5239_v12 = vld [vmem:[%s5936_s21 + $0x128] sm:$0xff] }
 0x363   : > { %4768 = vmatmul.msk.bf16.gmra.mxu1 %vm846_vm0, %v6034_v18  ;;  %3932 = vmatmul.bf16.gmra.mxu0 %v3724_v29  ;;  %v6888_v26 = vadd.f32 %v2805_v24, %v1933_v10  ;;  %v4186_v18 = vadd.f32 %v3894_v46, %v6575_v49 }
 0x364   : > { %v3349_v56 = vpop.f32.mrf.mxu3  ;;  %5105 = vmatmul.msk.bf16.gmra.mxu2 %vm846_vm0, %v5238_v25 }
 0x365   : > { %v3350_v11 = vadd.f32 %v6573_v22, %v3349_v56  ;;  %v3044_v14 = vmax.f32 %v6888_v26, 0.0 }
 0x367   : > { %v2810_v16 = vpop.f32.mrf.mxu2  ;;  %v3615_v37 = vmax.f32 %v3350_v11, 0.0 }
 0x368   : > { %v1934_v58 = vpop.f32.mrf.mxu1  ;;  %v3895_v41 = vpop.f32.mrf.mxu0 }
 0x369   : > { %v1935_v31 = vadd.f32 %v6770_v5, %v1934_v58  ;;  %v3896_v38 = vadd.f32 %v6700_v57, %v3895_v41  ;;  %v6915_v41 = vld [vmem:[%s7781_s7] ss:$0 sm:$0xff] }
 0x36b   : > { %v6894_v43 = vadd.f32 %v2807_v47, %v1935_v31  ;;  %v4187_v50 = vadd.f32 %v3896_v38, %v6579_v32 }
 0x36c   : > { %v3351_v53 = vpop.f32.mrf.mxu3 }
 0x36d   : > { %v3045_v35 = vmax.f32 %v6894_v43, 0.0  ;;  %v5343_v24 = vpack.c.bf16 %v4187_v50, %v4186_v18  ;;  %v3352_v8 = vadd.f32 %v6573_v22, %v3351_v53 }
 0x36f   : > { %5623 = vst [vmem:[%s6722_s27 + $0x48] sm:$0xff] %v5343_v24   ;;  %v3616_v2 = vmax.f32 %v3352_v8, 0.0  ;;  %v3145_v42 = vpack.c.bf16 %v3045_v35, %v3044_v14  ;;  %v2812_v49 = vpop.f32.mrf.mxu2 }
 0x370   : > { %v1937_v36 = vpop.f32.mrf.mxu1  ;;  %v3898_v52 = vpop.f32.mrf.mxu0 }
 0x371   : > { %3393 = vmatmul.bf16.gmra.mxu3 %v3145_v42  ;;  %v3725_v47 = vpack.c.bf16 %v3616_v2, %v3615_v37  ;;  %v1938_v15 = vadd.f32 %v6770_v5, %v1937_v36  ;;  %v3899_v22 = vadd.f32 %v6700_v57, %v3898_v52  ;;  %v5240_v42 = vld [vmem:[%s5936_s21 + $0x130] sm:$0xff] }
 0x373   : > { %4769 = vmatmul.msk.bf16.gmra.mxu1 %vm846_vm0, %v6059_v61  ;;  %3937 = vmatmul.bf16.gmra.mxu0 %v3725_v47  ;;  %v6907_v10 = vadd.f32 %v2810_v16, %v1938_v15  ;;  %v4188_v61 = vadd.f32 %v3899_v22, %v6589_v45 }
 0x374   : > { %v3354_v32 = vpop.f32.mrf.mxu3  ;;  %5106 = vmatmul.msk.bf16.gmra.mxu2 %vm846_vm0, %v5239_v12 }
 0x375   : > { %v3355_v31 = vadd.f32 %v6915_v41, %v3354_v32  ;;  %v3046_v11 = vmax.f32 %v6907_v10, 0.0 }
 0x377   : > { %v2815_v25 = vpop.f32.mrf.mxu2  ;;  %v3617_v14 = vmax.f32 %v3355_v31, 0.0 }
 0x378   : > { %v1939_v29 = vpop.f32.mrf.mxu1  ;;  %v3900_v56 = vpop.f32.mrf.mxu0 }
 0x379   : > { %v1940_v46 = vadd.f32 %v6770_v5, %v1939_v29  ;;  %v3901_v58 = vadd.f32 %v6700_v57, %v3900_v56 }
 0x37b   : > { %v6918_v38 = vadd.f32 %v2812_v49, %v1940_v46  ;;  %v4189_v18 = vadd.f32 %v3901_v58, %v6593_v44 }
 0x37c   : > { %v3356_v16 = vpop.f32.mrf.mxu3 }
 0x37d   : > { %v3047_v50 = vmax.f32 %v6918_v38, 0.0  ;;  %v5348_v53 = vpack.c.bf16 %v4189_v18, %v4188_v61  ;;  %v3357_v45 = vadd.f32 %v6915_v41, %v3356_v16 }
 0x37f   : > { %5624 = vst [vmem:[%s6722_s27 + $0x50] sm:$0xff] %v5348_v53   ;;  %v3618_v35 = vmax.f32 %v3357_v45, 0.0  ;;  %v3146_v24 = vpack.c.bf16 %v3047_v50, %v3046_v11  ;;  %v2817_v8 = vpop.f32.mrf.mxu2 }
 0x380   : > { %v1942_v37 = vpop.f32.mrf.mxu1  ;;  %v3903_v2 = vpop.f32.mrf.mxu0 }
 0x381   : > { %3398 = vmatmul.bf16.gmra.mxu3 %v3146_v24  ;;  %v3726_v49 = vpack.c.bf16 %v3618_v35, %v3617_v14  ;;  %v1943_v36 = vadd.f32 %v6770_v5, %v1942_v37  ;;  %v3904_v52 = vadd.f32 %v6700_v57, %v3903_v2  ;;  %v5241_v35 = vld [vmem:[%s5936_s21 + $0x138] sm:$0xff] }
 0x383   : > { %4770 = vmatmul.msk.bf16.gmra.mxu1 %vm846_vm0, %v6078_v40  ;;  %3942 = vmatmul.bf16.gmra.mxu0 %v3726_v49  ;;  %v6931_v15 = vadd.f32 %v2815_v25, %v1943_v36  ;;  %v4190_v40 = vadd.f32 %v3904_v52, %v6603_v17 }
 0x384   : > { %v3359_v44 = vpop.f32.mrf.mxu3  ;;  %5107 = vmatmul.msk.bf16.gmra.mxu2 %vm846_vm0, %v5240_v42 }
 0x385   : > { %v3360_v56 = vadd.f32 %v6915_v41, %v3359_v44  ;;  %v3048_v31 = vmax.f32 %v6931_v15, 0.0 }
 0x387   : > { %v2820_v12 = vpop.f32.mrf.mxu2  ;;  %v3619_v11 = vmax.f32 %v3360_v56, 0.0 }
 0x388   : > { %v1944_v47 = vpop.f32.mrf.mxu1  ;;  %v3905_v32 = vpop.f32.mrf.mxu0 }
 0x389   : > { %v1945_v22 = vadd.f32 %v6770_v5, %v1944_v47  ;;  %v3906_v29 = vadd.f32 %v6700_v57, %v3905_v32 }
 0x38b   : > { %v6937_v46 = vadd.f32 %v2817_v8, %v1945_v22  ;;  %v4191_v58 = vadd.f32 %v3906_v29, %v6607_v33 }
 0x38c   : > { %v3361_v61 = vpop.f32.mrf.mxu3 }
 0x38d   : > { %v3049_v18 = vmax.f32 %v6937_v46, 0.0  ;;  %v5353_v25 = vpack.c.bf16 %v4191_v58, %v4190_v40  ;;  %v3362_v16 = vadd.f32 %v6915_v41, %v3361_v61 }
 0x38f   : > { %5625 = vst [vmem:[%s6722_s27 + $0x58] sm:$0xff] %v5353_v25   ;;  %v3620_v50 = vmax.f32 %v3362_v16, 0.0  ;;  %v3147_v53 = vpack.c.bf16 %v3049_v18, %v3048_v31  ;;  %v2822_v17 = vpop.f32.mrf.mxu2 }
 0x390   : > { %v1947_v45 = vpop.f32.mrf.mxu1  ;;  %v3908_v14 = vpop.f32.mrf.mxu0 }
 0x391   : > { %3403 = vmatmul.bf16.gmra.mxu3 %v3147_v53  ;;  %v3727_v24 = vpack.c.bf16 %v3620_v50, %v3619_v11  ;;  %v1948_v8 = vadd.f32 %v6770_v5, %v1947_v45  ;;  %v3909_v37 = vadd.f32 %v6700_v57, %v3908_v14  ;;  %v5242_v11 = vld [vmem:[%s5936_s21 + $0x140] sm:$0xff] }
 0x392   : > { %v7836_v53 = vld [vmem:[#allocation5_spill] sm:$0xff] }
 0x393   : > { %4771 = vmatmul.msk.bf16.gmra.mxu1 %vm846_vm0, %v6094_v20  ;;  %3947 = vmatmul.bf16.gmra.mxu0 %v3727_v24  ;;  %v6950_v44 = vadd.f32 %v2820_v12, %v1948_v8  ;;  %v4192_v20 = vadd.f32 %v3909_v37, %v6617_v54 }
 0x394   : > { %v3364_v33 = vpop.f32.mrf.mxu3  ;;  %5108 = vmatmul.msk.bf16.gmra.mxu2 %vm846_vm0, %v5241_v35 }
 0x395   : > { %v3365_v47 = vadd.f32 %v6915_v41, %v3364_v33  ;;  %v3050_v40 = vmax.f32 %v6950_v44, 0.0 }
 0x397   : > { %v2825_v2 = vpop.f32.mrf.mxu2  ;;  %v3621_v61 = vmax.f32 %v3365_v47, 0.0 }
 0x398   : > { %v1949_v42 = vpop.f32.mrf.mxu1  ;;  %v3910_v49 = vpop.f32.mrf.mxu0 }
 0x399   : > { %v1950_v36 = vadd.f32 %v6770_v5, %v1949_v42  ;;  %v3911_v52 = vadd.f32 %v6700_v57, %v3910_v49 }
 0x39b   : > { %v6956_v32 = vadd.f32 %v2822_v17, %v1950_v36  ;;  %v4193_v22 = vadd.f32 %v3911_v52, %v6621_v13  ;;  %v7837_v52 = vld [vmem:[#allocation42_spill] sm:$0xff] }
 0x39c   : > { %v3366_v29 = vpop.f32.mrf.mxu3 }
 0x39d   : > { %v3051_v56 = vmax.f32 %v6956_v32, 0.0  ;;  %v5358_v12 = vpack.c.bf16 %v4193_v22, %v4192_v20  ;;  %v3367_v58 = vadd.f32 %v6915_v41, %v3366_v29 }
 0x39f   : > { %5626 = vst [vmem:[%s6722_s27 + $0x60] sm:$0xff] %v5358_v12   ;;  %v3622_v31 = vmax.f32 %v3367_v58, 0.0  ;;  %v3148_v18 = vpack.c.bf16 %v3051_v56, %v3050_v40  ;;  %v2827_v54 = vpop.f32.mrf.mxu2 }
 0x3a0   : > { %v1952_v25 = vpop.f32.mrf.mxu1  ;;  %v3913_v16 = vpop.f32.mrf.mxu0 }
 0x3a1   : > { %3408 = vmatmul.bf16.gmra.mxu3 %v3148_v18  ;;  %v3728_v50 = vpack.c.bf16 %v3622_v31, %v3621_v61  ;;  %v1953_v17 = vadd.f32 %v6770_v5, %v1952_v25  ;;  %v3914_v45 = vadd.f32 %v6700_v57, %v3913_v16  ;;  %v5243_v18 = vld [vmem:[%s5936_s21 + $0x148] sm:$0xff] }
 0x3a2   : > { %v7838_v25 = vld [vmem:[#allocation6_spill] sm:$0xff] }
 0x3a3   : > { %4772 = vmatmul.msk.bf16.gmra.mxu1 %vm846_vm0, %v7836_v53  ;;  %3952 = vmatmul.bf16.gmra.mxu0 %v3728_v50  ;;  %v6969_v33 = vadd.f32 %v2825_v2, %v1953_v17  ;;  %v4194_v42 = vadd.f32 %v3914_v45, %v6631_v28 }
 0x3a4   : > { %v3369_v13 = vpop.f32.mrf.mxu3  ;;  %5109 = vmatmul.msk.bf16.gmra.mxu2 %vm846_vm0, %v5242_v11 }
 0x3a5   : > { %v3370_v49 = vadd.f32 %v6915_v41, %v3369_v13  ;;  %v3052_v22 = vmax.f32 %v6969_v33, 0.0 }
 0x3a7   : > { %v2830_v14 = vpop.f32.mrf.mxu2  ;;  %v3623_v56 = vmax.f32 %v3370_v49, 0.0  ;;  %v7839_v49 = vld [vmem:[#allocation43_spill] sm:$0xff] }
 0x3a8   : > { %v1954_v35 = vpop.f32.mrf.mxu1  ;;  %v3915_v24 = vpop.f32.mrf.mxu0 }
 0x3a9   : > { %v1955_v8 = vadd.f32 %v6770_v5, %v1954_v35  ;;  %v3916_v37 = vadd.f32 %v6700_v57, %v3915_v24 }
 0x3ab   : > { %v6975_v36 = vadd.f32 %v2827_v54, %v1955_v8  ;;  %v4195_v20 = vadd.f32 %v3916_v37, %v7837_v52 }
 0x3ac   : > { %v3371_v47 = vpop.f32.mrf.mxu3 }
 0x3ad   : > { %v3053_v29 = vmax.f32 %v6975_v36, 0.0  ;;  %v5363_v2 = vpack.c.bf16 %v4195_v20, %v4194_v42  ;;  %v3372_v40 = vadd.f32 %v6915_v41, %v3371_v47 }
 0x3af   : > { %5627 = vst [vmem:[%s6722_s27 + $0x68] sm:$0xff] %v5363_v2   ;;  %v3624_v12 = vmax.f32 %v3372_v40, 0.0  ;;  %v3149_v58 = vpack.c.bf16 %v3053_v29, %v3052_v22  ;;  %v2832_v28 = vpop.f32.mrf.mxu2 }
 0x3b0   : > { %v1957_v61 = vpop.f32.mrf.mxu1  ;;  %v3918_v31 = vpop.f32.mrf.mxu0 }
 0x3b1   : > { %3413 = vmatmul.bf16.gmra.mxu3 %v3149_v58  ;;  %v3729_v54 = vpack.c.bf16 %v3624_v12, %v3623_v56  ;;  %v1958_v11 = vadd.f32 %v6770_v5, %v1957_v61  ;;  %v3919_v50 = vadd.f32 %v6700_v57, %v3918_v31  ;;  %v5244_v61 = vld [vmem:[%s5936_s21 + $0x150] sm:$0xff] }
 0x3b2   : > { %v7840_v31 = vld [vmem:[#allocation7_spill] sm:$0xff] }
 0x3b3   : > { %4773 = vmatmul.msk.bf16.gmra.mxu1 %vm846_vm0, %v7838_v25  ;;  %3957 = vmatmul.bf16.gmra.mxu0 %v3729_v54  ;;  %v6988_v45 = vadd.f32 %v2830_v14, %v1958_v11  ;;  %v4196_v8 = vadd.f32 %v3919_v50, %v6645_v0 }
 0x3b4   : > { %v3374_v16 = vpop.f32.mrf.mxu3  ;;  %5110 = vmatmul.msk.bf16.gmra.mxu2 %vm846_vm0, %v5243_v18 }
 0x3b5   : > { %v3375_v37 = vadd.f32 %v6915_v41, %v3374_v16  ;;  %v3054_v47 = vmax.f32 %v6988_v45, 0.0 }
 0x3b7   : > { %v2835_v53 = vpop.f32.mrf.mxu2  ;;  %v3625_v2 = vmax.f32 %v3375_v37, 0.0 }
 0x3b8   : > { %v1959_v13 = vpop.f32.mrf.mxu1  ;;  %v3920_v17 = vpop.f32.mrf.mxu0 }
 0x3b9   : > { %v1960_v35 = vadd.f32 %v6770_v5, %v1959_v13  ;;  %v3921_v24 = vadd.f32 %v6700_v57, %v3920_v17 }
 0x3bb   : > { %v6994_v42 = vadd.f32 %v2832_v28, %v1960_v35  ;;  %v4197_v52 = vadd.f32 %v3921_v24, %v7839_v49  ;;  %v7841_v49 = vld [vmem:[#allocation44_spill] sm:$0xff] }
 0x3bc   : > { %v3376_v20 = vpop.f32.mrf.mxu3 }
 0x3bd   : > { %v3055_v22 = vmax.f32 %v6994_v42, 0.0  ;;  %v5368_v14 = vpack.c.bf16 %v4197_v52, %v4196_v8  ;;  %v3377_v29 = vadd.f32 %v6915_v41, %v3376_v20 }
 0x3bf   : > { %5628 = vst [vmem:[%s6722_s27 + $0x70] sm:$0xff] %v5368_v14   ;;  %v3626_v40 = vmax.f32 %v3377_v29, 0.0  ;;  %v3150_v56 = vpack.c.bf16 %v3055_v22, %v3054_v47  ;;  %v2837_v0 = vpop.f32.mrf.mxu2 }
 0x3c0   : > { %v1962_v12 = vpop.f32.mrf.mxu1  ;;  %v3923_v58 = vpop.f32.mrf.mxu0 }
 0x3c1   : > { %3418 = vmatmul.bf16.gmra.mxu3 %v3150_v56  ;;  %v3730_v28 = vpack.c.bf16 %v3626_v40, %v3625_v2  ;;  %v1963_v54 = vadd.f32 %v6770_v5, %v1962_v12  ;;  %v3924_v25 = vadd.f32 %v6700_v57, %v3923_v58  ;;  %v5245_v58 = vld [vmem:[%s5936_s21 + $0x158] sm:$0xff] }
 0x3c3   : > { %4774 = vmatmul.msk.bf16.gmra.mxu1 %vm846_vm0, %v7840_v31  ;;  %3962 = vmatmul.bf16.gmra.mxu0 %v3730_v28  ;;  %v7007_v13 = vadd.f32 %v2835_v53, %v1963_v54  ;;  %v4198_v24 = vadd.f32 %v3924_v25, %v6659_v21 }
 0x3c4   : > { %v3379_v18 = vpop.f32.mrf.mxu3  ;;  %5111 = vmatmul.msk.bf16.gmra.mxu2 %vm846_vm0, %v5244_v61  ;;  %v7842_v61 = vld [vmem:[#allocation8_spill] sm:$0xff] }
 0x3c5   : > { %v3380_v8 = vadd.f32 %v6915_v41, %v3379_v18  ;;  %v3056_v47 = vmax.f32 %v7007_v13, 0.0 }
 0x3c7   : > { %v2840_v16 = vpop.f32.mrf.mxu2  ;;  %v3627_v29 = vmax.f32 %v3380_v8, 0.0 }
 0x3c8   : > { %v1964_v11 = vpop.f32.mrf.mxu1  ;;  %v3925_v50 = vpop.f32.mrf.mxu0 }
 0x3c9   : > { %v1965_v17 = vadd.f32 %v6770_v5, %v1964_v11  ;;  %v3926_v35 = vadd.f32 %v6700_v57, %v3925_v50 }
 0x3cb   : > { %v7013_v37 = vadd.f32 %v2837_v0, %v1965_v17  ;;  %v4199_v52 = vadd.f32 %v3926_v35, %v7841_v49 }
 0x3cc   : > { %v3381_v20 = vpop.f32.mrf.mxu3 }
 0x3cd   : > { %v3057_v22 = vmax.f32 %v7013_v37, 0.0  ;;  %v5373_v53 = vpack.c.bf16 %v4199_v52, %v4198_v24  ;;  %v3382_v14 = vadd.f32 %v6915_v41, %v3381_v20  ;;  %v7843_v52 = vld [vmem:[#allocation45_spill] sm:$0xff] }
 0x3cf   : > { %5629 = vst [vmem:[%s6722_s27 + $0x78] sm:$0xff] %v5373_v53   ;;  %v3628_v2 = vmax.f32 %v3382_v14, 0.0  ;;  %v3151_v40 = vpack.c.bf16 %v3057_v22, %v3056_v47  ;;  %v2842_v21 = vpop.f32.mrf.mxu2 }
 0x3d0   : > { %v1967_v56 = vpop.f32.mrf.mxu1  ;;  %v3928_v12 = vpop.f32.mrf.mxu0 }
 0x3d1   : > { %3423 = vmatmul.bf16.gmra.mxu3 %v3151_v40  ;;  %v3731_v0 = vpack.c.bf16 %v3628_v2, %v3627_v29  ;;  %v1968_v31 = vadd.f32 %v6770_v5, %v1967_v56  ;;  %v3929_v18 = vadd.f32 %v6700_v57, %v3928_v12  ;;  %v5246_v12 = vld [vmem:[%s5936_s21 + $0x160] sm:$0xff] }
 0x3d3   : > { %4775 = vmatmul.msk.bf16.gmra.mxu1 %vm846_vm0, %v7842_v61  ;;  %3967 = vmatmul.bf16.gmra.mxu0 %v3731_v0  ;;  %v7026_v50 = vadd.f32 %v2840_v16, %v1968_v31  ;;  %v4200_v24 = vadd.f32 %v3929_v18, %v6673_v9 }
 0x3d4   : > { %v3384_v28 = vpop.f32.mrf.mxu3  ;;  %5112 = vmatmul.msk.bf16.gmra.mxu2 %vm846_vm0, %v5245_v58  ;;  %v7844_v58 = vld [vmem:[#allocation9_spill] sm:$0xff] }
 0x3d5   : > { %v3385_v8 = vadd.f32 %v6915_v41, %v3384_v28  ;;  %v3058_v22 = vmax.f32 %v7026_v50, 0.0  ;;  %v7047_v28 = vld [vmem:[%s7783_s9] ss:$0 sm:$0xff] }
 0x3d7   : > { %v2845_v54 = vpop.f32.mrf.mxu2  ;;  %v3629_v29 = vmax.f32 %v3385_v8, 0.0 }
 0x3d8   : > { %v1969_v25 = vpop.f32.mrf.mxu1  ;;  %v3930_v11 = vpop.f32.mrf.mxu0 }
 0x3d9   : > { %v1970_v17 = vadd.f32 %v6770_v5, %v1969_v25  ;;  %v3931_v35 = vadd.f32 %v6700_v57, %v3930_v11 }
 0x3db   : > { %v7032_v49 = vadd.f32 %v2842_v21, %v1970_v17  ;;  %v4201_v20 = vadd.f32 %v3931_v35, %v7843_v52 }
 0x3dc   : > { %v3386_v47 = vpop.f32.mrf.mxu3 }
 0x3dd   : > { %v3059_v53 = vmax.f32 %v7032_v49, 0.0  ;;  %v5378_v16 = vpack.c.bf16 %v4201_v20, %v4200_v24  ;;  %v3387_v14 = vadd.f32 %v6915_v41, %v3386_v47  ;;  %v7845_v47 = vld [vmem:[#allocation46_spill] sm:$0xff] }
 0x3df   : > { %5630 = vst [vmem:[%s6722_s27 + $0x80] sm:$0xff] %v5378_v16   ;;  %v3630_v57 = vmax.f32 %v3387_v14, 0.0  ;;  %v3152_v2 = vpack.c.bf16 %v3059_v53, %v3058_v22  ;;  %v2847_v9 = vpop.f32.mrf.mxu2 }
 0x3e0   : > { %v1972_v40 = vpop.f32.mrf.mxu1  ;;  %v3933_v56 = vpop.f32.mrf.mxu0 }
 0x3e1   : > { %3428 = vmatmul.bf16.gmra.mxu3 %v3152_v2  ;;  %v3732_v21 = vpack.c.bf16 %v3630_v57, %v3629_v29  ;;  %v1973_v61 = vadd.f32 %v6770_v5, %v1972_v40  ;;  %v3934_v31 = vadd.f32 %v7047_v28, %v3933_v56 }
 0x3e3   : > { %4776 = vmatmul.msk.bf16.gmra.mxu1 %vm846_vm0, %v7844_v58  ;;  %3972 = vmatmul.bf16.gmra.mxu0 %v3732_v21  ;;  %v7050_v17 = vadd.f32 %v2845_v54, %v1973_v61  ;;  %v4202_v8 = vadd.f32 %v3934_v31, %v6687_v4  ;;  %v5247_v21 = vld [vmem:[%s5936_s21 + $0x168] sm:$0xff]  ;;  %v7846_v58 = vld [vmem:[#allocation11_spill] sm:$0xff] }
 0x3e4   : > { %v3389_v0 = vpop.f32.mrf.mxu3  ;;  %5113 = vmatmul.msk.bf16.gmra.mxu2 %vm846_vm0, %v5246_v12 }
 0x3e5   : > { %v3390_v52 = vadd.f32 %v6915_v41, %v3389_v0  ;;  %v3060_v16 = vmax.f32 %v7050_v17, 0.0 }
 0x3e7   : > { %v2850_v18 = vpop.f32.mrf.mxu2  ;;  %v3631_v57 = vmax.f32 %v3390_v52, 0.0 }
 0x3e8   : > { %v1974_v25 = vpop.f32.mrf.mxu1  ;;  %v3935_v11 = vpop.f32.mrf.mxu0 }
 0x3e9   : > { %v1975_v35 = vadd.f32 %v6770_v5, %v1974_v25  ;;  %v3936_v24 = vadd.f32 %v7047_v28, %v3935_v11 }
 0x3eb   : > { %v7056_v20 = vadd.f32 %v2847_v9, %v1975_v35  ;;  %v4203_v22 = vadd.f32 %v3936_v24, %v7845_v47 }
 0x3ec   : > { %v3391_v53 = vpop.f32.mrf.mxu3 }
 0x3ed   : > { %v3061_v14 = vmax.f32 %v7056_v20, 0.0  ;;  %v5383_v54 = vpack.c.bf16 %v4203_v22, %v4202_v8  ;;  %v3392_v29 = vadd.f32 %v6915_v41, %v3391_v53 }
 0x3ef   : > { %5631 = vst [vmem:[%s6722_s27 + $0x88] sm:$0xff] %v5383_v54   ;;  %v3632_v2 = vmax.f32 %v3392_v29, 0.0  ;;  %v3153_v40 = vpack.c.bf16 %v3061_v14, %v3060_v16  ;;  %v2852_v4 = vpop.f32.mrf.mxu2  ;;  %v7847_v16 = vld [vmem:[#allocation47_spill] sm:$0xff] }
 0x3f0   : > { %v1977_v56 = vpop.f32.mrf.mxu1  ;;  %v3938_v12 = vpop.f32.mrf.mxu0 }
 0x3f1   : > { %3433 = vmatmul.bf16.gmra.mxu3 %v3153_v40  ;;  %v3733_v9 = vpack.c.bf16 %v3632_v2, %v3631_v57  ;;  %v1978_v61 = vadd.f32 %v6770_v5, %v1977_v56  ;;  %v3939_v31 = vadd.f32 %v7047_v28, %v3938_v12 }
 0x3f3   : > { %4777 = vmatmul.msk.bf16.gmra.mxu1 %vm846_vm0, %v7846_v58  ;;  %3977 = vmatmul.bf16.gmra.mxu0 %v3733_v9  ;;  %v7069_v24 = vadd.f32 %v2850_v18, %v1978_v61  ;;  %v4204_v47 = vadd.f32 %v3939_v31, %v6708_v6  ;;  %v5248_v58 = vld [vmem:[%s5936_s21 + $0x170] sm:$0xff] }
 0x3f4   : > { %v3394_v0 = vpop.f32.mrf.mxu3  ;;  %5114 = vmatmul.msk.bf16.gmra.mxu2 %vm846_vm0, %v5247_v21 }
 0x3f5   : > { %v3395_v22 = vadd.f32 %v6915_v41, %v3394_v0  ;;  %v3062_v29 = vmax.f32 %v7069_v24, 0.0  ;;  %v7848_v0 = vld [vmem:[#allocation14_spill] sm:$0xff] }
 0x3f7   : > { %v2855_v25 = vpop.f32.mrf.mxu2  ;;  %v3633_v40 = vmax.f32 %v3395_v22, 0.0 }
 0x3f8   : > { %v1979_v11 = vpop.f32.mrf.mxu1  ;;  %v3940_v35 = vpop.f32.mrf.mxu0 }
 0x3f9   : > { %v1980_v8 = vadd.f32 %v6770_v5, %v1979_v11  ;;  %v3941_v52 = vadd.f32 %v7047_v28, %v3940_v35 }
 0x3fb   : > { %v7075_v53 = vadd.f32 %v2852_v4, %v1980_v8  ;;  %v4205_v14 = vadd.f32 %v3941_v52, %v7847_v16 }
 0x3fc   : > { %v3396_v54 = vpop.f32.mrf.mxu3 }
 0x3fd   : > { %v3063_v57 = vmax.f32 %v7075_v53, 0.0  ;;  %v5388_v18 = vpack.c.bf16 %v4205_v14, %v4204_v47  ;;  %v3397_v2 = vadd.f32 %v6915_v41, %v3396_v54 }
 0x3ff   : > { %5632 = vst [vmem:[%s6722_s27 + $0x90] sm:$0xff] %v5388_v18   ;;  %v3634_v56 = vmax.f32 %v3397_v2, 0.0  ;;  %v3154_v12 = vpack.c.bf16 %v3063_v57, %v3062_v29  ;;  %v2857_v6 = vpop.f32.mrf.mxu2 }
 0x400   : > { %v1982_v21 = vpop.f32.mrf.mxu1  ;;  %v3943_v9 = vpop.f32.mrf.mxu0 }
 0x401   : > { %3438 = vmatmul.bf16.gmra.mxu3 %v3154_v12  ;;  %v3734_v4 = vpack.c.bf16 %v3634_v56, %v3633_v40  ;;  %v1983_v31 = vadd.f32 %v6770_v5, %v1982_v21  ;;  %v3944_v11 = vadd.f32 %v7047_v28, %v3943_v9 }
 0x403   : > { %4778 = vmatmul.msk.bf16.gmra.mxu1 %vm846_vm0, %v7848_v0  ;;  %3982 = vmatmul.bf16.gmra.mxu0 %v3734_v4  ;;  %v7088_v47 = vadd.f32 %v2855_v25, %v1983_v31  ;;  %v4206_v14 = vadd.f32 %v3944_v11, %v6731_v7  ;;  %v5249_v4 = vld [vmem:[%s5936_s21 + $0x178] sm:$0xff]  ;;  %v7849_v0 = vld [vmem:[#allocation17_spill] sm:$0xff] }
 0x404   : > { %v3399_v61 = vpop.f32.mrf.mxu3  ;;  %5115 = vmatmul.msk.bf16.gmra.mxu2 %vm846_vm0, %v5248_v58 }
 0x405   : > { %v3400_v54 = vadd.f32 %v6915_v41, %v3399_v61  ;;  %v3064_v2 = vmax.f32 %v7088_v47, 0.0  ;;  %v7108_v61 = vld [vmem:[%s7778_s4] ss:$0 sm:$0xff] }
 0x407   : > { %v2860_v35 = vpop.f32.mrf.mxu2 }
 0x408   : > { %v1984_v8 = vpop.f32.mrf.mxu1  ;;  %v3945_v52 = vpop.f32.mrf.mxu0 }
 0x409   : > { %v1985_v22 = vadd.f32 %v6770_v5, %v1984_v8  ;;  %v3946_v16 = vadd.f32 %v7047_v28, %v3945_v52  ;;  %v3635_v5 = vmax.f32 %v3400_v54, 0.0 }
 0x40b   : > { %v7094_v29 = vadd.f32 %v2857_v6, %v1985_v22  ;;  %v4207_v57 = vadd.f32 %v3946_v16, %v6737_v63 }
 0x40c   : > { %v3401_v18 = vpop.f32.mrf.mxu3 }
 0x40d   : > { %v3065_v40 = vmax.f32 %v7094_v29, 0.0  ;;  %v5393_v25 = vpack.c.bf16 %v4207_v57, %v4206_v14  ;;  %v3402_v56 = vadd.f32 %v6915_v41, %v3401_v18 }
 0x40f   : > { %5633 = vst [vmem:[%s6722_s27 + $0x98] sm:$0xff] %v5393_v25   ;;  %v3636_v12 = vmax.f32 %v3402_v56, 0.0  ;;  %v3155_v21 = vpack.c.bf16 %v3065_v40, %v3064_v2  ;;  %v2862_v7 = vpop.f32.mrf.mxu2 }
 0x410   : > { %v1987_v9 = vpop.f32.mrf.mxu1  ;;  %v3948_v58 = vpop.f32.mrf.mxu0 }
 0x411   : > { %3443 = vmatmul.bf16.gmra.mxu3 %v3155_v21  ;;  %v3735_v6 = vpack.c.bf16 %v3636_v12, %v3635_v5  ;;  %v1988_v31 = vadd.f32 %v7108_v61, %v1987_v9  ;;  %v3949_v11 = vadd.f32 %v7047_v28, %v3948_v58 }
 0x413   : > { %4779 = vmatmul.msk.bf16.gmra.mxu1 %vm846_vm0, %v7849_v0  ;;  %3987 = vmatmul.bf16.gmra.mxu0 %v3735_v6  ;;  %v7112_v16 = vadd.f32 %v2860_v35, %v1988_v31  ;;  %v4208_v57 = vadd.f32 %v3949_v11, %v6750_v51  ;;  %v5250_v0 = vld [vmem:[%s5936_s21 + $0x180] sm:$0xff] }
 0x414   : > { %v3404_v63 = vpop.f32.mrf.mxu3  ;;  %5116 = vmatmul.msk.bf16.gmra.mxu2 %vm846_vm0, %v5249_v4 }
 0x415   : > { %v3405_v18 = vadd.f32 %v6915_v41, %v3404_v63  ;;  %v3066_v56 = vmax.f32 %v7112_v16, 0.0  ;;  %v7850_v63 = vld [vmem:[#allocation20_spill] sm:$0xff] }
 0x417   : > { %v2865_v8 = vpop.f32.mrf.mxu2  ;;  %v3637_v21 = vmax.f32 %v3405_v18, 0.0 }
 0x418   : > { %v1989_v52 = vpop.f32.mrf.mxu1  ;;  %v3950_v22 = vpop.f32.mrf.mxu0 }
 0x419   : > { %v1990_v14 = vadd.f32 %v7108_v61, %v1989_v52  ;;  %v3951_v54 = vadd.f32 %v7047_v28, %v3950_v22 }
 0x41b   : > { %v7118_v2 = vadd.f32 %v2862_v7, %v1990_v14  ;;  %v4209_v40 = vadd.f32 %v3951_v54, %v6756_v55 }
 0x41c   : > { %v3406_v25 = vpop.f32.mrf.mxu3 }
 0x41d   : > { %v3067_v5 = vmax.f32 %v7118_v2, 0.0  ;;  %v5398_v35 = vpack.c.bf16 %v4209_v40, %v4208_v57  ;;  %v3407_v12 = vadd.f32 %v6915_v41, %v3406_v25 }
 0x41f   : > { %5634 = vst [vmem:[%s6722_s27 + $0xa0] sm:$0xff] %v5398_v35   ;;  %v3638_v9 = vmax.f32 %v3407_v12, 0.0  ;;  %v3156_v58 = vpack.c.bf16 %v3067_v5, %v3066_v56  ;;  %v2867_v51 = vpop.f32.mrf.mxu2 }
 0x420   : > { %v1992_v4 = vpop.f32.mrf.mxu1  ;;  %v3953_v6 = vpop.f32.mrf.mxu0 }
 0x421   : > { %3448 = vmatmul.bf16.gmra.mxu3 %v3156_v58  ;;  %v3736_v7 = vpack.c.bf16 %v3638_v9, %v3637_v21  ;;  %v1993_v31 = vadd.f32 %v7108_v61, %v1992_v4  ;;  %v3954_v11 = vadd.f32 %v7047_v28, %v3953_v6 }
 0x423   : > { %4780 = vmatmul.msk.bf16.gmra.mxu1 %vm846_vm0, %v7850_v63  ;;  %3992 = vmatmul.bf16.gmra.mxu0 %v3736_v7  ;;  %v7131_v54 = vadd.f32 %v2865_v8, %v1993_v31  ;;  %v4210_v40 = vadd.f32 %v3954_v11, %v6774_v48  ;;  %v5251_v63 = vld [vmem:[%s5936_s21 + $0x188] sm:$0xff] }
 0x424   : > { %v3409_v55 = vpop.f32.mrf.mxu3  ;;  %5117 = vmatmul.msk.bf16.gmra.mxu2 %vm846_vm0, %v5250_v0 }
 0x425   : > { %v3410_v25 = vadd.f32 %v6915_v41, %v3409_v55  ;;  %v3068_v12 = vmax.f32 %v7131_v54, 0.0  ;;  %v7851_v55 = vld [vmem:[#allocation23_spill] sm:$0xff] }
 0x427   : > { %v2870_v52 = vpop.f32.mrf.mxu2  ;;  %v3639_v58 = vmax.f32 %v3410_v25, 0.0 }
 0x428   : > { %v1994_v22 = vpop.f32.mrf.mxu1  ;;  %v3955_v14 = vpop.f32.mrf.mxu0 }
 0x429   : > { %v1995_v57 = vadd.f32 %v7108_v61, %v1994_v22  ;;  %v3956_v18 = vadd.f32 %v7047_v28, %v3955_v14 }
 0x42b   : > { %v7137_v56 = vadd.f32 %v2867_v51, %v1995_v57  ;;  %v4211_v5 = vadd.f32 %v3956_v18, %v6780_v27 }
 0x42c   : > { %v3411_v35 = vpop.f32.mrf.mxu3 }
 0x42d   : > { %v3069_v21 = vmax.f32 %v7137_v56, 0.0  ;;  %v5403_v8 = vpack.c.bf16 %v4211_v5, %v4210_v40  ;;  %v3412_v9 = vadd.f32 %v6915_v41, %v3411_v35 }
 0x42f   : > { %5635 = vst [vmem:[%s6722_s27 + $0xa8] sm:$0xff] %v5403_v8   ;;  %v3640_v4 = vmax.f32 %v3412_v9, 0.0  ;;  %v3157_v6 = vpack.c.bf16 %v3069_v21, %v3068_v12  ;;  %v2872_v48 = vpop.f32.mrf.mxu2 }
 0x430   : > { %v1997_v0 = vpop.f32.mrf.mxu1  ;;  %v3958_v7 = vpop.f32.mrf.mxu0 }
 0x431   : > { %3453 = vmatmul.bf16.gmra.mxu3 %v3157_v6  ;;  %v3737_v51 = vpack.c.bf16 %v3640_v4, %v3639_v58  ;;  %v1998_v31 = vadd.f32 %v7108_v61, %v1997_v0  ;;  %v3959_v11 = vadd.f32 %v7047_v28, %v3958_v7 }
 0x433   : > { %4781 = vmatmul.msk.bf16.gmra.mxu1 %vm846_vm0, %v7851_v55  ;;  %3997 = vmatmul.bf16.gmra.mxu0 %v3737_v51  ;;  %v7150_v18 = vadd.f32 %v2870_v52, %v1998_v31  ;;  %v4212_v5 = vadd.f32 %v3959_v11, %v6793_v34  ;;  %v5252_v55 = vld [vmem:[%s5936_s21 + $0x190] sm:$0xff] }
 0x434   : > { %v3414_v27 = vpop.f32.mrf.mxu3  ;;  %5118 = vmatmul.msk.bf16.gmra.mxu2 %vm846_vm0, %v5251_v63 }
 0x435   : > { %v3415_v35 = vadd.f32 %v6915_v41, %v3414_v27  ;;  %v3070_v9 = vmax.f32 %v7150_v18, 0.0  ;;  %v7852_v27 = vld [vmem:[#allocation25_spill] sm:$0xff] }
 0x437   : > { %v2875_v22 = vpop.f32.mrf.mxu2  ;;  %v3641_v6 = vmax.f32 %v3415_v35, 0.0 }
 0x438   : > { %v1999_v14 = vpop.f32.mrf.mxu1  ;;  %v3960_v57 = vpop.f32.mrf.mxu0 }
 0x439   : > { %v2000_v40 = vadd.f32 %v7108_v61, %v1999_v14  ;;  %v3961_v25 = vadd.f32 %v7047_v28, %v3960_v57 }
 0x43b   : > { %v7156_v12 = vadd.f32 %v2872_v48, %v2000_v40  ;;  %v4213_v21 = vadd.f32 %v3961_v25, %v6799_v23 }
 0x43c   : > { %v3416_v8 = vpop.f32.mrf.mxu3 }
 0x43d   : > { %v3071_v58 = vmax.f32 %v7156_v12, 0.0  ;;  %v5408_v52 = vpack.c.bf16 %v4213_v21, %v4212_v5  ;;  %v3417_v4 = vadd.f32 %v6915_v41, %v3416_v8 }
 0x43f   : > { %5636 = vst [vmem:[%s6722_s27 + $0xb0] sm:$0xff] %v5408_v52   ;;  %v3642_v0 = vmax.f32 %v3417_v4, 0.0  ;;  %v3158_v7 = vpack.c.bf16 %v3071_v58, %v3070_v9  ;;  %v2877_v34 = vpop.f32.mrf.mxu2 }
 0x440   : > { %v2002_v63 = vpop.f32.mrf.mxu1  ;;  %v3963_v51 = vpop.f32.mrf.mxu0 }
 0x441   : > { %3458 = vmatmul.bf16.gmra.mxu3 %v3158_v7  ;;  %v3738_v48 = vpack.c.bf16 %v3642_v0, %v3641_v6  ;;  %v2003_v31 = vadd.f32 %v7108_v61, %v2002_v63  ;;  %v3964_v11 = vadd.f32 %v7047_v28, %v3963_v51 }
 0x443   : > { %4782 = vmatmul.msk.bf16.gmra.mxu1 %vm846_vm0, %v7852_v27  ;;  %4002 = vmatmul.bf16.gmra.mxu0 %v3738_v48  ;;  %v7169_v25 = vadd.f32 %v2875_v22, %v2003_v31  ;;  %v4214_v21 = vadd.f32 %v3964_v11, %v6812_v39  ;;  %v5253_v27 = vld [vmem:[%s5936_s21 + $0x198] sm:$0xff] }
 0x444   : > { %v3419_v23 = vpop.f32.mrf.mxu3  ;;  %5119 = vmatmul.msk.bf16.gmra.mxu2 %vm846_vm0, %v5252_v55 }
 0x445   : > { %v3420_v8 = vadd.f32 %v6915_v41, %v3419_v23  ;;  %v3072_v4 = vmax.f32 %v7169_v25, 0.0  ;;  %v7853_v23 = vld [vmem:[#allocation10_spill] sm:$0xff] }
 0x447   : > { %v2880_v14 = vpop.f32.mrf.mxu2  ;;  %v3643_v7 = vmax.f32 %v3420_v8, 0.0 }
 0x448   : > { %v2004_v57 = vpop.f32.mrf.mxu1  ;;  %v3965_v40 = vpop.f32.mrf.mxu0 }
 0x449   : > { %v2005_v5 = vadd.f32 %v7108_v61, %v2004_v57  ;;  %v3966_v35 = vadd.f32 %v7047_v28, %v3965_v40 }
 0x44b   : > { %v7175_v9 = vadd.f32 %v2877_v34, %v2005_v5  ;;  %v4215_v58 = vadd.f32 %v3966_v35, %v6818_v19 }
 0x44c   : > { %v3421_v52 = vpop.f32.mrf.mxu3 }
 0x44d   : > { %v3073_v6 = vmax.f32 %v7175_v9, 0.0  ;;  %v5413_v22 = vpack.c.bf16 %v4215_v58, %v4214_v21  ;;  %v3422_v0 = vadd.f32 %v6915_v41, %v3421_v52 }
 0x44f   : > { %5637 = vst [vmem:[%s6722_s27 + $0xb8] sm:$0xff] %v5413_v22   ;;  %v3644_v63 = vmax.f32 %v3422_v0, 0.0  ;;  %v3159_v51 = vpack.c.bf16 %v3073_v6, %v3072_v4  ;;  %v2882_v39 = vpop.f32.mrf.mxu2 }
 0x450   : > { %v2007_v55 = vpop.f32.mrf.mxu1  ;;  %v3968_v48 = vpop.f32.mrf.mxu0 }
 0x451   : > { %3463 = vmatmul.bf16.gmra.mxu3 %v3159_v51  ;;  %v3739_v34 = vpack.c.bf16 %v3644_v63, %v3643_v7  ;;  %v2008_v31 = vadd.f32 %v7108_v61, %v2007_v55  ;;  %v3969_v11 = vadd.f32 %v7047_v28, %v3968_v48 }
 0x453   : > { %4783 = vmatmul.msk.bf16.gmra.mxu1 %vm846_vm0, %v7853_v23  ;;  %4007 = vmatmul.bf16.gmra.mxu0 %v3739_v34  ;;  %v7188_v35 = vadd.f32 %v2880_v14, %v2008_v31  ;;  %v4216_v58 = vadd.f32 %v3969_v11, %v6831_v60  ;;  %v5254_v23 = vld [vmem:[%s5936_s21 + $0x1a0] sm:$0xff] }
 0x454   : > { %v3424_v19 = vpop.f32.mrf.mxu3  ;;  %5120 = vmatmul.msk.bf16.gmra.mxu2 %vm846_vm0, %v5253_v27 }
 0x455   : > { %v3425_v52 = vadd.f32 %v6915_v41, %v3424_v19  ;;  %v3074_v0 = vmax.f32 %v7188_v35, 0.0  ;;  %v7854_v19 = vld [vmem:[#allocation12_spill] sm:$0xff] }
 0x457   : > { %v2885_v57 = vpop.f32.mrf.mxu2  ;;  %v3645_v51 = vmax.f32 %v3425_v52, 0.0 }
 0x458   : > { %v2009_v40 = vpop.f32.mrf.mxu1  ;;  %v3970_v5 = vpop.f32.mrf.mxu0 }
 0x459   : > { %v2010_v21 = vadd.f32 %v7108_v61, %v2009_v40  ;;  %v3971_v8 = vadd.f32 %v7047_v28, %v3970_v5  ;;  %v7210_v5 = vld [vmem:[%s7776_s2] ss:$0 sm:$0xff] }
 0x45b   : > { %v7194_v4 = vadd.f32 %v2882_v39, %v2010_v21  ;;  %v4217_v6 = vadd.f32 %v3971_v8, %v6837_v30  ;;  %v7855_v21 = vld [vmem:[#allocation13_spill] sm:$0xff] }
 0x45c   : > { %v3426_v22 = vpop.f32.mrf.mxu3  ;;  %v1309_v8 = vadd.f32 %v7210_v5, %v7855_v21 }
 0x45d   : > { %v3075_v7 = vmax.f32 %v7194_v4, 0.0  ;;  %v5418_v14 = vpack.c.bf16 %v4217_v6, %v4216_v58  ;;  %v3427_v63 = vadd.f32 %v6915_v41, %v3426_v22  ;;  %v7856_v58 = vld [vmem:[#allocation15_spill] sm:$0xff] }
 0x45e   : > { %v1311_v52 = vadd.f32 %v7210_v5, %v7856_v58 }
 0x45f   : > { %5638 = vst [vmem:[%s6722_s27 + $0xc0] sm:$0xff] %v5418_v14   ;;  %v3646_v55 = vmax.f32 %v3427_v63, 0.0  ;;  %v3160_v48 = vpack.c.bf16 %v3075_v7, %v3074_v0  ;;  %v2887_v60 = vpop.f32.mrf.mxu2 }
 0x460   : > { %v2012_v27 = vpop.f32.mrf.mxu1  ;;  %v3973_v34 = vpop.f32.mrf.mxu0 }
 0x461   : > { %3468 = vmatmul.bf16.gmra.mxu3 %v3160_v48  ;;  %v3740_v39 = vpack.c.bf16 %v3646_v55, %v3645_v51  ;;  %v2013_v31 = vadd.f32 %v7108_v61, %v2012_v27  ;;  %v3974_v11 = vadd.f32 %v7047_v28, %v3973_v34  ;;  %v1472_v27 = vmax.f32 %v1309_v8, 0.0 }
 0x462   : > { %v1473_v34 = vmax.f32 %v1311_v52, 0.0 }
 0x463   : > { %4784 = vmatmul.msk.bf16.gmra.mxu1 %vm846_vm0, %v7854_v19  ;;  %4012 = vmatmul.bf16.gmra.mxu0 %v3740_v39  ;;  %v7216_v0 = vadd.f32 %v2885_v57, %v2013_v31  ;;  %v4218_v63 = vadd.f32 %v3974_v11, %v6850_v1 }
 0x464   : > { %v3429_v30 = vpop.f32.mrf.mxu3  ;;  %5121 = vmatmul.msk.bf16.gmra.mxu2 %vm846_vm0, %v5254_v23 }
 0x465   : > { %v3430_v51 = vadd.f32 %v6915_v41, %v3429_v30  ;;  %v3076_v39 = vmax.f32 %v7216_v0, 0.0 }
 0x467   : > { %v2890_v40 = vpop.f32.mrf.mxu2  ;;  %v3647_v21 = vmax.f32 %v3430_v51, 0.0 }
 0x468   : > { %v2014_v6 = vpop.f32.mrf.mxu1  ;;  %v3975_v22 = vpop.f32.mrf.mxu0 }
 0x469   : > { %v2015_v7 = vadd.f32 %v7108_v61, %v2014_v6  ;;  %v3976_v14 = vadd.f32 %v7047_v28, %v3975_v22  ;;  %v5255_v6 = vld [vmem:[%s5936_s21 + $0x1a8] sm:$0xff]  ;;  %v1548_v22 = vpack.c.bf16 %v1473_v34, %v1472_v27 }
 0x46b   : > { %v7222_v55 = vadd.f32 %v2887_v60, %v2015_v7  ;;  %v4219_v48 = vadd.f32 %v3976_v14, %v6856_v3 }
 0x46c   : > { %v3431_v23 = vpop.f32.mrf.mxu3 }
 0x46d   : > { %v3077_v57 = vmax.f32 %v7222_v55, 0.0  ;;  %v5423_v19 = vpack.c.bf16 %v4219_v48, %v4218_v63  ;;  %v3432_v31 = vadd.f32 %v6915_v41, %v3431_v23  ;;  %v7857_v63 = vld [vmem:[#allocation16_spill] sm:$0xff]  ;;  %v7858_v48 = vld [vmem:[#allocation18_spill] sm:$0xff] }
 0x46e   : > { %v1314_v51 = vadd.f32 %v7210_v5, %v7857_v63  ;;  %v1316_v23 = vadd.f32 %v7210_v5, %v7858_v48 }
 0x46f   : > { %5639 = vst [vmem:[%s6722_s27 + $0xc8] sm:$0xff] %v5423_v19   ;;  %v3648_v1 = vmax.f32 %v3432_v31, 0.0  ;;  %v3161_v11 = vpack.c.bf16 %v3077_v57, %v3076_v39  ;;  %v2892_v30 = vpop.f32.mrf.mxu2 }
 0x470   : > { %v2017_v60 = vpop.f32.mrf.mxu1  ;;  %v3978_v58 = vpop.f32.mrf.mxu0 }
 0x471   : > { %3473 = vmatmul.bf16.gmra.mxu3 %v3161_v11  ;;  %v3741_v3 = vpack.c.bf16 %v3648_v1, %v3647_v21  ;;  %v2018_v52 = vadd.f32 %v7108_v61, %v2017_v60  ;;  %v3979_v7 = vadd.f32 %v7047_v28, %v3978_v58  ;;  %v1474_v60 = vmax.f32 %v1314_v51, 0.0  ;;  %v5256_v51 = vld [vmem:[%s5936_s21 + $0x1b0] sm:$0xff] }
 0x472   : > { %v1475_v58 = vmax.f32 %v1316_v23, 0.0 }
 0x473   : > { %4785 = vmatmul.msk.bf16.gmra.mxu1 %vm846_vm0, %v1548_v22  ;;  %4017 = vmatmul.bf16.gmra.mxu0 %v3741_v3  ;;  %v7238_v39 = vadd.f32 %v2890_v40, %v2018_v52  ;;  %v4220_v31 = vadd.f32 %v3979_v7, %v6869_v59  ;;  %v7252_v52 = vld [vmem:[%s7781_s7] ss:$0 sm:$0xff] }
 0x474   : > { %v3434_v8 = vpop.f32.mrf.mxu3  ;;  %5122 = vmatmul.msk.bf16.gmra.mxu2 %vm846_vm0, %v5255_v6  ;;  %v1549_v48 = vpack.c.bf16 %v1475_v58, %v1474_v60 }
 0x475   : > { %v3435_v21 = vadd.f32 %v6915_v41, %v3434_v8  ;;  %v3078_v40 = vmax.f32 %v7238_v39, 0.0 }
 0x477   : > { %v2895_v14 = vpop.f32.mrf.mxu2  ;;  %v3649_v41 = vmax.f32 %v3435_v21, 0.0 }
 0x478   : > { %v2019_v27 = vpop.f32.mrf.mxu1  ;;  %v3980_v34 = vpop.f32.mrf.mxu0 }
 0x479   : > { %v2020_v57 = vadd.f32 %v7108_v61, %v2019_v27  ;;  %v3981_v19 = vadd.f32 %v7047_v28, %v3980_v34 }
 0x47b   : > { %v7244_v1 = vadd.f32 %v2892_v30, %v2020_v57  ;;  %v4221_v11 = vadd.f32 %v3981_v19, %v6875_v62 }
 0x47c   : > { %v3436_v6 = vpop.f32.mrf.mxu3 }
 0x47d   : > { %v3079_v22 = vmax.f32 %v7244_v1, 0.0  ;;  %v5428_v3 = vpack.c.bf16 %v4221_v11, %v4220_v31  ;;  %v3437_v59 = vadd.f32 %v7252_v52, %v3436_v6  ;;  %v7859_v31 = vld [vmem:[#allocation19_spill] sm:$0xff]  ;;  %v7860_v11 = vld [vmem:[#allocation21_spill] sm:$0xff] }
 0x47e   : > { %v1319_v21 = vadd.f32 %v7210_v5, %v7859_v31  ;;  %v1321_v6 = vadd.f32 %v7210_v5, %v7860_v11 }
 0x47f   : > { %5640 = vst [vmem:[%s6722_s27 + $0xd0] sm:$0xff] %v5428_v3   ;;  %v3650_v30 = vmax.f32 %v3437_v59, 0.0  ;;  %v3162_v62 = vpack.c.bf16 %v3079_v22, %v3078_v40  ;;  %v2897_v8 = vpop.f32.mrf.mxu2 }
 0x480   : > { %v2022_v7 = vpop.f32.mrf.mxu1  ;;  %v3983_v63 = vpop.f32.mrf.mxu0 }
 0x481   : > { %3478 = vmatmul.bf16.gmra.mxu3 %v3162_v62  ;;  %v3742_v23 = vpack.c.bf16 %v3650_v30, %v3649_v41  ;;  %v2023_v34 = vadd.f32 %v7108_v61, %v2022_v7  ;;  %v3984_v57 = vadd.f32 %v7047_v28, %v3983_v63  ;;  %v1476_v7 = vmax.f32 %v1319_v21, 0.0 }
 0x482   : > { %v1477_v63 = vmax.f32 %v1321_v6, 0.0 }
 0x483   : > { %4786 = vmatmul.msk.bf16.gmra.mxu1 %vm846_vm0, %v1549_v48  ;;  %4022 = vmatmul.bf16.gmra.mxu0 %v3742_v23  ;;  %v7265_v40 = vadd.f32 %v2895_v14, %v2023_v34  ;;  %v4222_v59 = vadd.f32 %v3984_v57, %v6888_v26 }
 0x484   : > { %v3439_v27 = vpop.f32.mrf.mxu3  ;;  %5123 = vmatmul.msk.bf16.gmra.mxu2 %vm846_vm0, %v5256_v51 }
 0x485   : > { %v3440_v41 = vadd.f32 %v7252_v52, %v3439_v27  ;;  %v3080_v48 = vmax.f32 %v7265_v40, 0.0 }
 0x487   : > { %v2900_v19 = vpop.f32.mrf.mxu2  ;;  %v3651_v31 = vmax.f32 %v3440_v41, 0.0 }
 0x488   : > { %v2024_v60 = vpop.f32.mrf.mxu1  ;;  %v3985_v58 = vpop.f32.mrf.mxu0 }
 0x489   : > { %v2025_v22 = vadd.f32 %v7108_v61, %v2024_v60  ;;  %v3986_v3 = vadd.f32 %v7047_v28, %v3985_v58  ;;  %v5257_v60 = vld [vmem:[%s5936_s21 + $0x1b8] sm:$0xff]  ;;  %v1550_v58 = vpack.c.bf16 %v1477_v63, %v1476_v7 }
 0x48b   : > { %v7271_v30 = vadd.f32 %v2897_v8, %v2025_v22  ;;  %v4223_v62 = vadd.f32 %v3986_v3, %v6894_v43 }
 0x48c   : > { %v3441_v51 = vpop.f32.mrf.mxu3 }
 0x48d   : > { %v3081_v14 = vmax.f32 %v7271_v30, 0.0  ;;  %v5433_v23 = vpack.c.bf16 %v4223_v62, %v4222_v59  ;;  %v3442_v34 = vadd.f32 %v7252_v52, %v3441_v51  ;;  %v7861_v59 = vld [vmem:[#allocation22_spill] sm:$0xff]  ;;  %v7862_v62 = vld [vmem:[#allocation24_spill] sm:$0xff] }
 0x48e   : > { %v1324_v41 = vadd.f32 %v7210_v5, %v7861_v59  ;;  %v1326_v51 = vadd.f32 %v7210_v5, %v7862_v62 }
 0x48f   : > { %5641 = vst [vmem:[%s6722_s27 + $0xd8] sm:$0xff] %v5433_v23   ;;  %v3652_v26 = vmax.f32 %v3442_v34, 0.0  ;;  %v3163_v57 = vpack.c.bf16 %v3081_v14, %v3080_v48  ;;  %v2902_v27 = vpop.f32.mrf.mxu2 }
 0x490   : > { %v2027_v8 = vpop.f32.mrf.mxu1  ;;  %v3988_v11 = vpop.f32.mrf.mxu0 }
 0x491   : > { %3483 = vmatmul.bf16.gmra.mxu3 %v3163_v57  ;;  %v3743_v43 = vpack.c.bf16 %v3652_v26, %v3651_v31  ;;  %v2028_v6 = vadd.f32 %v7108_v61, %v2027_v8  ;;  %v3989_v22 = vadd.f32 %v7047_v28, %v3988_v11  ;;  %v1478_v8 = vmax.f32 %v1324_v41, 0.0 }
 0x492   : > { %v1479_v11 = vmax.f32 %v1326_v51, 0.0 }
 0x493   : > { %4787 = vmatmul.msk.bf16.gmra.mxu1 %vm846_vm0, %v1550_v58  ;;  %4027 = vmatmul.bf16.gmra.mxu0 %v3743_v43  ;;  %v7287_v48 = vadd.f32 %v2900_v19, %v2028_v6  ;;  %v4224_v34 = vadd.f32 %v3989_v22, %v6907_v10 }
 0x494   : > { %v3444_v21 = vpop.f32.mrf.mxu3  ;;  %5124 = vmatmul.msk.bf16.gmra.mxu2 %vm846_vm0, %v5257_v60 }
 0x495   : > { %v3445_v31 = vadd.f32 %v7252_v52, %v3444_v21  ;;  %v3082_v58 = vmax.f32 %v7287_v48, 0.0 }
 0x497   : > { %v2905_v3 = vpop.f32.mrf.mxu2  ;;  %v3653_v59 = vmax.f32 %v3445_v31, 0.0 }
 0x498   : > { %v2029_v7 = vpop.f32.mrf.mxu1  ;;  %v3990_v63 = vpop.f32.mrf.mxu0 }
 0x499   : > { %v2030_v14 = vadd.f32 %v7108_v61, %v2029_v7  ;;  %v3991_v23 = vadd.f32 %v7047_v28, %v3990_v63  ;;  %v5258_v7 = vld [vmem:[%s5936_s21 + $0x1c0] sm:$0xff]  ;;  %v1551_v63 = vpack.c.bf16 %v1479_v11, %v1478_v8 }
 0x49b   : > { %v7293_v26 = vadd.f32 %v2902_v27, %v2030_v14  ;;  %v4225_v57 = vadd.f32 %v3991_v23, %v6918_v38 }
 0x49c   : > { %v3446_v60 = vpop.f32.mrf.mxu3 }
 0x49d   : > { %v3083_v19 = vmax.f32 %v7293_v26, 0.0  ;;  %v5438_v43 = vpack.c.bf16 %v4225_v57, %v4224_v34  ;;  %v3447_v6 = vadd.f32 %v7252_v52, %v3446_v60  ;;  %v7863_v34 = vld [vmem:[#allocation26_spill] sm:$0xff]  ;;  %v7864_v57 = vld [vmem:[#allocation27_spill] sm:$0xff] }
 0x49e   : > { %v1329_v31 = vadd.f32 %v7210_v5, %v7863_v34  ;;  %v1331_v60 = vadd.f32 %v7210_v5, %v7864_v57 }
 0x49f   : > { %5642 = vst [vmem:[%s6722_s27 + $0xe0] sm:$0xff] %v5438_v43   ;;  %v3654_v10 = vmax.f32 %v3447_v6, 0.0  ;;  %v3164_v22 = vpack.c.bf16 %v3083_v19, %v3082_v58  ;;  %v2907_v21 = vpop.f32.mrf.mxu2 }
 0x4a0   : > { %v2032_v27 = vpop.f32.mrf.mxu1  ;;  %v3993_v62 = vpop.f32.mrf.mxu0 }
 0x4a1   : > { %3488 = vmatmul.bf16.gmra.mxu3 %v3164_v22  ;;  %v3744_v38 = vpack.c.bf16 %v3654_v10, %v3653_v59  ;;  %v2033_v51 = vadd.f32 %v7108_v61, %v2032_v27  ;;  %v3994_v14 = vadd.f32 %v7047_v28, %v3993_v62  ;;  %v1480_v27 = vmax.f32 %v1329_v31, 0.0 }
 0x4a2   : > { %v1481_v62 = vmax.f32 %v1331_v60, 0.0 }
 0x4a3   : > { %4788 = vmatmul.msk.bf16.gmra.mxu1 %vm846_vm0, %v1551_v63  ;;  %4032 = vmatmul.bf16.gmra.mxu0 %v3744_v38  ;;  %v7309_v58 = vadd.f32 %v2905_v3, %v2033_v51  ;;  %v4226_v6 = vadd.f32 %v3994_v14, %v6931_v15 }
 0x4a4   : > { %v3449_v41 = vpop.f32.mrf.mxu3  ;;  %5125 = vmatmul.msk.bf16.gmra.mxu2 %vm846_vm0, %v5258_v7 }
 0x4a5   : > { %v3450_v59 = vadd.f32 %v7252_v52, %v3449_v41  ;;  %v3084_v63 = vmax.f32 %v7309_v58, 0.0 }
 0x4a7   : > { %v2910_v23 = vpop.f32.mrf.mxu2  ;;  %v3655_v34 = vmax.f32 %v3450_v59, 0.0 }
 0x4a8   : > { %v2034_v8 = vpop.f32.mrf.mxu1  ;;  %v3995_v11 = vpop.f32.mrf.mxu0 }
 0x4a9   : > { %v2035_v19 = vadd.f32 %v7108_v61, %v2034_v8  ;;  %v3996_v43 = vadd.f32 %v7047_v28, %v3995_v11  ;;  %v5259_v8 = vld [vmem:[%s5936_s21 + $0x1c8] sm:$0xff]  ;;  %v1552_v11 = vpack.c.bf16 %v1481_v62, %v1480_v27 }
 0x4ab   : > { %v7315_v10 = vadd.f32 %v2907_v21, %v2035_v19  ;;  %v4227_v22 = vadd.f32 %v3996_v43, %v6937_v46 }
 0x4ac   : > { %v3451_v7 = vpop.f32.mrf.mxu3 }
 0x4ad   : > { %v3085_v3 = vmax.f32 %v7315_v10, 0.0  ;;  %v5443_v38 = vpack.c.bf16 %v4227_v22, %v4226_v6  ;;  %v3452_v51 = vadd.f32 %v7252_v52, %v3451_v7  ;;  %v7865_v6 = vld [vmem:[#allocation28_spill] sm:$0xff]  ;;  %v7866_v22 = vld [vmem:[#allocation29_spill] sm:$0xff] }
 0x4ae   : > { %v1334_v59 = vadd.f32 %v7210_v5, %v7865_v6  ;;  %v1336_v7 = vadd.f32 %v7210_v5, %v7866_v22 }
 0x4af   : > { %5643 = vst [vmem:[%s6722_s27 + $0xe8] sm:$0xff] %v5443_v38   ;;  %v3656_v15 = vmax.f32 %v3452_v51, 0.0  ;;  %v3165_v14 = vpack.c.bf16 %v3085_v3, %v3084_v63  ;;  %v2912_v41 = vpop.f32.mrf.mxu2 }
 0x4b0   : > { %v2037_v21 = vpop.f32.mrf.mxu1  ;;  %v3998_v57 = vpop.f32.mrf.mxu0 }
 0x4b1   : > { %3493 = vmatmul.bf16.gmra.mxu3 %v3165_v14  ;;  %v3745_v46 = vpack.c.bf16 %v3656_v15, %v3655_v34  ;;  %v2038_v60 = vadd.f32 %v7108_v61, %v2037_v21  ;;  %v3999_v19 = vadd.f32 %v7047_v28, %v3998_v57  ;;  %v1482_v21 = vmax.f32 %v1334_v59, 0.0 }
 0x4b2   : > { %v1483_v57 = vmax.f32 %v1336_v7, 0.0 }
 0x4b3   : > { %4789 = vmatmul.msk.bf16.gmra.mxu1 %vm846_vm0, %v1552_v11  ;;  %4037 = vmatmul.bf16.gmra.mxu0 %v3745_v46  ;;  %v7331_v63 = vadd.f32 %v2910_v23, %v2038_v60  ;;  %v4228_v51 = vadd.f32 %v3999_v19, %v6950_v44 }
 0x4b4   : > { %v3454_v31 = vpop.f32.mrf.mxu3  ;;  %5126 = vmatmul.msk.bf16.gmra.mxu2 %vm846_vm0, %v5259_v8 }
 0x4b5   : > { %v3455_v34 = vadd.f32 %v7252_v52, %v3454_v31  ;;  %v3086_v11 = vmax.f32 %v7331_v63, 0.0 }
 0x4b7   : > { %v2915_v43 = vpop.f32.mrf.mxu2  ;;  %v3657_v6 = vmax.f32 %v3455_v34, 0.0 }
 0x4b8   : > { %v2039_v27 = vpop.f32.mrf.mxu1  ;;  %v4000_v62 = vpop.f32.mrf.mxu0 }
 0x4b9   : > { %v2040_v3 = vadd.f32 %v7108_v61, %v2039_v27  ;;  %v4001_v38 = vadd.f32 %v7047_v28, %v4000_v62  ;;  %v5260_v27 = vld [vmem:[%s5936_s21 + $0x1d0] sm:$0xff]  ;;  %v1553_v62 = vpack.c.bf16 %v1483_v57, %v1482_v21 }
 0x4bb   : > { %v7337_v15 = vadd.f32 %v2912_v41, %v2040_v3  ;;  %v4229_v14 = vadd.f32 %v4001_v38, %v6956_v32 }
 0x4bc   : > { %v3456_v8 = vpop.f32.mrf.mxu3 }
 0x4bd   : > { %v3087_v23 = vmax.f32 %v7337_v15, 0.0  ;;  %v5448_v46 = vpack.c.bf16 %v4229_v14, %v4228_v51  ;;  %v3457_v60 = vadd.f32 %v7252_v52, %v3456_v8  ;;  %v7867_v51 = vld [vmem:[#allocation30_spill] sm:$0xff]  ;;  %v7868_v14 = vld [vmem:[#allocation31_spill] sm:$0xff] }
 0x4be   : > { %v1339_v34 = vadd.f32 %v7210_v5, %v7867_v51  ;;  %v1341_v8 = vadd.f32 %v7210_v5, %v7868_v14 }
 0x4bf   : > { %5644 = vst [vmem:[%s6722_s27 + $0xf0] sm:$0xff] %v5448_v46   ;;  %v3658_v44 = vmax.f32 %v3457_v60, 0.0  ;;  %v3166_v19 = vpack.c.bf16 %v3087_v23, %v3086_v11  ;;  %v2917_v31 = vpop.f32.mrf.mxu2 }
 0x4c0   : > { %v2042_v41 = vpop.f32.mrf.mxu1  ;;  %v4003_v22 = vpop.f32.mrf.mxu0 }
 0x4c1   : > { %3498 = vmatmul.bf16.gmra.mxu3 %v3166_v19  ;;  %v3746_v32 = vpack.c.bf16 %v3658_v44, %v3657_v6  ;;  %v2043_v7 = vadd.f32 %v7108_v61, %v2042_v41  ;;  %v4004_v3 = vadd.f32 %v7047_v28, %v4003_v22  ;;  %v1484_v41 = vmax.f32 %v1339_v34, 0.0 }
 0x4c2   : > { %v1485_v22 = vmax.f32 %v1341_v8, 0.0 }
 0x4c3   : > { %4790 = vmatmul.msk.bf16.gmra.mxu1 %vm846_vm0, %v1553_v62  ;;  %4042 = vmatmul.bf16.gmra.mxu0 %v3746_v32  ;;  %v7353_v11 = vadd.f32 %v2915_v43, %v2043_v7  ;;  %v4230_v60 = vadd.f32 %v4004_v3, %v6969_v33 }
 0x4c4   : > { %v3459_v59 = vpop.f32.mrf.mxu3  ;;  %5127 = vmatmul.msk.bf16.gmra.mxu2 %vm846_vm0, %v5260_v27 }
 0x4c5   : > { %v3460_v6 = vadd.f32 %v7252_v52, %v3459_v59  ;;  %v3088_v62 = vmax.f32 %v7353_v11, 0.0 }
 0x4c7   : > { %v2920_v38 = vpop.f32.mrf.mxu2  ;;  %v3659_v51 = vmax.f32 %v3460_v6, 0.0 }
 0x4c8   : > { %v2044_v21 = vpop.f32.mrf.mxu1  ;;  %v4005_v57 = vpop.f32.mrf.mxu0 }
 0x4c9   : > { %v2045_v23 = vadd.f32 %v7108_v61, %v2044_v21  ;;  %v4006_v46 = vadd.f32 %v7047_v28, %v4005_v57  ;;  %v5261_v21 = vld [vmem:[%s5936_s21 + $0x1d8] sm:$0xff]  ;;  %v1554_v57 = vpack.c.bf16 %v1485_v22, %v1484_v41 }
 0x4cb   : > { %v7359_v44 = vadd.f32 %v2917_v31, %v2045_v23  ;;  %v4231_v19 = vadd.f32 %v4006_v46, %v6975_v36 }
 0x4cc   : > { %v3461_v27 = vpop.f32.mrf.mxu3 }
 0x4cd   : > { %v3089_v43 = vmax.f32 %v7359_v44, 0.0  ;;  %v5453_v32 = vpack.c.bf16 %v4231_v19, %v4230_v60  ;;  %v3462_v7 = vadd.f32 %v7252_v52, %v3461_v27  ;;  %v7869_v60 = vld [vmem:[#allocation32_spill] sm:$0xff]  ;;  %v7870_v19 = vld [vmem:[#allocation33_spill] sm:$0xff] }
 0x4ce   : > { %v1344_v6 = vadd.f32 %v7210_v5, %v7869_v60  ;;  %v1346_v27 = vadd.f32 %v7210_v5, %v7870_v19  ;;  %v5262_v19 = vld [vmem:[%s5936_s21 + $0x1e0] sm:$0xff] }
 0x4cf   : > { %5645 = vst [vmem:[%s6722_s27 + $0xf8] sm:$0xff] %v5453_v32   ;;  %v3660_v33 = vmax.f32 %v3462_v7, 0.0  ;;  %v3167_v3 = vpack.c.bf16 %v3089_v43, %v3088_v62  ;;  %v2922_v59 = vpop.f32.mrf.mxu2 }
 0x4d0   : > { %v2047_v31 = vpop.f32.mrf.mxu1  ;;  %v4008_v14 = vpop.f32.mrf.mxu0 }
 0x4d1   : > { %3503 = vmatmul.bf16.gmra.mxu3 %v3167_v3  ;;  %v3747_v36 = vpack.c.bf16 %v3660_v33, %v3659_v51  ;;  %v2048_v8 = vadd.f32 %v7108_v61, %v2047_v31  ;;  %v4009_v23 = vadd.f32 %v7047_v28, %v4008_v14  ;;  %v1486_v31 = vmax.f32 %v1344_v6, 0.0 }
 0x4d2   : > { %v1487_v14 = vmax.f32 %v1346_v27, 0.0 }
 0x4d3   : > { %4791 = vmatmul.msk.bf16.gmra.mxu1 %vm846_vm0, %v1554_v57  ;;  %4047 = vmatmul.bf16.gmra.mxu0 %v3747_v36  ;;  %v7375_v62 = vadd.f32 %v2920_v38, %v2048_v8  ;;  %v4232_v7 = vadd.f32 %v4009_v23, %v6988_v45 }
 0x4d4   : > { %v3464_v34 = vpop.f32.mrf.mxu3  ;;  %5128 = vmatmul.msk.bf16.gmra.mxu2 %vm846_vm0, %v5261_v21 }
 0x4d5   : > { %v3465_v51 = vadd.f32 %v7252_v52, %v3464_v34  ;;  %v3090_v57 = vmax.f32 %v7375_v62, 0.0 }
 0x4d7   : > { %v2925_v46 = vpop.f32.mrf.mxu2 }
 0x4d8   : > { %v2049_v41 = vpop.f32.mrf.mxu1  ;;  %v4010_v22 = vpop.f32.mrf.mxu0 }
 0x4d9   : > { %v2050_v43 = vadd.f32 %v7108_v61, %v2049_v41  ;;  %v4011_v32 = vadd.f32 %v7047_v28, %v4010_v22  ;;  %v3661_v28 = vmax.f32 %v3465_v51, 0.0  ;;  %v1555_v41 = vpack.c.bf16 %v1487_v14, %v1486_v31  ;;  %v7395_v22 = vld [vmem:[%s7783_s9] ss:$0 sm:$0xff] }
 0x4db   : > { %v7381_v33 = vadd.f32 %v2922_v59, %v2050_v43  ;;  %v4233_v3 = vadd.f32 %v4011_v32, %v6994_v42 }
 0x4dc   : > { %v3466_v21 = vpop.f32.mrf.mxu3 }
 0x4dd   : > { %v3091_v38 = vmax.f32 %v7381_v33, 0.0  ;;  %v5458_v36 = vpack.c.bf16 %v4233_v3, %v4232_v7  ;;  %v3467_v8 = vadd.f32 %v7252_v52, %v3466_v21  ;;  %v7871_v7 = vld [vmem:[#allocation34_spill] sm:$0xff]  ;;  %v7872_v3 = vld [vmem:[#allocation35_spill] sm:$0xff] }
 0x4de   : > { %v1349_v51 = vadd.f32 %v7210_v5, %v7871_v7  ;;  %v1351_v31 = vadd.f32 %v7210_v5, %v7872_v3 }
 0x4df   : > { %5646 = vst [vmem:[%s6722_s27 + $0x100] sm:$0xff] %v5458_v36   ;;  %v3662_v45 = vmax.f32 %v3467_v8, 0.0  ;;  %v3168_v23 = vpack.c.bf16 %v3091_v38, %v3090_v57  ;;  %v2927_v34 = vpop.f32.mrf.mxu2 }
 0x4e0   : > { %v2052_v59 = vpop.f32.mrf.mxu1  ;;  %v4013_v60 = vpop.f32.mrf.mxu0 }
 0x4e1   : > { %3508 = vmatmul.bf16.gmra.mxu3 %v3168_v23  ;;  %v3748_v42 = vpack.c.bf16 %v3662_v45, %v3661_v28  ;;  %v2053_v27 = vadd.f32 %v7108_v61, %v2052_v59  ;;  %v4014_v43 = vadd.f32 %v7395_v22, %v4013_v60  ;;  %v1488_v59 = vmax.f32 %v1349_v51, 0.0 }
 0x4e2   : > { %v1489_v60 = vmax.f32 %v1351_v31, 0.0 }
 0x4e3   : > { %4792 = vmatmul.msk.bf16.gmra.mxu1 %vm846_vm0, %v1555_v41  ;;  %4052 = vmatmul.bf16.gmra.mxu0 %v3748_v42  ;;  %v7402_v57 = vadd.f32 %v2925_v46, %v2053_v27  ;;  %v4234_v8 = vadd.f32 %v4014_v43, %v7007_v13 }
 0x4e4   : > { %v3469_v6 = vpop.f32.mrf.mxu3  ;;  %5129 = vmatmul.msk.bf16.gmra.mxu2 %vm846_vm0, %v5262_v19 }
 0x4e5   : > { %v3470_v28 = vadd.f32 %v7252_v52, %v3469_v6  ;;  %v3092_v41 = vmax.f32 %v7402_v57, 0.0 }
 0x4e7   : > { %v2930_v32 = vpop.f32.mrf.mxu2  ;;  %v3663_v7 = vmax.f32 %v3470_v28, 0.0 }
 0x4e8   : > { %v2054_v14 = vpop.f32.mrf.mxu1  ;;  %v4015_v21 = vpop.f32.mrf.mxu0 }
 0x4e9   : > { %v2055_v38 = vadd.f32 %v7108_v61, %v2054_v14  ;;  %v4016_v36 = vadd.f32 %v7395_v22, %v4015_v21  ;;  %v5263_v14 = vld [vmem:[%s5936_s21 + $0x1e8] sm:$0xff]  ;;  %v1556_v21 = vpack.c.bf16 %v1489_v60, %v1488_v59 }
 0x4eb   : > { %v7408_v45 = vadd.f32 %v2927_v34, %v2055_v38  ;;  %v4235_v23 = vadd.f32 %v4016_v36, %v7013_v37 }
 0x4ec   : > { %v3471_v19 = vpop.f32.mrf.mxu3 }
 0x4ed   : > { %v3093_v46 = vmax.f32 %v7408_v45, 0.0  ;;  %v5463_v42 = vpack.c.bf16 %v4235_v23, %v4234_v8  ;;  %v3472_v27 = vadd.f32 %v7252_v52, %v3471_v19  ;;  %v7873_v8 = vld [vmem:[#allocation36_spill] sm:$0xff]  ;;  %v7874_v23 = vld [vmem:[#allocation37_spill] sm:$0xff] }
 0x4ee   : > { %v1354_v28 = vadd.f32 %v7210_v5, %v7873_v8  ;;  %v1356_v19 = vadd.f32 %v7210_v5, %v7874_v23  ;;  %v5264_v23 = vld [vmem:[%s5936_s21 + $0x1f0] sm:$0xff] }
 0x4ef   : > { %5647 = vst [vmem:[%s6722_s27 + $0x108] sm:$0xff] %v5463_v42   ;;  %v3664_v13 = vmax.f32 %v3472_v27, 0.0  ;;  %v3169_v43 = vpack.c.bf16 %v3093_v46, %v3092_v41  ;;  %v2932_v6 = vpop.f32.mrf.mxu2 }
 0x4f0   : > { %v2057_v34 = vpop.f32.mrf.mxu1  ;;  %v4018_v3 = vpop.f32.mrf.mxu0 }
 0x4f1   : > { %3513 = vmatmul.bf16.gmra.mxu3 %v3169_v43  ;;  %v3749_v37 = vpack.c.bf16 %v3664_v13, %v3663_v7  ;;  %v2058_v31 = vadd.f32 %v7108_v61, %v2057_v34  ;;  %v4019_v38 = vadd.f32 %v7395_v22, %v4018_v3  ;;  %v1490_v34 = vmax.f32 %v1354_v28, 0.0 }
 0x4f2   : > { %v1491_v3 = vmax.f32 %v1356_v19, 0.0  ;;  %v7443_v19 = vld [vmem:[%s7778_s4] ss:$0 sm:$0xff] }
 0x4f3   : > { %4793 = vmatmul.msk.bf16.gmra.mxu1 %vm846_vm0, %v1556_v21  ;;  %4057 = vmatmul.bf16.gmra.mxu0 %v3749_v37  ;;  %v7424_v41 = vadd.f32 %v2930_v32, %v2058_v31  ;;  %v4236_v27 = vadd.f32 %v4019_v38, %v7026_v50 }
 0x4f4   : > { %v3474_v51 = vpop.f32.mrf.mxu3  ;;  %5130 = vmatmul.msk.bf16.gmra.mxu2 %vm846_vm0, %v5263_v14 }
 0x4f5   : > { %v3475_v7 = vadd.f32 %v7252_v52, %v3474_v51  ;;  %v3094_v21 = vmax.f32 %v7424_v41, 0.0 }
 0x4f7   : > { %v2935_v36 = vpop.f32.mrf.mxu2  ;;  %v3665_v31 = vmax.f32 %v3475_v7, 0.0 }
 0x4f8   : > { %v2059_v59 = vpop.f32.mrf.mxu1  ;;  %v4020_v60 = vpop.f32.mrf.mxu0 }
 0x4f9   : > { %v2060_v46 = vadd.f32 %v7108_v61, %v2059_v59  ;;  %v4021_v42 = vadd.f32 %v7395_v22, %v4020_v60  ;;  %v1557_v59 = vpack.c.bf16 %v1491_v3, %v1490_v34 }
 0x4fb   : > { %v7430_v13 = vadd.f32 %v2932_v6, %v2060_v46  ;;  %v4237_v43 = vadd.f32 %v4021_v42, %v7032_v49 }
 0x4fc   : > { %v3476_v14 = vpop.f32.mrf.mxu3 }
 0x4fd   : > { %v3095_v32 = vmax.f32 %v7430_v13, 0.0  ;;  %v5468_v37 = vpack.c.bf16 %v4237_v43, %v4236_v27  ;;  %v3477_v61 = vadd.f32 %v7252_v52, %v3476_v14  ;;  %v7875_v27 = vld [vmem:[#allocation38_spill] sm:$0xff]  ;;  %v7876_v43 = vld [vmem:[#allocation39_spill] sm:$0xff] }
 0x4fe   : > { %v1359_v7 = vadd.f32 %v7210_v5, %v7875_v27  ;;  %v1361_v34 = vadd.f32 %v7210_v5, %v7876_v43 }
 0x4ff   : > { %5648 = vst [vmem:[%s6722_s27 + $0x110] sm:$0xff] %v5468_v37   ;;  %v3666_v50 = vmax.f32 %v3477_v61, 0.0  ;;  %v3170_v38 = vpack.c.bf16 %v3095_v32, %v3094_v21  ;;  %v2937_v51 = vpop.f32.mrf.mxu2 }
 0x500   : > { %v2062_v6 = vpop.f32.mrf.mxu1  ;;  %v4023_v8 = vpop.f32.mrf.mxu0 }
 0x501   : > { %3518 = vmatmul.bf16.gmra.mxu3 %v3170_v38  ;;  %v3750_v49 = vpack.c.bf16 %v3666_v50, %v3665_v31  ;;  %v2063_v60 = vadd.f32 %v7443_v19, %v2062_v6  ;;  %v4024_v46 = vadd.f32 %v7395_v22, %v4023_v8  ;;  %v1492_v6 = vmax.f32 %v1359_v7, 0.0 }
 0x502   : > { %v1493_v8 = vmax.f32 %v1361_v34, 0.0 }
 0x503   : > { %4794 = vmatmul.msk.bf16.gmra.mxu1 %vm846_vm0, %v1557_v59  ;;  %4062 = vmatmul.bf16.gmra.mxu0 %v3750_v49  ;;  %v7451_v21 = vadd.f32 %v2935_v36, %v2063_v60  ;;  %v4238_v61 = vadd.f32 %v4024_v46, %v7050_v17 }
 0x504   : > { %v3479_v28 = vpop.f32.mrf.mxu3  ;;  %5131 = vmatmul.msk.bf16.gmra.mxu2 %vm846_vm0, %v5264_v23 }
 0x505   : > { %v3480_v31 = vadd.f32 %v7252_v52, %v3479_v28  ;;  %v3096_v59 = vmax.f32 %v7451_v21, 0.0 }
 0x507   : > { %v2940_v42 = vpop.f32.mrf.mxu2  ;;  %v3667_v27 = vmax.f32 %v3480_v31, 0.0 }
 0x508   : > { %v2064_v3 = vpop.f32.mrf.mxu1  ;;  %v4025_v14 = vpop.f32.mrf.mxu0 }
 0x509   : > { %v2065_v32 = vadd.f32 %v7443_v19, %v2064_v3  ;;  %v4026_v37 = vadd.f32 %v7395_v22, %v4025_v14  ;;  %v5265_v3 = vld [vmem:[%s5936_s21 + $0x1f8] sm:$0xff]  ;;  %v1558_v14 = vpack.c.bf16 %v1493_v8, %v1492_v6  ;;  %s4567_s21 = sshll.u32 %s4564_s20, 4  ;;  %s4568_s21 = int_to_ptr.hbm [resolvable:$true] %s4567_s21 }
 0x50a   : > { %s5768_s28 = sshra.s32 %s4568_s21, 4  ;;  %s5769_s28 = int_to_ptr.hbm [resolvable:$true] %s5768_s28 }
 0x50b   : > { %v7457_v50 = vadd.f32 %v2937_v51, %v2065_v32  ;;  %v4239_v38 = vadd.f32 %v4026_v37, %v7056_v20  ;;  %s5770_s29 = scalar_lea.hbm %s5769_s28, 512  ;;  %p5775_p0 = scmp.lt.s32.totalorder %s5769_s28, %s7784_s10 }
 0x50c   : > { %v3481_v23 = vpop.f32.mrf.mxu3  ;;  %p5771_p11 = scmp.ne.s32.totalorder %s5769_s28, %s5770_s29  ;;  %p5776_p1 = scmp.lt.s32.totalorder %s5774_s12, %s5770_s29 }
 0x50d   : > { %v3097_v36 = vmax.f32 %v7457_v50, 0.0  ;;  %v5473_v49 = vpack.c.bf16 %v4239_v38, %v4238_v61  ;;  %v3482_v60 = vadd.f32 %v7252_v52, %v3481_v23  ;;  %v7877_v61 = vld [vmem:[#allocation40_spill] sm:$0xff]  ;;  %v7878_v38 = vld [vmem:[#allocation41_spill] sm:$0xff] }
 0x50e   : > { %v1364_v31 = vadd.f32 %v7210_v5, %v7877_v61  ;;  %v1366_v23 = vadd.f32 %v7210_v5, %v7878_v38  ;;  %p5772_p12 = pnand %p5771_p11, %p5913_p5  ;;  %p5777_p2 = por %p5776_p1, %p5775_p0 }
 0x50f   : > { %5649 = vst [vmem:[%s6722_s27 + $0x118] sm:$0xff] %v5473_v49   ;;  %v3668_v17 = vmax.f32 %v3482_v60, 0.0  ;;  %v3171_v46 = vpack.c.bf16 %v3097_v36, %v3096_v59  ;;  %v2942_v28 = vpop.f32.mrf.mxu2 }
 0x510   : > { %v2067_v51 = vpop.f32.mrf.mxu1  ;;  %v4028_v43 = vpop.f32.mrf.mxu0  ;;  %p5773_p13 = pneg %p5772_p12 }
 0x511   : > { %3523 = vmatmul.bf16.gmra.mxu3 %v3171_v46  ;;  %v3751_v20 = vpack.c.bf16 %v3668_v17, %v3667_v27  ;;  %v2068_v34 = vadd.f32 %v7443_v19, %v2067_v51  ;;  %v4029_v32 = vadd.f32 %v7395_v22, %v4028_v43  ;;  %v1494_v51 = vmax.f32 %v1364_v31, 0.0 }
 0x512   : > { %v1495_v43 = vmax.f32 %v1366_v23, 0.0  ;;  %p5778_p3 = pnand %p5777_p2, %p5773_p13 }
 0x513   : > { %4795 = vmatmul.msk.bf16.gmra.mxu1 %vm846_vm0, %v1558_v14  ;;  %4067 = vmatmul.bf16.gmra.mxu0 %v3751_v20  ;;  %v7473_v59 = vadd.f32 %v2940_v42, %v2068_v34  ;;  %v4240_v60 = vadd.f32 %v4029_v32, %v7069_v24 }
 0x514   : > { %v3484_v7 = vpop.f32.mrf.mxu3  ;;  %5132 = vmatmul.msk.bf16.gmra.mxu2 %vm846_vm0, %v5265_v3  ;;  %v1559_v38 = vpack.c.bf16 %v1495_v43, %v1494_v51 }
 0x515   : > { %v3485_v27 = vadd.f32 %v7252_v52, %v3484_v7  ;;  %v3098_v3 = vmax.f32 %v7473_v59, 0.0 }
 0x517   : > { %v2945_v37 = vpop.f32.mrf.mxu2  ;;  %v3669_v34 = vmax.f32 %v3485_v27, 0.0 }
 0x518   : > { %v2069_v6 = vpop.f32.mrf.mxu1  ;;  %v4030_v8 = vpop.f32.mrf.mxu0 }
 0x519   : > { %v2070_v36 = vadd.f32 %v7443_v19, %v2069_v6  ;;  %v4031_v49 = vadd.f32 %v7395_v22, %v4030_v8 }
 0x51b   : > { %v7479_v17 = vadd.f32 %v2942_v28, %v2070_v36  ;;  %v4241_v46 = vadd.f32 %v4031_v49, %v7075_v53 }
 0x51c   : > { %v3486_v5 = vpop.f32.mrf.mxu3 }
 0x51d   : > { %v3099_v42 = vmax.f32 %v7479_v17, 0.0  ;;  %v5478_v14 = vpack.c.bf16 %v4241_v46, %v4240_v60  ;;  %v3487_v20 = vadd.f32 %v7252_v52, %v3486_v5 }
 0x51f   : > { %5650 = vst [vmem:[%s6722_s27 + $0x120] sm:$0xff] %v5478_v14   ;;  %v3670_v61 = vmax.f32 %v3487_v20, 0.0  ;;  %v3172_v24 = vpack.c.bf16 %v3099_v42, %v3098_v3  ;;  %v2947_v32 = vpop.f32.mrf.mxu2 }
 0x520   : > { %v2072_v7 = vpop.f32.mrf.mxu1  ;;  %v4033_v28 = vpop.f32.mrf.mxu0 }
 0x521   : > { %3528 = vmatmul.bf16.gmra.mxu3 %v3172_v24  ;;  %v3752_v53 = vpack.c.bf16 %v3670_v61, %v3669_v34  ;;  %v2073_v23 = vadd.f32 %v7443_v19, %v2072_v7  ;;  %v4034_v6 = vadd.f32 %v7395_v22, %v4033_v28 }
 0x523   : > { %4796 = vmatmul.msk.bf16.gmra.mxu1 %vm846_vm0, %v1559_v38  ;;  %4072 = vmatmul.bf16.gmra.mxu0 %v3752_v53  ;;  %v7489_v60 = vadd.f32 %v2945_v37, %v2073_v23  ;;  %v4242_v51 = vadd.f32 %v4034_v6, %v7088_v47 }
 0x524   : > { %v3489_v31 = vpop.f32.mrf.mxu3 }
 0x525   : > { %v3490_v43 = vadd.f32 %v7252_v52, %v3489_v31  ;;  %v3100_v14 = vmax.f32 %v7489_v60, 0.0 }
 0x527   : > { %v2950_v8 = vpop.f32.mrf.mxu2  ;;  %v3671_v61 = vmax.f32 %v3490_v43, 0.0 }
 0x528   : > { %v2074_v36 = vpop.f32.mrf.mxu1  ;;  %v4035_v49 = vpop.f32.mrf.mxu0 }
 0x529   : > { %v2075_v27 = vadd.f32 %v7443_v19, %v2074_v36  ;;  %v4036_v46 = vadd.f32 %v7395_v22, %v4035_v49 }
 0x52b   : > { %v7495_v5 = vadd.f32 %v2947_v32, %v2075_v27  ;;  %v4243_v3 = vadd.f32 %v4036_v46, %v7094_v29 }
 0x52c   : > { %v3491_v42 = vpop.f32.mrf.mxu3 }
 0x52d   : > { %v3101_v20 = vmax.f32 %v7495_v5, 0.0  ;;  %v5483_v34 = vpack.c.bf16 %v4243_v3, %v4242_v51  ;;  %v3492_v37 = vadd.f32 %v7252_v52, %v3491_v42 }
 0x52f   : > { %5651 = vst [vmem:[%s6722_s27 + $0x128] sm:$0xff] %v5483_v34   ;;  %v3672_v24 = vmax.f32 %v3492_v37, 0.0  ;;  %v3173_v7 = vpack.c.bf16 %v3101_v20, %v3100_v14  ;;  %v2952_v28 = vpop.f32.mrf.mxu2 }
 0x530   : > { %v2077_v47 = vpop.f32.mrf.mxu1  ;;  %v4038_v38 = vpop.f32.mrf.mxu0 }
 0x531   : > { %3533 = vmatmul.bf16.gmra.mxu3 %v3173_v7  ;;  %v3753_v32 = vpack.c.bf16 %v3672_v24, %v3671_v61  ;;  %v2078_v29 = vadd.f32 %v7443_v19, %v2077_v47  ;;  %v4039_v31 = vadd.f32 %v7395_v22, %v4038_v38 }
 0x533   : > { %4077 = vmatmul.bf16.gmra.mxu0 %v3753_v32  ;;  %v7504_v49 = vadd.f32 %v2950_v8, %v2078_v29  ;;  %v4244_v51 = vadd.f32 %v4039_v31, %v7112_v16 }
 0x534   : > { %v3494_v53 = vpop.f32.mrf.mxu3 }
 0x535   : > { %v3495_v43 = vadd.f32 %v7252_v52, %v3494_v53  ;;  %v3102_v20 = vmax.f32 %v7504_v49, 0.0 }
 0x537   : > { %v2955_v23 = vpop.f32.mrf.mxu2  ;;  %v3673_v61 = vmax.f32 %v3495_v43, 0.0 }
 0x538   : > { %v2079_v6 = vpop.f32.mrf.mxu1  ;;  %v4040_v36 = vpop.f32.mrf.mxu0 }
 0x539   : > { %v2080_v27 = vadd.f32 %v7443_v19, %v2079_v6  ;;  %v4041_v46 = vadd.f32 %v7395_v22, %v4040_v36 }
 0x53b   : > { %v7510_v3 = vadd.f32 %v2952_v28, %v2080_v27  ;;  %v4245_v42 = vadd.f32 %v4041_v46, %v7118_v2 }
 0x53c   : > { %v3496_v14 = vpop.f32.mrf.mxu3 }
 0x53d   : > { %v3103_v34 = vmax.f32 %v7510_v3, 0.0  ;;  %v5488_v37 = vpack.c.bf16 %v4245_v42, %v4244_v51  ;;  %v3497_v8 = vadd.f32 %v7252_v52, %v3496_v14 }
 0x53f   : > { %5652 = vst [vmem:[%s6722_s27 + $0x130] sm:$0xff] %v5488_v37   ;;  %v3674_v24 = vmax.f32 %v3497_v8, 0.0  ;;  %v3174_v7 = vpack.c.bf16 %v3103_v34, %v3102_v20  ;;  %v2957_v47 = vpop.f32.mrf.mxu2 }
 0x540   : > { %v2082_v16 = vpop.f32.mrf.mxu1  ;;  %v4043_v38 = vpop.f32.mrf.mxu0 }
 0x541   : > { %3538 = vmatmul.bf16.gmra.mxu3 %v3174_v7  ;;  %v3754_v28 = vpack.c.bf16 %v3674_v24, %v3673_v61  ;;  %v2083_v2 = vadd.f32 %v7443_v19, %v2082_v16  ;;  %v4044_v53 = vadd.f32 %v7395_v22, %v4043_v38 }
 0x543   : > { %4082 = vmatmul.bf16.gmra.mxu0 %v3754_v28  ;;  %v7519_v36 = vadd.f32 %v2955_v23, %v2083_v2  ;;  %v4246_v51 = vadd.f32 %v4044_v53, %v7131_v54 }
 0x544   : > { %v3499_v32 = vpop.f32.mrf.mxu3 }
 0x545   : > { %v3500_v43 = vadd.f32 %v7252_v52, %v3499_v32  ;;  %v3104_v34 = vmax.f32 %v7519_v36, 0.0 }
 0x547   : > { %v2960_v29 = vpop.f32.mrf.mxu2  ;;  %v3675_v61 = vmax.f32 %v3500_v43, 0.0 }
 0x548   : > { %v2084_v31 = vpop.f32.mrf.mxu1  ;;  %v4045_v6 = vpop.f32.mrf.mxu0 }
 0x549   : > { %v2085_v27 = vadd.f32 %v7443_v19, %v2084_v31  ;;  %v4046_v46 = vadd.f32 %v7395_v22, %v4045_v6 }
 0x54b   : > { %v7525_v42 = vadd.f32 %v2957_v47, %v2085_v27  ;;  %v4247_v14 = vadd.f32 %v4046_v46, %v7137_v56 }
 0x54c   : > { %v3501_v20 = vpop.f32.mrf.mxu3 }
 0x54d   : > { %v3105_v37 = vmax.f32 %v7525_v42, 0.0  ;;  %v5493_v8 = vpack.c.bf16 %v4247_v14, %v4246_v51  ;;  %v3502_v23 = vadd.f32 %v7252_v52, %v3501_v20 }
 0x54f   : > { %5653 = vst [vmem:[%s6722_s27 + $0x138] sm:$0xff] %v5493_v8   ;;  %v3676_v24 = vmax.f32 %v3502_v23, 0.0  ;;  %v3175_v7 = vpack.c.bf16 %v3105_v37, %v3104_v34  ;;  %v2962_v16 = vpop.f32.mrf.mxu2 }
 0x550   : > { %v2087_v54 = vpop.f32.mrf.mxu1  ;;  %v4048_v38 = vpop.f32.mrf.mxu0 }
 0x551   : > { %3543 = vmatmul.bf16.gmra.mxu3 %v3175_v7  ;;  %v3755_v47 = vpack.c.bf16 %v3676_v24, %v3675_v61  ;;  %v2088_v56 = vadd.f32 %v7443_v19, %v2087_v54  ;;  %v4049_v32 = vadd.f32 %v7395_v22, %v4048_v38 }
 0x553   : > { %4087 = vmatmul.bf16.gmra.mxu0 %v3755_v47  ;;  %v7534_v6 = vadd.f32 %v2960_v29, %v2088_v56  ;;  %v4248_v51 = vadd.f32 %v4049_v32, %v7150_v18 }
 0x554   : > { %v3504_v28 = vpop.f32.mrf.mxu3 }
 0x555   : > { %v3505_v43 = vadd.f32 %v7252_v52, %v3504_v28  ;;  %v3106_v37 = vmax.f32 %v7534_v6, 0.0 }
 0x557   : > { %v2965_v2 = vpop.f32.mrf.mxu2  ;;  %v3677_v61 = vmax.f32 %v3505_v43, 0.0 }
 0x558   : > { %v2089_v53 = vpop.f32.mrf.mxu1  ;;  %v4050_v31 = vpop.f32.mrf.mxu0 }
 0x559   : > { %v2090_v27 = vadd.f32 %v7443_v19, %v2089_v53  ;;  %v4051_v46 = vadd.f32 %v7395_v22, %v4050_v31 }
 0x55b   : > { %v7540_v14 = vadd.f32 %v2962_v16, %v2090_v27  ;;  %v4249_v20 = vadd.f32 %v4051_v46, %v7156_v12 }
 0x55c   : > { %v3506_v34 = vpop.f32.mrf.mxu3 }
 0x55d   : > { %v3107_v8 = vmax.f32 %v7540_v14, 0.0  ;;  %v5498_v23 = vpack.c.bf16 %v4249_v20, %v4248_v51  ;;  %v3507_v29 = vadd.f32 %v7252_v52, %v3506_v34 }
 0x55f   : > { %5654 = vst [vmem:[%s6722_s27 + $0x140] sm:$0xff] %v5498_v23   ;;  %v3678_v24 = vmax.f32 %v3507_v29, 0.0  ;;  %v3176_v7 = vpack.c.bf16 %v3107_v8, %v3106_v37  ;;  %v2967_v54 = vpop.f32.mrf.mxu2 }
 0x560   : > { %v2092_v18 = vpop.f32.mrf.mxu1  ;;  %v4053_v38 = vpop.f32.mrf.mxu0 }
 0x561   : > { %3548 = vmatmul.bf16.gmra.mxu3 %v3176_v7  ;;  %v3756_v16 = vpack.c.bf16 %v3678_v24, %v3677_v61  ;;  %v2093_v12 = vadd.f32 %v7443_v19, %v2092_v18  ;;  %v4054_v28 = vadd.f32 %v7395_v22, %v4053_v38 }
 0x563   : > { %4092 = vmatmul.bf16.gmra.mxu0 %v3756_v16  ;;  %v7549_v31 = vadd.f32 %v2965_v2, %v2093_v12  ;;  %v4250_v51 = vadd.f32 %v4054_v28, %v7169_v25 }
 0x564   : > { %v3509_v47 = vpop.f32.mrf.mxu3 }
 0x565   : > { %v3510_v43 = vadd.f32 %v7252_v52, %v3509_v47  ;;  %v3108_v8 = vmax.f32 %v7549_v31, 0.0 }
 0x567   : > { %v2970_v56 = vpop.f32.mrf.mxu2  ;;  %v3679_v61 = vmax.f32 %v3510_v43, 0.0 }
 0x568   : > { %v2094_v32 = vpop.f32.mrf.mxu1  ;;  %v4055_v53 = vpop.f32.mrf.mxu0 }
 0x569   : > { %v2095_v27 = vadd.f32 %v7443_v19, %v2094_v32  ;;  %v4056_v46 = vadd.f32 %v7395_v22, %v4055_v53 }
 0x56b   : > { %v7555_v20 = vadd.f32 %v2967_v54, %v2095_v27  ;;  %v4251_v34 = vadd.f32 %v4056_v46, %v7175_v9 }
 0x56c   : > { %v3511_v37 = vpop.f32.mrf.mxu3 }
 0x56d   : > { %v3109_v23 = vmax.f32 %v7555_v20, 0.0  ;;  %v5503_v29 = vpack.c.bf16 %v4251_v34, %v4250_v51  ;;  %v3512_v2 = vadd.f32 %v7252_v52, %v3511_v37  ;;  %v7572_v51 = vld [vmem:[%s7781_s7] ss:$0 sm:$0xff] }
 0x56f   : > { %5655 = vst [vmem:[%s6722_s27 + $0x148] sm:$0xff] %v5503_v29   ;;  %v3680_v24 = vmax.f32 %v3512_v2, 0.0  ;;  %v3177_v7 = vpack.c.bf16 %v3109_v23, %v3108_v8  ;;  %v2972_v18 = vpop.f32.mrf.mxu2 }
 0x570   : > { %v2097_v25 = vpop.f32.mrf.mxu1  ;;  %v4058_v38 = vpop.f32.mrf.mxu0 }
 0x571   : > { %3553 = vmatmul.bf16.gmra.mxu3 %v3177_v7  ;;  %v3757_v54 = vpack.c.bf16 %v3680_v24, %v3679_v61  ;;  %v2098_v9 = vadd.f32 %v7443_v19, %v2097_v25  ;;  %v4059_v47 = vadd.f32 %v7395_v22, %v4058_v38 }
 0x573   : > { %4097 = vmatmul.bf16.gmra.mxu0 %v3757_v54  ;;  %v7564_v52 = vadd.f32 %v2970_v56, %v2098_v9  ;;  %v4252_v46 = vadd.f32 %v4059_v47, %v7188_v35 }
 0x574   : > { %v3514_v16 = vpop.f32.mrf.mxu3 }
 0x575   : > { %v3515_v43 = vadd.f32 %v7572_v51, %v3514_v16  ;;  %v3110_v56 = vmax.f32 %v7564_v52, 0.0 }
 0x577   : > { %v2975_v12 = vpop.f32.mrf.mxu2  ;;  %v3681_v35 = vmax.f32 %v3515_v43, 0.0 }
 0x578   : > { %v2099_v28 = vpop.f32.mrf.mxu1  ;;  %v4060_v32 = vpop.f32.mrf.mxu0 }
 0x579   : > { %v2100_v53 = vadd.f32 %v7443_v19, %v2099_v28  ;;  %v4061_v27 = vadd.f32 %v7395_v22, %v4060_v32 }
 0x57b   : > { %v7575_v34 = vadd.f32 %v2972_v18, %v2100_v53  ;;  %v4253_v37 = vadd.f32 %v4061_v27, %v7194_v4 }
 0x57c   : > { %v3516_v8 = vpop.f32.mrf.mxu3 }
 0x57d   : > { %v3111_v23 = vmax.f32 %v7575_v34, 0.0  ;;  %v5508_v29 = vpack.c.bf16 %v4253_v37, %v4252_v46  ;;  %v3517_v2 = vadd.f32 %v7572_v51, %v3516_v8 }
 0x57f   : > { %5656 = vst [vmem:[%s6722_s27 + $0x150] sm:$0xff] %v5508_v29   ;;  %v3682_v61 = vmax.f32 %v3517_v2, 0.0  ;;  %v3178_v24 = vpack.c.bf16 %v3111_v23, %v3110_v56  ;;  %v2977_v38 = vpop.f32.mrf.mxu2 }
 0x580   : > { %v2102_v7 = vpop.f32.mrf.mxu1  ;;  %v4063_v25 = vpop.f32.mrf.mxu0 }
 0x581   : > { %3558 = vmatmul.bf16.gmra.mxu3 %v3178_v24  ;;  %v3758_v18 = vpack.c.bf16 %v3682_v61, %v3681_v35  ;;  %v2103_v4 = vadd.f32 %v7443_v19, %v2102_v7  ;;  %v4064_v16 = vadd.f32 %v7395_v22, %v4063_v25 }
 0x583   : > { %4102 = vmatmul.bf16.gmra.mxu0 %v3758_v18  ;;  %v7584_v28 = vadd.f32 %v2975_v12, %v2103_v4  ;;  %v4254_v27 = vadd.f32 %v4064_v16, %v7216_v0 }
 0x584   : > { %v3519_v54 = vpop.f32.mrf.mxu3 }
 0x585   : > { %v3520_v46 = vadd.f32 %v7572_v51, %v3519_v54  ;;  %v3112_v23 = vmax.f32 %v7584_v28, 0.0 }
 0x587   : > { %v2980_v8 = vpop.f32.mrf.mxu2  ;;  %v3683_v35 = vmax.f32 %v3520_v46, 0.0 }
 0x588   : > { %v2104_v9 = vpop.f32.mrf.mxu1  ;;  %v4065_v47 = vpop.f32.mrf.mxu0 }
 0x589   : > { %v2105_v32 = vadd.f32 %v7443_v19, %v2104_v9  ;;  %v4066_v53 = vadd.f32 %v7395_v22, %v4065_v47 }
 0x58b   : > { %v7590_v43 = vadd.f32 %v2977_v38, %v2105_v32  ;;  %v4255_v37 = vadd.f32 %v4066_v53, %v7222_v55 }
 0x58c   : > { %v3521_v56 = vpop.f32.mrf.mxu3 }
 0x58d   : > { %v3113_v29 = vmax.f32 %v7590_v43, 0.0  ;;  %v5513_v12 = vpack.c.bf16 %v4255_v37, %v4254_v27  ;;  %v3522_v2 = vadd.f32 %v7572_v51, %v3521_v56 }
 0x58f   : > { %5657 = vst [vmem:[%s6722_s27 + $0x158] sm:$0xff] %v5513_v12   ;;  %v3684_v61 = vmax.f32 %v3522_v2, 0.0  ;;  %v3179_v24 = vpack.c.bf16 %v3113_v29, %v3112_v23  ;;  %v2982_v18 = vpop.f32.mrf.mxu2 }
 0x590   : > { %v2107_v0 = vpop.f32.mrf.mxu1  ;;  %v4068_v7 = vpop.f32.mrf.mxu0 }
 0x591   : > { %3563 = vmatmul.bf16.gmra.mxu3 %v3179_v24  ;;  %v3759_v25 = vpack.c.bf16 %v3684_v61, %v3683_v35  ;;  %v2108_v55 = vadd.f32 %v7443_v19, %v2107_v0  ;;  %v4069_v54 = vadd.f32 %v7395_v22, %v4068_v7 }
 0x593   : > { %4107 = vmatmul.bf16.gmra.mxu0 %v3759_v25  ;;  %v7599_v9 = vadd.f32 %v2980_v8, %v2108_v55  ;;  %v4256_v53 = vadd.f32 %v4069_v54, %v7238_v39 }
 0x594   : > { %v3524_v38 = vpop.f32.mrf.mxu3 }
 0x595   : > { %v3525_v27 = vadd.f32 %v7572_v51, %v3524_v38  ;;  %v3114_v23 = vmax.f32 %v7599_v9, 0.0 }
 0x597   : > { %v3685_v2 = vmax.f32 %v3525_v27, 0.0  ;;  %v2985_v35 = vpop.f32.mrf.mxu2 }
 0x598   : > { %v2109_v4 = vpop.f32.mrf.mxu1  ;;  %v4070_v16 = vpop.f32.mrf.mxu0 }
 0x599   : > { %v2110_v47 = vadd.f32 %v7443_v19, %v2109_v4  ;;  %v4071_v32 = vadd.f32 %v7395_v22, %v4070_v16 }
 0x59b   : > { %v7605_v46 = vadd.f32 %v2982_v18, %v2110_v47  ;;  %v4257_v37 = vadd.f32 %v4071_v32, %v7244_v1 }
 0x59c   : > { %v3526_v56 = vpop.f32.mrf.mxu3 }
 0x59d   : > { %v3115_v29 = vmax.f32 %v7605_v46, 0.0  ;;  %v5518_v12 = vpack.c.bf16 %v4257_v37, %v4256_v53  ;;  %v3527_v8 = vadd.f32 %v7572_v51, %v3526_v56 }
 0x59f   : > { %5658 = vst [vmem:[%s6722_s27 + $0x160] sm:$0xff] %v5518_v12   ;;  %v3686_v61 = vmax.f32 %v3527_v8, 0.0  ;;  %v3180_v24 = vpack.c.bf16 %v3115_v29, %v3114_v23  ;;  %v2987_v47 = vpop.f32.mrf.mxu2 }
 0x5a0   : > { %v2112_v39 = vpop.f32.mrf.mxu1  ;;  %v4073_v0 = vpop.f32.mrf.mxu0 }
 0x5a1   : > { %v3760_v7 = vpack.c.bf16 %v3686_v61, %v3685_v2  ;;  %3568 = vmatmul.bf16.gmra.mxu3 %v3180_v24  ;;  %v2113_v1 = vadd.f32 %v7443_v19, %v2112_v39  ;;  %v4074_v38 = vadd.f32 %v7395_v22, %v4073_v0 }
 0x5a3   : > { %4112 = vmatmul.bf16.gmra.mxu0 %v3760_v7  ;;  %v7614_v54 = vadd.f32 %v2985_v35, %v2113_v1  ;;  %v4258_v32 = vadd.f32 %v4074_v38, %v7265_v40 }
 0x5a4   : > { %v3529_v25 = vpop.f32.mrf.mxu3 }
 0x5a5   : > { %v3530_v53 = vadd.f32 %v7572_v51, %v3529_v25  ;;  %v3116_v23 = vmax.f32 %v7614_v54, 0.0 }
 0x5a8   : > { %v2114_v55 = vpop.f32.mrf.mxu1  ;;  %v4075_v18 = vpop.f32.mrf.mxu0 }
 0x5a9   : > { %v2115_v4 = vadd.f32 %v7443_v19, %v2114_v55  ;;  %v4076_v16 = vadd.f32 %v7395_v22, %v4075_v18  ;;  %v3687_v19 = vmax.f32 %v3530_v53, 0.0 }
 0x5ab   : > { %v7620_v27 = vadd.f32 %v2987_v47, %v2115_v4  ;;  %v4259_v37 = vadd.f32 %v4076_v16, %v7271_v30 }
 0x5ac   : > { %v3531_v56 = vpop.f32.mrf.mxu3 }
 0x5ad   : > { %v3117_v29 = vmax.f32 %v7620_v27, 0.0  ;;  %v5523_v12 = vpack.c.bf16 %v4259_v37, %v4258_v32  ;;  %v3532_v8 = vadd.f32 %v7572_v51, %v3531_v56 }
 0x5af   : > { %5659 = vst [vmem:[%s6722_s27 + $0x168] sm:$0xff] %v5523_v12   ;;  %v3688_v2 = vmax.f32 %v3532_v8, 0.0  ;;  %v3181_v35 = vpack.c.bf16 %v3117_v29, %v3116_v23 }
 0x5b0   : > { %v4078_v40 = vpop.f32.mrf.mxu0 }
 0x5b1   : > { %v3761_v61 = vpack.c.bf16 %v3688_v2, %v3687_v19  ;;  %3573 = vmatmul.bf16.gmra.mxu3 %v3181_v35  ;;  %v4079_v30 = vadd.f32 %v7395_v22, %v4078_v40 }
 0x5b3   : > { %4117 = vmatmul.bf16.gmra.mxu0 %v3761_v61  ;;  %v4260_v7 = vadd.f32 %v4079_v30, %v7287_v48 }
 0x5b4   : > { %v3534_v24 = vpop.f32.mrf.mxu3 }
 0x5b5   : > { %v3535_v25 = vadd.f32 %v7572_v51, %v3534_v24 }
 0x5b7   : > { %v3689_v4 = vmax.f32 %v3535_v25, 0.0 }
 0x5b8   : > { %v4080_v39 = vpop.f32.mrf.mxu0 }
 0x5b9   : > { %v4081_v0 = vadd.f32 %v7395_v22, %v4080_v39 }
 0x5bb   : > { %v4261_v1 = vadd.f32 %v4081_v0, %v7293_v26 }
 0x5bc   : > { %v3536_v38 = vpop.f32.mrf.mxu3 }
 0x5bd   : > { %v5528_v55 = vpack.c.bf16 %v4261_v1, %v4260_v7  ;;  %v3537_v18 = vadd.f32 %v7572_v51, %v3536_v38 }
 0x5bf   : > { %5660 = vst [vmem:[%s6722_s27 + $0x170] sm:$0xff] %v5528_v55   ;;  %v3690_v16 = vmax.f32 %v3537_v18, 0.0 }
 0x5c0   : > { %v4083_v47 = vpop.f32.mrf.mxu0 }
 0x5c1   : > { %v3762_v32 = vpack.c.bf16 %v3690_v16, %v3689_v4  ;;  %v4084_v37 = vadd.f32 %v7395_v22, %v4083_v47 }
 0x5c3   : > { %4122 = vmatmul.bf16.gmra.mxu0 %v3762_v32  ;;  %v4262_v23 = vadd.f32 %v4084_v37, %v7309_v58 }
 0x5c4   : > { %v3539_v53 = vpop.f32.mrf.mxu3 }
 0x5c5   : > { %v3540_v26 = vadd.f32 %v7572_v51, %v3539_v53 }
 0x5c7   : > { %v3691_v2 = vmax.f32 %v3540_v26, 0.0 }
 0x5c8   : > { %v4085_v56 = vpop.f32.mrf.mxu0 }
 0x5c9   : > { %v4086_v48 = vadd.f32 %v7395_v22, %v4085_v56 }
 0x5cb   : > { %v4263_v29 = vadd.f32 %v4086_v48, %v7315_v10 }
 0x5cc   : > { %v3541_v12 = vpop.f32.mrf.mxu3 }
 0x5cd   : > { %v5533_v8 = vpack.c.bf16 %v4263_v29, %v4262_v23  ;;  %v3542_v19 = vadd.f32 %v7572_v51, %v3541_v12 }
 0x5cf   : > { %5661 = vst [vmem:[%s6722_s27 + $0x178] sm:$0xff] %v5533_v8   ;;  %v3692_v35 = vmax.f32 %v3542_v19, 0.0 }
 0x5d0   : > { %v4088_v40 = vpop.f32.mrf.mxu0 }
 0x5d1   : > { %v3763_v61 = vpack.c.bf16 %v3692_v35, %v3691_v2  ;;  %v4089_v30 = vadd.f32 %v7395_v22, %v4088_v40 }
 0x5d3   : > { %4127 = vmatmul.bf16.gmra.mxu0 %v3763_v61  ;;  %v4264_v0 = vadd.f32 %v4089_v30, %v7331_v63 }
 0x5d4   : > { %v3544_v24 = vpop.f32.mrf.mxu3 }
 0x5d5   : > { %v3545_v10 = vadd.f32 %v7572_v51, %v3544_v24 }
 0x5d7   : > { %v3693_v55 = vmax.f32 %v3545_v10, 0.0 }
 0x5d8   : > { %v4090_v39 = vpop.f32.mrf.mxu0 }
 0x5d9   : > { %v4091_v58 = vadd.f32 %v7395_v22, %v4090_v39 }
 0x5db   : > { %v4265_v7 = vadd.f32 %v4091_v58, %v7337_v15 }
 0x5dc   : > { %v3546_v25 = vpop.f32.mrf.mxu3 }
 0x5dd   : > { %v5538_v1 = vpack.c.bf16 %v4265_v7, %v4264_v0  ;;  %v3547_v38 = vadd.f32 %v7572_v51, %v3546_v25 }
 0x5df   : > { %5662 = vst [vmem:[%s6722_s27 + $0x180] sm:$0xff] %v5538_v1   ;;  %v3694_v18 = vmax.f32 %v3547_v38, 0.0 }
 0x5e0   : > { %v4093_v4 = vpop.f32.mrf.mxu0 }
 0x5e1   : > { %v3764_v16 = vpack.c.bf16 %v3694_v18, %v3693_v55  ;;  %v4094_v32 = vadd.f32 %v7395_v22, %v4093_v4 }
 0x5e3   : > { %4132 = vmatmul.bf16.gmra.mxu0 %v3764_v16  ;;  %v4266_v37 = vadd.f32 %v4094_v32, %v7353_v11 }
 0x5e4   : > { %v3549_v47 = vpop.f32.mrf.mxu3 }
 0x5e5   : > { %v3550_v15 = vadd.f32 %v7572_v51, %v3549_v47 }
 0x5e7   : > { %v3695_v29 = vmax.f32 %v3550_v15, 0.0 }
 0x5e8   : > { %v4095_v53 = vpop.f32.mrf.mxu0 }
 0x5e9   : > { %v4096_v63 = vadd.f32 %v7395_v22, %v4095_v53 }
 0x5eb   : > { %v4267_v56 = vadd.f32 %v4096_v63, %v7359_v44 }
 0x5ec   : > { %v3551_v48 = vpop.f32.mrf.mxu3 }
 0x5ed   : > { %v5543_v23 = vpack.c.bf16 %v4267_v56, %v4266_v37  ;;  %v3552_v26 = vadd.f32 %v7572_v51, %v3551_v48 }
 0x5ef   : > { %5663 = vst [vmem:[%s6722_s27 + $0x188] sm:$0xff] %v5543_v23   ;;  %v3696_v12 = vmax.f32 %v3552_v26, 0.0 }
 0x5f0   : > { %v4098_v8 = vpop.f32.mrf.mxu0 }
 0x5f1   : > { %v3765_v19 = vpack.c.bf16 %v3696_v12, %v3695_v29  ;;  %v4099_v35 = vadd.f32 %v7395_v22, %v4098_v8 }
 0x5f3   : > { %4137 = vmatmul.bf16.gmra.mxu0 %v3765_v19  ;;  %v4268_v61 = vadd.f32 %v4099_v35, %v7375_v62 }
 0x5f4   : > { %v3554_v2 = vpop.f32.mrf.mxu3 }
 0x5f5   : > { %v3555_v44 = vadd.f32 %v7572_v51, %v3554_v2 }
 0x5f7   : > { %v3697_v0 = vmax.f32 %v3555_v44, 0.0 }
 0x5f8   : > { %v4100_v40 = vpop.f32.mrf.mxu0 }
 0x5f9   : > { %v4101_v11 = vadd.f32 %v7395_v22, %v4100_v40 }
 0x5fb   : > { %v4269_v24 = vadd.f32 %v4101_v11, %v7381_v33 }
 0x5fc   : > { %v3556_v30 = vpop.f32.mrf.mxu3 }
 0x5fd   : > { %v5548_v39 = vpack.c.bf16 %v4269_v24, %v4268_v61  ;;  %v3557_v58 = vadd.f32 %v7572_v51, %v3556_v30 }
 0x5ff   : > { %5664 = vst [vmem:[%s6722_s27 + $0x190] sm:$0xff] %v5548_v39   ;;  %v3698_v10 = vmax.f32 %v3557_v58, 0.0 }
 0x600   : > { %v4103_v7 = vpop.f32.mrf.mxu0 }
 0x601   : > { %v3766_v25 = vpack.c.bf16 %v3698_v10, %v3697_v0  ;;  %v4104_v38 = vadd.f32 %v7395_v22, %v4103_v7 }
 0x603   : > { %4142 = vmatmul.bf16.gmra.mxu0 %v3766_v25  ;;  %v4270_v18 = vadd.f32 %v4104_v38, %v7402_v57 }
 0x604   : > { %v3559_v1 = vpop.f32.mrf.mxu3 }
 0x605   : > { %v3560_v33 = vadd.f32 %v7572_v51, %v3559_v1 }
 0x607   : > { %v3699_v53 = vmax.f32 %v3560_v33, 0.0 }
 0x608   : > { %v4105_v55 = vpop.f32.mrf.mxu0 }
 0x609   : > { %v4106_v62 = vadd.f32 %v7395_v22, %v4105_v55 }
 0x60b   : > { %v4271_v4 = vadd.f32 %v4106_v62, %v7408_v45 }
 0x60c   : > { %v3561_v16 = vpop.f32.mrf.mxu3 }
 0x60d   : > { %v5553_v47 = vpack.c.bf16 %v4271_v4, %v4270_v18  ;;  %v3562_v32 = vadd.f32 %v7572_v51, %v3561_v16 }
 0x60f   : > { %5665 = vst [vmem:[%s6722_s27 + $0x198] sm:$0xff] %v5553_v47   ;;  %v3700_v63 = vmax.f32 %v3562_v32, 0.0 }
 0x610   : > { %v4108_v37 = vpop.f32.mrf.mxu0 }
 0x611   : > { %v3767_v15 = vpack.c.bf16 %v3700_v63, %v3699_v53  ;;  %v4109_v48 = vadd.f32 %v7395_v22, %v4108_v37 }
 0x613   : > { %4147 = vmatmul.bf16.gmra.mxu0 %v3767_v15  ;;  %v4272_v26 = vadd.f32 %v4109_v48, %v7424_v41 }
 0x614   : > { %v3564_v56 = vpop.f32.mrf.mxu3 }
 0x615   : > { %v3565_v45 = vadd.f32 %v7572_v51, %v3564_v56 }
 0x617   : > { %v3701_v2 = vmax.f32 %v3565_v45, 0.0 }
 0x618   : > { %v4110_v23 = vpop.f32.mrf.mxu0 }
 0x619   : > { %v4111_v57 = vadd.f32 %v7395_v22, %v4110_v23 }
 0x61b   : > { %v4273_v29 = vadd.f32 %v4111_v57, %v7430_v13 }
 0x61c   : > { %v3566_v12 = vpop.f32.mrf.mxu3 }
 0x61d   : > { %v5558_v8 = vpack.c.bf16 %v4273_v29, %v4272_v26  ;;  %v3567_v19 = vadd.f32 %v7572_v51, %v3566_v12 }
 0x61f   : > { %5666 = vst [vmem:[%s6722_s27 + $0x1a0] sm:$0xff] %v5558_v8   ;;  %v3702_v35 = vmax.f32 %v3567_v19, 0.0 }
 0x620   : > { %v4113_v40 = vpop.f32.mrf.mxu0 }
 0x621   : > { %v3768_v11 = vpack.c.bf16 %v3702_v35, %v3701_v2  ;;  %v4114_v44 = vadd.f32 %v7395_v22, %v4113_v40 }
 0x623   : > { %4152 = vmatmul.bf16.gmra.mxu0 %v3768_v11  ;;  %v4274_v30 = vadd.f32 %v4114_v44, %v7451_v21 }
 0x624   : > { %v3569_v61 = vpop.f32.mrf.mxu3 }
 0x625   : > { %v3570_v13 = vadd.f32 %v7572_v51, %v3569_v61 }
 0x627   : > { %v3703_v7 = vmax.f32 %v3570_v13, 0.0 }
 0x628   : > { %v4115_v24 = vpop.f32.mrf.mxu0 }
 0x629   : > { %v4116_v41 = vadd.f32 %v7395_v22, %v4115_v24  ;;  %v7686_v22 = vld [vmem:[%s7783_s9] ss:$0 sm:$0xff] }
 0x62b   : > { %v4275_v39 = vadd.f32 %v4116_v41, %v7457_v50 }
 0x62c   : > { %v3571_v58 = vpop.f32.mrf.mxu3 }
 0x62d   : > { %v5563_v0 = vpack.c.bf16 %v4275_v39, %v4274_v30  ;;  %v3572_v10 = vadd.f32 %v7572_v51, %v3571_v58 }
 0x62f   : > { %5667 = vst [vmem:[%s6722_s27 + $0x1a8] sm:$0xff] %v5563_v0   ;;  %v3704_v25 = vmax.f32 %v3572_v10, 0.0 }
 0x630   : > { %v4118_v1 = vpop.f32.mrf.mxu0 }
 0x631   : > { %v3769_v38 = vpack.c.bf16 %v3704_v25, %v3703_v7  ;;  %v4119_v21 = vadd.f32 %v7686_v22, %v4118_v1 }
 0x633   : > { %4157 = vmatmul.bf16.gmra.mxu0 %v3769_v38  ;;  %v4276_v18 = vadd.f32 %v4119_v21, %v7473_v59 }
 0x634   : > { %v3574_v55 = vpop.f32.mrf.mxu3 }
 0x635   : > { %v3575_v33 = vadd.f32 %v7572_v51, %v3574_v55 }
 0x637   : > { %v3705_v53 = vmax.f32 %v3575_v33, 0.0 }
 0x638   : > { %v4120_v50 = vpop.f32.mrf.mxu0 }
 0x639   : > { %v4121_v62 = vadd.f32 %v7686_v22, %v4120_v50 }
 0x63b   : > { %v4277_v4 = vadd.f32 %v4121_v62, %v7479_v17 }
 0x63c   : > { %v3576_v16 = vpop.f32.mrf.mxu3 }
 0x63d   : > { %v5568_v47 = vpack.c.bf16 %v4277_v4, %v4276_v18  ;;  %v3577_v32 = vadd.f32 %v7572_v51, %v3576_v16 }
 0x63f   : > { %5668 = vst [vmem:[%s6722_s27 + $0x1b0] sm:$0xff] %v5568_v47   ;;  %v3706_v63 = vmax.f32 %v3577_v32, 0.0 }
 0x640   : > { %v4123_v37 = vpop.f32.mrf.mxu0 }
 0x641   : > { %v3770_v15 = vpack.c.bf16 %v3706_v63, %v3705_v53  ;;  %v4124_v56 = vadd.f32 %v7686_v22, %v4123_v37 }
 0x643   : > { %4162 = vmatmul.bf16.vlgmr.msra.gmra.mxu3 %v3770_v15  ;;  %v4278_v23 = vadd.f32 %v4124_v56, %v7489_v60 }
 0x648   : > { %v4125_v48 = vpop.f32.mrf.mxu0 }
 0x649   : > { %v4126_v59 = vadd.f32 %v7686_v22, %v4125_v48 }
 0x64b   : > { %v4279_v17 = vadd.f32 %v4126_v59, %v7495_v5 }
 0x64d   : > { %v5573_v57 = vpack.c.bf16 %v4279_v17, %v4278_v23 }
 0x64f   : > { %5669 = vst [vmem:[%s6722_s27 + $0x1b8] sm:$0xff] %v5573_v57  }
 0x650   : > { %v4128_v51 = vpop.f32.mrf.mxu0 }
 0x651   : > { %v4129_v26 = vadd.f32 %v7686_v22, %v4128_v51 }
 0x653   : > { %v4280_v12 = vadd.f32 %v4129_v26, %v7504_v49 }
 0x658   : > { %v4130_v45 = vpop.f32.mrf.mxu0 }
 0x659   : > { %v4131_v29 = vadd.f32 %v7686_v22, %v4130_v45 }
 0x65b   : > { %v4281_v8 = vadd.f32 %v4131_v29, %v7510_v3 }
 0x65d   : > { %v5578_v19 = vpack.c.bf16 %v4281_v8, %v4280_v12 }
 0x65f   : > { %5670 = vst [vmem:[%s6722_s27 + $0x1c0] sm:$0xff] %v5578_v19  }
 0x660   : > { %v4133_v2 = vpop.f32.mrf.mxu0 }
 0x661   : > { %v4134_v60 = vadd.f32 %v7686_v22, %v4133_v2 }
 0x663   : > { %v4282_v40 = vadd.f32 %v4134_v60, %v7519_v36 }
 0x668   : > { %v4135_v5 = vpop.f32.mrf.mxu0 }
 0x669   : > { %v4136_v35 = vadd.f32 %v7686_v22, %v4135_v5 }
 0x66b   : > { %v4283_v11 = vadd.f32 %v4136_v35, %v7525_v42 }
 0x66d   : > { %v5583_v61 = vpack.c.bf16 %v4283_v11, %v4282_v40 }
 0x66f   : > { %5671 = vst [vmem:[%s6722_s27 + $0x1c8] sm:$0xff] %v5583_v61  }
 0x670   : > { %v4138_v44 = vpop.f32.mrf.mxu0 }
 0x671   : > { %v4139_v49 = vadd.f32 %v7686_v22, %v4138_v44 }
 0x673   : > { %v4284_v41 = vadd.f32 %v4139_v49, %v7534_v6 }
 0x678   : > { %v4140_v3 = vpop.f32.mrf.mxu0 }
 0x679   : > { %v4141_v24 = vadd.f32 %v7686_v22, %v4140_v3 }
 0x67b   : > { %v4285_v30 = vadd.f32 %v4141_v24, %v7540_v14 }
 0x67d   : > { %v5588_v13 = vpack.c.bf16 %v4285_v30, %v4284_v41 }
 0x67f   : > { %5672 = vst [vmem:[%s6722_s27 + $0x1d0] sm:$0xff] %v5588_v13  }
 0x680   : > { %v4143_v39 = vpop.f32.mrf.mxu0 }
 0x681   : > { %v4144_v36 = vadd.f32 %v7686_v22, %v4143_v39 }
 0x683   : > { %v4286_v0 = vadd.f32 %v4144_v36, %v7549_v31 }
 0x688   : > { %v4145_v42 = vpop.f32.mrf.mxu0 }
 0x689   : > { %v4146_v58 = vadd.f32 %v7686_v22, %v4145_v42 }
 0x68b   : > { %v4287_v10 = vadd.f32 %v4146_v58, %v7555_v20 }
 0x68d   : > { %v5593_v7 = vpack.c.bf16 %v4287_v10, %v4286_v0 }
 0x68f   : > { %5673 = vst [vmem:[%s6722_s27 + $0x1d8] sm:$0xff] %v5593_v7  }
 0x690   : > { %v4148_v25 = vpop.f32.mrf.mxu0 }
 0x691   : > { %v4149_v6 = vadd.f32 %v7686_v22, %v4148_v25 }
 0x693   : > { %v4288_v38 = vadd.f32 %v4149_v6, %v7564_v52 }
 0x698   : > { %v4150_v14 = vpop.f32.mrf.mxu0 }
 0x699   : > { %v4151_v1 = vadd.f32 %v7686_v22, %v4150_v14 }
 0x69b   : > { %v4289_v55 = vadd.f32 %v4151_v1, %v7575_v34 }
 0x69d   : > { %v5598_v21 = vpack.c.bf16 %v4289_v55, %v4288_v38 }
 0x69f   : > { %5674 = vst [vmem:[%s6722_s27 + $0x1e0] sm:$0xff] %v5598_v21  }
 0x6a0   : > { %v4153_v50 = vpop.f32.mrf.mxu0 }
 0x6a1   : > { %v4154_v31 = vadd.f32 %v7686_v22, %v4153_v50 }
 0x6a3   : > { %v4290_v18 = vadd.f32 %v4154_v31, %v7584_v28 }
 0x6a8   : > { %v4155_v20 = vpop.f32.mrf.mxu0 }
 0x6a9   : > { %v4156_v62 = vadd.f32 %v7686_v22, %v4155_v20 }
 0x6ab   : > { %v4291_v33 = vadd.f32 %v4156_v62, %v7590_v43 }
 0x6ad   : > { %v5603_v4 = vpack.c.bf16 %v4291_v33, %v4290_v18 }
 0x6af   : > { %5675 = vst [vmem:[%s6722_s27 + $0x1e8] sm:$0xff] %v5603_v4  }
 0x6b0   : > { %v4158_v52 = vpop.f32.mrf.mxu0 }
 0x6b1   : > { %v4159_v34 = vadd.f32 %v7686_v22, %v4158_v52 }
 0x6b3   : > { %v4292_v32 = vadd.f32 %v4159_v34, %v7599_v9 }
 0x6b8   : > { %v4160_v16 = vpop.f32.mrf.mxu0 }
 0x6b9   : > { %v4161_v47 = vadd.f32 %v7686_v22, %v4160_v16 }
 0x6bb   : > { %v4293_v53 = vadd.f32 %v4161_v47, %v7605_v46 }
 0x6bd   : > { %v5608_v63 = vpack.c.bf16 %v4293_v53, %v4292_v32 }
 0x6bf   : > { %5676 = vst [vmem:[%s6722_s27 + $0x1f0] sm:$0xff] %v5608_v63  }
 0x6c6   : > { %v4163_v28 = vpop.f32.mrf.mxu3 }
 0x6c7   : > { %v4164_v43 = vadd.f32 %v7686_v22, %v4163_v28 }
 0x6c9   : > { %v4294_v9 = vadd.f32 %v4164_v43, %v7614_v54 }
 0x6ce   : > { %v4165_v37 = vpop.f32.mrf.mxu3 }
 0x6cf   : > { %v4166_v15 = vadd.f32 %v7686_v22, %v4165_v37 }
 0x6d1   : > { %v4295_v46 = vadd.f32 %v4166_v15, %v7620_v27 }
 0x6d3   : > { %v5613_v56 = vpack.c.bf16 %v4295_v46, %v4294_v9 }
 0x6d5   : > { %5677 = vst [vmem:[%s6722_s27 + $0x1f8] sm:$0xff] %v5613_v56  }
 0x6d6   : > { %5781 = shalt.err (!%p5778_p3)
}
 0x6d7   : > { %s5818_s25 = smov 64   ;;  %s5819_s27 = smov 4  }
 0x6d8   : > { %5698 = dma.vmem_to_hbm [thread:$0]  (%p5913_p5), %s4566_s26, 8192, %s4568_s21, %s4553_s17, %s5818_s25, %s5818_s25, %s5819_s27  }
 0x6d9 PF: > { %p5704_p4 = scmp.ge.s32.totalorder %s5816_s16, 2  ;;  %s4582_s30 = sand.u32 1, %s5804_s13  }
 0x6da   : > { %s4583_s11 = scalar_lea.sflag [#allocation3], %s4582_s30 }
 0x6db   : > { %p5701_p7 = pnand %p5704_p4, %p5917_p6 }
 0x6dd   : > { %p5702_p8 = pneg %p5701_p7 }
 0x6df   : > { %5799 = dma.done.wait (%p5702_p8), %s4583_s11, 8192  }
 0x6e0   : > { %5801 = vsyncadd (%p5702_p8), %s4583_s11, 4294959104  ;;  %p20_p9 = scmp.ge.s32.totalorder %s5900_s19, 4   ;;  %s7879_s13 = smov %s5808_s14 }
 0x6e1   : > { %s7880_s14 = smov %s5812_s15  ;;  %s7881_s15 = smov %s5911_s22 }
 0x6e2   : > { %s7882_s16 = smov %s5900_s19  ;;  %22 = sbr.rel (!%p20_p9) target bundleno = 3 (0x3), region = 95 }
 0x6e7   :  { %4589 = vsyncpa [#allocation3], 1 }
 0x6e8   :  { %4591 = vsyncpa [#allocation3 + $0x1], 1 }

</bundles_post_ra>
